<compile_context>
chip_gen: v7x
topology: tpu7x:2x2x1
jax: 0.10.0
libtpu: 0.0.40
codegen_flags: <defaults>
</compile_context>

<pallas_src>
import functools

import jax
import jax.numpy as jnp
from jax import lax
from jax.experimental import pallas as pl
from jax.experimental.pallas import tpu as pltpu

EPS = 1e-5
LANE = 128


def _round_up(x, m):
    return (x + m - 1) // m * m


def _pick_row_tile(m):
    # Large fixed row tiles (512-1024 rows ~ 85%+ of the HBM streaming roofline).
    for c in (1024, 512, 256, 128, 64, 32, 16, 8):
        if m >= c:
            return c
    return 8


def _pad_last(a, target):
    pad = target - a.shape[-1]
    if pad == 0:
        return a
    return jnp.pad(a, [(0, 0)] * (a.ndim - 1) + [(0, pad)])


def _vmem_limit_bytes():
    # Don't claim the whole physical VMEM (esp. v7x's 64 MiB): leave headroom for compiler
    # scratch and double-buffering. 0.75 * capacity, with a safe 48 MiB fallback.
    try:
        cap = int(pltpu.get_tpu_info().vmem_capacity_bytes)
    except Exception:
        cap = 64 * 1024 * 1024
    return (cap * 3) // 4


def _row_mask(tm, m_real):
    # (tm, 1) f32 validity mask for the current row tile: 1.0 for real rows, 0.0 for the
    # zero-padding rows appended to make M a multiple of the tile.
    r = lax.broadcasted_iota(jnp.int32, (tm, 1), 0) + pl.program_id(0) * tm
    return (r < m_real).astype(jnp.float32)


# ------------------------------ Pallas kernels ------------------------------ #

def _conv1x1_stats_kernel(x_ref, w_ref, t_ref, st_ref, *, m_real):
    # 1x1 conv over channels == (rows, Cin) @ (Cin, mid) on the MXU with bf16 operands.
    # BN1 sum / sum-of-squares partials are taken from the f32 product before the bf16
    # downcast; rows belonging to the M-padding are masked out.
    t = jnp.dot(x_ref[...], w_ref[...], preferred_element_type=jnp.float32)
    t_ref[...] = t.astype(t_ref.dtype)
    valid = _row_mask(t.shape[0], m_real)
    tv = t * valid
    st_ref[0, 0:1, :] = jnp.sum(tv, axis=0, keepdims=True)
    st_ref[0, 1:2, :] = jnp.sum(t * tv, axis=0, keepdims=True)


def _depthwise_stats_kernel(t_ref, prm_ref, wdw_ref, d_ref, st_ref, pad_ref):
    # prm_ref: (3, C) = [BN1 scale, BN1 shift, PReLU1 alpha]  (folded affine BN)
    _, H, W, C = t_ref.shape
    prm = prm_ref[...]
    s1 = prm[0:1, :].reshape(1, 1, C)
    o1 = prm[1:2, :].reshape(1, 1, C)
    a1 = prm[2:3, :].reshape(1, 1, C)

    u = t_ref[0].astype(jnp.float32) * s1 + o1       # BN1 (train-mode stats, folded)
    u = jnp.where(u >= 0, u, a1 * u)                 # PReLU1

    # Zero-haloed VMEM scratch: write the interior, zero only the 1-px border (re-zeroed
    # every step: the grid axis is "parallel", so a once-only init is unsafe on megacore).
    zrow = jnp.zeros((1, W + 2, C), jnp.float32)
    zcol = jnp.zeros((H + 2, 1, C), jnp.float32)
    pad_ref[0:1, :, :] = zrow
    pad_ref[H + 1:H + 2, :, :] = zrow
    pad_ref[:, 0:1, :] = zcol
    pad_ref[:, W + 1:W + 2, :] = zcol
    pad_ref[1:H + 1, 1:W + 1, :] = u

    # Load all 9 taps once (hoisted out of the MAC loop).
    wdw = wdw_ref[...]                               # (9, C) f32
    taps = [wdw[k:k + 1, :].reshape(1, 1, C) for k in range(9)]

    # One (H, W+2, C) slab load per kh; kw shifts are value-level sublane shifts (XLU).
    acc = jnp.zeros((H, W, C), jnp.float32)
    for kh in range(3):
        slab = pad_ref[kh:kh + H, :, :]
        acc = acc + slab[:, 0:W, :] * taps[3 * kh + 0]
        acc = acc + slab[:, 1:W + 1, :] * taps[3 * kh + 1]
        acc = acc + slab[:, 2:W + 2, :] * taps[3 * kh + 2]

    d_ref[0] = acc.astype(d_ref.dtype)
    # BN2 stat partials from the f32 accumulator (axis reductions, no H*W reshape).
    st_ref[0:1, 0:1, :] = jnp.sum(acc, axis=(0, 1), keepdims=True)
    st_ref[0:1, 1:2, :] = jnp.sum(acc * acc, axis=(0, 1), keepdims=True)


def _pointwise_stats_kernel(d_ref, prm_ref, w_ref, p_ref, st_ref, *, m_real):
    # prm_ref: (3, C) = [BN2 scale, BN2 shift, PReLU2 alpha]
    prm = prm_ref[...]
    e = d_ref[...].astype(jnp.float32) * prm[0:1, :] + prm[1:2, :]   # BN2 folded affine
    e = jnp.where(e >= 0, e, prm[2:3, :] * e)                        # PReLU2
    p = jnp.dot(e.astype(jnp.bfloat16), w_ref[...],                  # pointwise 1x1 (MXU)
                preferred_element_type=jnp.float32)
    p_ref[...] = p.astype(p_ref.dtype)
    # Masked BN3 stat partials: padded rows are NOT zero after the BN2 shift (o2 != 0),
    # so the mask is required for correctness here.
    valid = _row_mask(p.shape[0], m_real)
    pv = p * valid
    st_ref[0, 0:1, :] = jnp.sum(pv, axis=0, keepdims=True)
    st_ref[0, 1:2, :] = jnp.sum(p * pv, axis=0, keepdims=True)


# --------------------------------- wrapper ---------------------------------- #

def _finish_stats(partials, count, gamma, beta):
    # partials: (T, 2, C) per-tile [sum, sumsq] of exact global batch statistics ->
    # folded BN (scale, shift).  Biased (training-mode) variance, eps = 1e-5.
    # TODO(synk): for very large N*H*W switch to centered/Welford accumulation to avoid
    #             sum/sumsq cancellation.
    tot = jnp.sum(partials, axis=0)                        # (2, C)
    mean = tot[0] / count
    var = jnp.maximum(tot[1] / count - mean * mean, 0.0)
    scale = gamma * lax.rsqrt(var + EPS)
    shift = beta - mean * scale
    return scale, shift


@jax.jit
def bottleneck_forward(x_nchw, w1, wdw, wpw, g1, b1, a1, g2, b2, a2, g3, b3):
    N, Cin, H, W = x_nchw.shape
    mid = w1.shape[1]
    Cout = wpw.shape[1]
    assert Cin == Cout, "stride=[1,1] BottleNeck residual requires in_c == out_c"

    Cio = _round_up(Cin, LANE)     # lane-dense padded in/out channel width
    Cm = _round_up(mid, LANE)      # lane-dense padded mid channel width
    # NOTE: with Cio = Cm = 128 the contraction/output dims fill only half of the 256-wide
    # MXU on v6e/v7x; accepted for narrow mobile channel widths (review item).
    M = N * H * W
    TM = _pick_row_tile(M)
    Mp = _round_up(M, TM)
    T = Mp // TM
    f32, bf16 = jnp.float32, jnp.bfloat16

    # ---- lane-dense packing: channels zero-padded to 128 on the minor axis ----
    x_nhwc = jnp.transpose(x_nchw, (0, 2, 3, 1)).astype(f32)
    x2 = _pad_last(x_nhwc, Cio).reshape(M, Cio)
    if Mp != M:
        x2 = jnp.pad(x2, ((0, Mp - M), (0, 0)))
    x2 = x2.astype(bf16)

    w1p = jnp.zeros((Cio, Cm), f32).at[:Cin, :mid].set(w1.astype(f32)).astype(bf16)
    wdwp = _pad_last(wdw.astype(f32), Cm)                                  # (9, Cm) f32
    wpwp = jnp.zeros((Cm, Cio), f32).at[:mid, :Cout].set(wpw.astype(f32)).astype(bf16)
    g1p, b1p, a1p = (_pad_last(v.astype(f32), Cm) for v in (g1, b1, a1))
    g2p, b2p, a2p = (_pad_last(v.astype(f32), Cm) for v in (g2, b2, a2))
    g3p, b3p = (_pad_last(v.astype(f32), Cio) for v in (g3, b3))

    cparams = pltpu.CompilerParams(dimension_semantics=("parallel",),
                                   vmem_limit_bytes=_vmem_limit_bytes())
    row_spec_io = pl.BlockSpec((TM, Cio), lambda i: (i, 0))
    row_spec_m = pl.BlockSpec((TM, Cm), lambda i: (i, 0))

    # ---- pass 1: 1x1 conv (bf16 MXU) + BN1 stat partials ----
    t2, st1 = pl.pallas_call(
        functools.partial(_conv1x1_stats_kernel, m_real=M),
        grid=(T,),
        in_specs=[row_spec_io, pl.BlockSpec((Cio, Cm), lambda i: (0, 0))],
        out_specs=(row_spec_m, pl.BlockSpec((1, 2, Cm), lambda i: (i, 0, 0))),
        out_shape=(jax.ShapeDtypeStruct((Mp, Cm), bf16),
                   jax.ShapeDtypeStruct((T, 2, Cm), f32)),
        compiler_params=cparams,
    )(x2, w1p)
    s1, o1 = _finish_stats(st1, M, g1p, b1p)
    prm1 = jnp.stack([s1, o1, a1p])                                        # (3, Cm)

    # ---- pass 2: BN1 + PReLU + depthwise 3x3 + BN2 stat partials ----
    t4 = t2[:M].reshape(N, H, W, Cm)
    d4, st2 = pl.pallas_call(
        _depthwise_stats_kernel,
        grid=(N,),
        in_specs=[pl.BlockSpec((1, H, W, Cm), lambda n: (n, 0, 0, 0)),
                  pl.BlockSpec((3, Cm), lambda n: (0, 0)),
                  pl.BlockSpec((9, Cm), lambda n: (0, 0))],
        out_specs=(pl.BlockSpec((1, H, W, Cm), lambda n: (n, 0, 0, 0)),
                   pl.BlockSpec((1, 2, Cm), lambda n: (n, 0, 0))),
        out_shape=(jax.ShapeDtypeStruct((N, H, W, Cm), bf16),
                   jax.ShapeDtypeStruct((N, 2, Cm), f32)),
        scratch_shapes=[pltpu.VMEM((H + 2, W + 2, Cm), f32)],
        compiler_params=cparams,
    )(t4, prm1, wdwp)
    s2, o2 = _finish_stats(st2, M, g2p, b2p)
    prm2 = jnp.stack([s2, o2, a2p])                                        # (3, Cm)

    # ---- pass 3: BN2 + PReLU + pointwise 1x1 conv (bf16 MXU) + BN3 stat partials ----
    d2 = d4.reshape(M, Cm)
    if Mp != M:
        d2 = jnp.pad(d2, ((0, Mp - M), (0, 0)))
    p2, st3 = pl.pallas_call(
        functools.partial(_pointwise_stats_kernel, m_real=M),
        grid=(T,),
        in_specs=[row_spec_m,
                  pl.BlockSpec((3, Cm), lambda i: (0, 0)),
                  pl.BlockSpec((Cm, Cio), lambda i: (0, 0))],
        out_specs=(row_spec_io, pl.BlockSpec((1, 2, Cio), lambda i: (i, 0, 0))),
        out_shape=(jax.ShapeDtypeStruct((Mp, Cio), bf16),
                   jax.ShapeDtypeStruct((T, 2, Cio), f32)),
        compiler_params=cparams,
    )(d2, prm2, wpwp)
    s3, o3 = _finish_stats(st3, M, g3p, b3p)

    # ---- epilogue (plain JAX, fused by XLA with the unpad/transpose): residual + BN3 ----
    p_nhwc = p2[:M, :Cout].astype(f32).reshape(N, H, W, Cout)
    out_nhwc = x_nhwc + p_nhwc * s3[:Cout] + o3[:Cout]
    return jnp.transpose(out_nhwc, (0, 3, 1, 2))                           # NHWC -> NCHW


# ----------------------- deterministic parameter setup ---------------------- #

def init_params(key, in_c, out_c, mid):
    ks = jax.random.split(key, 9)
    # PyTorch-shaped (OIHW) raw weights for the reference.
    w1_oihw = 0.3 * jax.random.normal(ks[0], (mid, in_c, 1, 1), jnp.float32)
    wdw_oihw = 0.3 * jax.random.normal(ks[1], (mid, 1, 3, 3), jnp.float32)
    wpw_oihw = 0.3 * jax.random.normal(ks[2], (out_c, mid, 1, 1), jnp.float32)
    g1 = 1.0 + 0.1 * jax.random.normal(ks[3], (mid,), jnp.float32)
    b1 = 0.1 * jax.random.normal(ks[4], (mid,), jnp.float32)
    g2 = 1.0 + 0.1 * jax.random.normal(ks[5], (mid,), jnp.float32)
    b2 = 0.1 * jax.random.normal(ks[6], (mid,), jnp.float32)
    g3 = 1.0 + 0.1 * jax.random.normal(ks[7], (out_c,), jnp.float32)
    b3 = 0.1 * jax.random.normal(ks[8], (out_c,), jnp.float32)
    a1 = jnp.full((mid,), 0.25, jnp.float32)   # PReLU default init
    a2 = jnp.full((mid,), 0.25, jnp.float32)

    raw = (w1_oihw, wdw_oihw, wpw_oihw, g1, b1, a1, g2, b2, a2, g3, b3)

    # Logical (kernel-friendly) layouts: channels-last matmul weights, (9, mid) taps.
    w1 = jnp.transpose(w1_oihw[:, :, 0, 0], (1, 0))                        # (in_c, mid)
    wdw = jnp.transpose(wdw_oihw[:, 0, :, :], (1, 2, 0)).reshape(9, mid)   # (9, mid)
    wpw = jnp.transpose(wpw_oihw[:, :, 0, 0], (1, 0))                      # (mid, out_c)
    logical = (w1, wdw, wpw, g1, b1, a1, g2, b2, a2, g3, b3)
    return raw, logical


# ------------------------- pure-JAX reference (NCHW) ------------------------ #

def bottleneck_reference(x_nchw, raw):
    w1, wdw, wpw, g1, b1, a1, g2, b2, a2, g3, b3 = raw
    dn = ('NCHW', 'OIHW', 'NCHW')

    def bn(v, g, b):
        mean = jnp.mean(v, axis=(0, 2, 3), keepdims=True)
        var = jnp.mean((v - mean) ** 2, axis=(0, 2, 3), keepdims=True)
        return (v - mean) * lax.rsqrt(var + EPS) * g.reshape(1, -1, 1, 1) + b.reshape(1, -1, 1, 1)

    def prelu(v, a):
        return jnp.where(v >= 0, v, a.reshape(1, -1, 1, 1) * v)

    t = lax.conv_general_dilated(x_nchw, w1, (1, 1), 'VALID', dimension_numbers=dn)
    t = prelu(bn(t, g1, b1), a1)
    d = lax.conv_general_dilated(t, wdw, (1, 1), ((1, 1), (1, 1)),
                                 dimension_numbers=dn, feature_group_count=t.shape[1])
    d = prelu(bn(d, g2, b2), a2)
    p = lax.conv_general_dilated(d, wpw, (1, 1), 'VALID', dimension_numbers=dn)
    p = bn(p, g3, b3)
    return x_nchw + p


# ----------------------------------- main ------------------------------------ #

if __name__ == "__main__":
    key = jax.random.PRNGKey(0)
    N, in_c, H, W = 2, 4, 16, 16
    out_c, mid = 4, 8              # BottleNeck(in_c=4, out_c=4, stride=[1,1], groups=8)

    kx, kp = jax.random.split(key)
    x = jax.random.normal(kx, (N, in_c, H, W), jnp.float32)
    raw, logical = init_params(kp, in_c, out_c, mid)

    y = bottleneck_forward(x, *logical)
    y = jax.block_until_ready(y)

    y_ref = bottleneck_reference(x, raw)
    assert y.shape == (N, out_c, H, W), y.shape
    # bf16 MXU operands + bf16 inter-pass activation storage => looser tolerance than f32.
    err = float(jnp.max(jnp.abs(y - y_ref)))
    assert jnp.allclose(y, y_ref, atol=5e-2, rtol=5e-2), f"max abs err = {err}"

    print("KERNEL_OK")
</pallas_src>

<mosaic_0001>
module attributes {stable_mosaic.version = 11 : i64} {
  func.func @_conv1x1_stats_kernel(%arg0: i32, %arg1: memref<512x128xbf16, #tpu.memory_space<vmem>>, %arg2: memref<128x128xbf16, #tpu.memory_space<vmem>>, %arg3: memref<512x128xbf16, #tpu.memory_space<vmem>>, %arg4: memref<1x2x128xf32, #tpu.memory_space<vmem>>) attributes {dimension_semantics = [#tpu.dimension_semantics<parallel>], iteration_bounds = array<i64: 1>, scalar_prefetch = 0 : i64, scratch_operands = 0 : i64, tpu.core_type = #tpu.core_type<tc>, window_params = [{transform_indices = @transform_0, window_bounds = array<i64: 512, 128>}, {pipeline_mode = #tpu.pipeline_mode<synchronous>, transform_indices = @transform_1, window_bounds = array<i64: 128, 128>}, {transform_indices = @transform_2, window_bounds = array<i64: 512, 128>}, {transform_indices = @transform_3, window_bounds = array<i64: 1, 2, 128>}]} {
    %c0 = arith.constant 0 : index
    %c0_0 = arith.constant 0 : index
    %0 = vector.load %arg1[%c0, %c0_0] : memref<512x128xbf16, #tpu.memory_space<vmem>>, vector<512x128xbf16>
    %c0_1 = arith.constant 0 : index
    %c0_2 = arith.constant 0 : index
    %1 = vector.load %arg2[%c0_1, %c0_2] : memref<128x128xbf16, #tpu.memory_space<vmem>>, vector<128x128xbf16>
    %cst = arith.constant dense<0.000000e+00> : vector<512x128xf32>
    %2 = tpu.matmul %0, %1, %cst {dimension_numbers = #tpu.dot_dimension_numbers<[1], [0], [0], [1], [0, 0, 1, 1], [], []>} : vector<512x128xbf16>, vector<128x128xbf16>, vector<512x128xf32> -> vector<512x128xf32>
    %3 = arith.truncf %2 : vector<512x128xf32> to vector<512x128xbf16>
    %c0_3 = arith.constant 0 : index
    %c0_4 = arith.constant 0 : index
    %4 = vector.load %arg3[%c0_3, %c0_4] : memref<512x128xbf16, #tpu.memory_space<vmem>>, vector<512x128xbf16>
    tpu.vector_store %arg3[%c0_3, %c0_4], %3 {strides = array<i32>} : memref<512x128xbf16, #tpu.memory_space<vmem>>, vector<512x128xbf16>,
    %5 = tpu.iota {dimensions = array<i32: 0>} : vector<512x1xi32>
    %c512_i32 = arith.constant 512 : i32
    %6 = arith.muli %arg0, %c512_i32 : i32
    %7 = vector.broadcast %6 : i32 to vector<512x1xi32>
    %8 = arith.addi %5, %7 : vector<512x1xi32>
    %c512_i32_5 = arith.constant 512 : i32
    %9 = vector.broadcast %c512_i32_5 : i32 to vector<512x1xi32>
    %10 = arith.cmpi slt, %8, %9 : vector<512x1xi32>
    %11 = arith.extui %10 : vector<512x1xi1> to vector<512x1xi32>
    %12 = arith.sitofp %11 : vector<512x1xi32> to vector<512x1xf32>
    %13 = vector.broadcast %12 : vector<512x1xf32> to vector<512x128xf32>
    %14 = arith.mulf %2, %13 : vector<512x128xf32>
    %cst_6 = arith.constant dense<0.000000e+00> : vector<128xf32>
    %15 = vector.multi_reduction <add>, %14, %cst_6 [0] : vector<512x128xf32> to vector<128xf32>
    %16 = vector.shape_cast %15 : vector<128xf32> to vector<1x128xf32>
    %c0_7 = arith.constant 0 : index
    %c0_8 = arith.constant 0 : index
    %c0_9 = arith.constant 0 : index
    %17 = vector.load %arg4[%c0_7, %c0_8, %c0_9] : memref<1x2x128xf32, #tpu.memory_space<vmem>>, vector<1x1x128xf32>
    %18 = vector.shape_cast %17 : vector<1x1x128xf32> to vector<1x128xf32>
    %19 = vector.shape_cast %16 : vector<1x128xf32> to vector<1x1x128xf32>
    tpu.vector_store %arg4[%c0_7, %c0_8, %c0_9], %19 {strides = array<i32>} : memref<1x2x128xf32, #tpu.memory_space<vmem>>, vector<1x1x128xf32>,
    %20 = arith.mulf %2, %14 : vector<512x128xf32>
    %cst_10 = arith.constant dense<0.000000e+00> : vector<128xf32>
    %21 = vector.multi_reduction <add>, %20, %cst_10 [0] : vector<512x128xf32> to vector<128xf32>
    %22 = vector.shape_cast %21 : vector<128xf32> to vector<1x128xf32>
    %c0_11 = arith.constant 0 : index
    %c1 = arith.constant 1 : index
    %c0_12 = arith.constant 0 : index
    %23 = vector.load %arg4[%c0_11, %c1, %c0_12] : memref<1x2x128xf32, #tpu.memory_space<vmem>>, vector<1x1x128xf32>
    %24 = vector.shape_cast %23 : vector<1x1x128xf32> to vector<1x128xf32>
    %25 = vector.shape_cast %22 : vector<1x128xf32> to vector<1x1x128xf32>
    tpu.vector_store %arg4[%c0_11, %c1, %c0_12], %25 {strides = array<i32>} : memref<1x2x128xf32, #tpu.memory_space<vmem>>, vector<1x1x128xf32>,
    return
  }
  func.func @transform_0(%arg0: i32) -> (i32, i32) {
    %c0_i32 = arith.constant 0 : i32
    %c0_i32_0 = arith.constant 0 : i32
    return %arg0, %c0_i32 : i32, i32
  }
  func.func @transform_1(%arg0: i32) -> (i32, i32) {
    %c0_i32 = arith.constant 0 : i32
    %c0_i32_0 = arith.constant 0 : i32
    %c0_i32_1 = arith.constant 0 : i32
    return %c0_i32, %c0_i32_0 : i32, i32
  }
  func.func @transform_2(%arg0: i32) -> (i32, i32) {
    %c0_i32 = arith.constant 0 : i32
    %c0_i32_0 = arith.constant 0 : i32
    return %arg0, %c0_i32 : i32, i32
  }
  func.func @transform_3(%arg0: i32) -> (i32, i32, i32) {
    %c0_i32 = arith.constant 0 : i32
    %c0_i32_0 = arith.constant 0 : i32
    %c0_i32_1 = arith.constant 0 : i32
    return %arg0, %c0_i32, %c0_i32_0 : i32, i32, i32
  }
}

module attributes {stable_mosaic.version = 11 : i64} {
  func.func @_depthwise_stats_kernel(%arg0: i32, %arg1: memref<1x16x16x128xbf16, #tpu.memory_space<vmem>>, %arg2: memref<3x128xf32, #tpu.memory_space<vmem>>, %arg3: memref<9x128xf32, #tpu.memory_space<vmem>>, %arg4: memref<1x16x16x128xbf16, #tpu.memory_space<vmem>>, %arg5: memref<1x2x128xf32, #tpu.memory_space<vmem>>, %arg6: memref<18x18x128xf32, #tpu.memory_space<vmem>>) attributes {dimension_semantics = [#tpu.dimension_semantics<parallel>], iteration_bounds = array<i64: 2>, scalar_prefetch = 0 : i64, scratch_operands = 1 : i64, tpu.core_type = #tpu.core_type<tc>, window_params = [{transform_indices = @transform_0, window_bounds = array<i64: 1, 16, 16, 128>}, {pipeline_mode = #tpu.pipeline_mode<synchronous>, transform_indices = @transform_1, window_bounds = array<i64: 3, 128>}, {pipeline_mode = #tpu.pipeline_mode<synchronous>, transform_indices = @transform_2, window_bounds = array<i64: 9, 128>}, {transform_indices = @transform_3, window_bounds = array<i64: 1, 16, 16, 128>}, {transform_indices = @transform_4, window_bounds = array<i64: 1, 2, 128>}]} {
    %c0 = arith.constant 0 : index
    %c0_0 = arith.constant 0 : index
    %0 = vector.load %arg2[%c0, %c0_0] : memref<3x128xf32, #tpu.memory_space<vmem>>, vector<3x128xf32>
    %1 = vector.extract_strided_slice %0 {offsets = [0, 0], sizes = [1, 128], strides = [1, 1]} : vector<3x128xf32> to vector<1x128xf32>
    %2 = vector.shape_cast %1 : vector<1x128xf32> to vector<1x1x128xf32>
    %3 = vector.extract_strided_slice %0 {offsets = [1, 0], sizes = [1, 128], strides = [1, 1]} : vector<3x128xf32> to vector<1x128xf32>
    %4 = vector.shape_cast %3 : vector<1x128xf32> to vector<1x1x128xf32>
    %5 = vector.extract_strided_slice %0 {offsets = [2, 0], sizes = [1, 128], strides = [1, 1]} : vector<3x128xf32> to vector<1x128xf32>
    %6 = vector.shape_cast %5 : vector<1x128xf32> to vector<1x1x128xf32>
    %c0_1 = arith.constant 0 : index
    %c0_2 = arith.constant 0 : index
    %c0_3 = arith.constant 0 : index
    %c0_4 = arith.constant 0 : index
    %7 = vector.load %arg1[%c0_1, %c0_2, %c0_3, %c0_4] : memref<1x16x16x128xbf16, #tpu.memory_space<vmem>>, vector<1x16x16x128xbf16>
    %8 = vector.shape_cast %7 : vector<1x16x16x128xbf16> to vector<16x16x128xbf16>
    %9 = arith.extf %8 : vector<16x16x128xbf16> to vector<16x16x128xf32>
    %10 = vector.broadcast %2 : vector<1x1x128xf32> to vector<16x16x128xf32>
    %11 = arith.mulf %9, %10 : vector<16x16x128xf32>
    %12 = vector.broadcast %4 : vector<1x1x128xf32> to vector<16x16x128xf32>
    %13 = arith.addf %11, %12 : vector<16x16x128xf32>
    %cst = arith.constant 0.000000e+00 : f32
    %14 = vector.broadcast %cst : f32 to vector<16x16x128xf32>
    %15 = arith.cmpf oge, %13, %14 : vector<16x16x128xf32>
    %16 = vector.broadcast %6 : vector<1x1x128xf32> to vector<16x16x128xf32>
    %17 = arith.mulf %16, %13 : vector<16x16x128xf32>
    %18 = arith.select %15, %13, %17 : vector<16x16x128xi1>, vector<16x16x128xf32>
    %cst_5 = arith.constant 0.000000e+00 : f32
    %19 = vector.broadcast %cst_5 : f32 to vector<1x18x128xf32>
    %cst_6 = arith.constant 0.000000e+00 : f32
    %20 = vector.broadcast %cst_6 : f32 to vector<18x1x128xf32>
    %c0_7 = arith.constant 0 : index
    %c0_8 = arith.constant 0 : index
    %c0_9 = arith.constant 0 : index
    %21 = vector.load %arg6[%c0_7, %c0_8, %c0_9] : memref<18x18x128xf32, #tpu.memory_space<vmem>>, vector<1x18x128xf32>
    tpu.vector_store %arg6[%c0_7, %c0_8, %c0_9], %19 {strides = array<i32>} : memref<18x18x128xf32, #tpu.memory_space<vmem>>, vector<1x18x128xf32>,
    %c17 = arith.constant 17 : index
    %c0_10 = arith.constant 0 : index
    %c0_11 = arith.constant 0 : index
    %22 = vector.load %arg6[%c17, %c0_10, %c0_11] : memref<18x18x128xf32, #tpu.memory_space<vmem>>, vector<1x18x128xf32>
    tpu.vector_store %arg6[%c17, %c0_10, %c0_11], %19 {strides = array<i32>} : memref<18x18x128xf32, #tpu.memory_space<vmem>>, vector<1x18x128xf32>,
    %c0_12 = arith.constant 0 : index
    %c0_13 = arith.constant 0 : index
    %c0_14 = arith.constant 0 : index
    %23 = vector.load %arg6[%c0_12, %c0_13, %c0_14] : memref<18x18x128xf32, #tpu.memory_space<vmem>>, vector<18x1x128xf32>
    tpu.vector_store %arg6[%c0_12, %c0_13, %c0_14], %20 {strides = array<i32>} : memref<18x18x128xf32, #tpu.memory_space<vmem>>, vector<18x1x128xf32>,
    %c0_15 = arith.constant 0 : index
    %c17_16 = arith.constant 17 : index
    %c0_17 = arith.constant 0 : index
    %24 = vector.load %arg6[%c0_15, %c17_16, %c0_17] : memref<18x18x128xf32, #tpu.memory_space<vmem>>, vector<18x1x128xf32>
    tpu.vector_store %arg6[%c0_15, %c17_16, %c0_17], %20 {strides = array<i32>} : memref<18x18x128xf32, #tpu.memory_space<vmem>>, vector<18x1x128xf32>,
    %c1 = arith.constant 1 : index
    %c1_18 = arith.constant 1 : index
    %c0_19 = arith.constant 0 : index
    %25 = vector.load %arg6[%c1, %c1_18, %c0_19] : memref<18x18x128xf32, #tpu.memory_space<vmem>>, vector<16x16x128xf32>
    tpu.vector_store %arg6[%c1, %c1_18, %c0_19], %18 {strides = array<i32>} : memref<18x18x128xf32, #tpu.memory_space<vmem>>, vector<16x16x128xf32>,
    %c0_20 = arith.constant 0 : index
    %c0_21 = arith.constant 0 : index
    %26 = vector.load %arg3[%c0_20, %c0_21] : memref<9x128xf32, #tpu.memory_space<vmem>>, vector<9x128xf32>
    %27 = vector.extract_strided_slice %26 {offsets = [0, 0], sizes = [1, 128], strides = [1, 1]} : vector<9x128xf32> to vector<1x128xf32>
    %28 = vector.shape_cast %27 : vector<1x128xf32> to vector<1x1x128xf32>
    %29 = vector.extract_strided_slice %26 {offsets = [1, 0], sizes = [1, 128], strides = [1, 1]} : vector<9x128xf32> to vector<1x128xf32>
    %30 = vector.shape_cast %29 : vector<1x128xf32> to vector<1x1x128xf32>
    %31 = vector.extract_strided_slice %26 {offsets = [2, 0], sizes = [1, 128], strides = [1, 1]} : vector<9x128xf32> to vector<1x128xf32>
    %32 = vector.shape_cast %31 : vector<1x128xf32> to vector<1x1x128xf32>
    %33 = vector.extract_strided_slice %26 {offsets = [3, 0], sizes = [1, 128], strides = [1, 1]} : vector<9x128xf32> to vector<1x128xf32>
    %34 = vector.shape_cast %33 : vector<1x128xf32> to vector<1x1x128xf32>
    %35 = vector.extract_strided_slice %26 {offsets = [4, 0], sizes = [1, 128], strides = [1, 1]} : vector<9x128xf32> to vector<1x128xf32>
    %36 = vector.shape_cast %35 : vector<1x128xf32> to vector<1x1x128xf32>
    %37 = vector.extract_strided_slice %26 {offsets = [5, 0], sizes = [1, 128], strides = [1, 1]} : vector<9x128xf32> to vector<1x128xf32>
    %38 = vector.shape_cast %37 : vector<1x128xf32> to vector<1x1x128xf32>
    %39 = vector.extract_strided_slice %26 {offsets = [6, 0], sizes = [1, 128], strides = [1, 1]} : vector<9x128xf32> to vector<1x128xf32>
    %40 = vector.shape_cast %39 : vector<1x128xf32> to vector<1x1x128xf32>
    %41 = vector.extract_strided_slice %26 {offsets = [7, 0], sizes = [1, 128], strides = [1, 1]} : vector<9x128xf32> to vector<1x128xf32>
    %42 = vector.shape_cast %41 : vector<1x128xf32> to vector<1x1x128xf32>
    %43 = vector.extract_strided_slice %26 {offsets = [8, 0], sizes = [1, 128], strides = [1, 1]} : vector<9x128xf32> to vector<1x128xf32>
    %44 = vector.shape_cast %43 : vector<1x128xf32> to vector<1x1x128xf32>
    %cst_22 = arith.constant 0.000000e+00 : f32
    %45 = vector.broadcast %cst_22 : f32 to vector<16x16x128xf32>
    %c0_23 = arith.constant 0 : index
    %c0_24 = arith.constant 0 : index
    %c0_25 = arith.constant 0 : index
    %46 = vector.load %arg6[%c0_23, %c0_24, %c0_25] : memref<18x18x128xf32, #tpu.memory_space<vmem>>, vector<16x18x128xf32>
    %47 = vector.extract_strided_slice %46 {offsets = [0, 0, 0], sizes = [16, 16, 128], strides = [1, 1, 1]} : vector<16x18x128xf32> to vector<16x16x128xf32>
    %48 = vector.broadcast %28 : vector<1x1x128xf32> to vector<16x16x128xf32>
    %49 = arith.mulf %47, %48 : vector<16x16x128xf32>
    %50 = arith.addf %45, %49 : vector<16x16x128xf32>
    %51 = vector.extract_strided_slice %46 {offsets = [0, 1, 0], sizes = [16, 16, 128], strides = [1, 1, 1]} : vector<16x18x128xf32> to vector<16x16x128xf32>
    %52 = vector.broadcast %30 : vector<1x1x128xf32> to vector<16x16x128xf32>
    %53 = arith.mulf %51, %52 : vector<16x16x128xf32>
    %54 = arith.addf %50, %53 : vector<16x16x128xf32>
    %55 = vector.extract_strided_slice %46 {offsets = [0, 2, 0], sizes = [16, 16, 128], strides = [1, 1, 1]} : vector<16x18x128xf32> to vector<16x16x128xf32>
    %56 = vector.broadcast %32 : vector<1x1x128xf32> to vector<16x16x128xf32>
    %57 = arith.mulf %55, %56 : vector<16x16x128xf32>
    %58 = arith.addf %54, %57 : vector<16x16x128xf32>
    %c1_26 = arith.constant 1 : index
    %c0_27 = arith.constant 0 : index
    %c0_28 = arith.constant 0 : index
    %59 = vector.load %arg6[%c1_26, %c0_27, %c0_28] : memref<18x18x128xf32, #tpu.memory_space<vmem>>, vector<16x18x128xf32>
    %60 = vector.extract_strided_slice %59 {offsets = [0, 0, 0], sizes = [16, 16, 128], strides = [1, 1, 1]} : vector<16x18x128xf32> to vector<16x16x128xf32>
    %61 = vector.broadcast %34 : vector<1x1x128xf32> to vector<16x16x128xf32>
    %62 = arith.mulf %60, %61 : vector<16x16x128xf32>
    %63 = arith.addf %58, %62 : vector<16x16x128xf32>
    %64 = vector.extract_strided_slice %59 {offsets = [0, 1, 0], sizes = [16, 16, 128], strides = [1, 1, 1]} : vector<16x18x128xf32> to vector<16x16x128xf32>
    %65 = vector.broadcast %36 : vector<1x1x128xf32> to vector<16x16x128xf32>
    %66 = arith.mulf %64, %65 : vector<16x16x128xf32>
    %67 = arith.addf %63, %66 : vector<16x16x128xf32>
    %68 = vector.extract_strided_slice %59 {offsets = [0, 2, 0], sizes = [16, 16, 128], strides = [1, 1, 1]} : vector<16x18x128xf32> to vector<16x16x128xf32>
    %69 = vector.broadcast %38 : vector<1x1x128xf32> to vector<16x16x128xf32>
    %70 = arith.mulf %68, %69 : vector<16x16x128xf32>
    %71 = arith.addf %67, %70 : vector<16x16x128xf32>
    %c2 = arith.constant 2 : index
    %c0_29 = arith.constant 0 : index
    %c0_30 = arith.constant 0 : index
    %72 = vector.load %arg6[%c2, %c0_29, %c0_30] : memref<18x18x128xf32, #tpu.memory_space<vmem>>, vector<16x18x128xf32>
    %73 = vector.extract_strided_slice %72 {offsets = [0, 0, 0], sizes = [16, 16, 128], strides = [1, 1, 1]} : vector<16x18x128xf32> to vector<16x16x128xf32>
    %74 = vector.broadcast %40 : vector<1x1x128xf32> to vector<16x16x128xf32>
    %75 = arith.mulf %73, %74 : vector<16x16x128xf32>
    %76 = arith.addf %71, %75 : vector<16x16x128xf32>
    %77 = vector.extract_strided_slice %72 {offsets = [0, 1, 0], sizes = [16, 16, 128], strides = [1, 1, 1]} : vector<16x18x128xf32> to vector<16x16x128xf32>
    %78 = vector.broadcast %42 : vector<1x1x128xf32> to vector<16x16x128xf32>
    %79 = arith.mulf %77, %78 : vector<16x16x128xf32>
    %80 = arith.addf %76, %79 : vector<16x16x128xf32>
    %81 = vector.extract_strided_slice %72 {offsets = [0, 2, 0], sizes = [16, 16, 128], strides = [1, 1, 1]} : vector<16x18x128xf32> to vector<16x16x128xf32>
    %82 = vector.broadcast %44 : vector<1x1x128xf32> to vector<16x16x128xf32>
    %83 = arith.mulf %81, %82 : vector<16x16x128xf32>
    %84 = arith.addf %80, %83 : vector<16x16x128xf32>
    %85 = arith.truncf %84 : vector<16x16x128xf32> to vector<16x16x128xbf16>
    %c0_31 = arith.constant 0 : index
    %c0_32 = arith.constant 0 : index
    %c0_33 = arith.constant 0 : index
    %c0_34 = arith.constant 0 : index
    %86 = vector.load %arg4[%c0_31, %c0_32, %c0_33, %c0_34] : memref<1x16x16x128xbf16, #tpu.memory_space<vmem>>, vector<1x16x16x128xbf16>
    %87 = vector.shape_cast %86 : vector<1x16x16x128xbf16> to vector<16x16x128xbf16>
    %88 = vector.shape_cast %85 : vector<16x16x128xbf16> to vector<1x16x16x128xbf16>
    tpu.vector_store %arg4[%c0_31, %c0_32, %c0_33, %c0_34], %88 {strides = array<i32>} : memref<1x16x16x128xbf16, #tpu.memory_space<vmem>>, vector<1x16x16x128xbf16>,
    %cst_35 = arith.constant dense<0.000000e+00> : vector<128xf32>
    %89 = vector.multi_reduction <add>, %84, %cst_35 [0, 1] : vector<16x16x128xf32> to vector<128xf32>
    %90 = vector.shape_cast %89 : vector<128xf32> to vector<1x1x128xf32>
    %c0_36 = arith.constant 0 : index
    %c0_37 = arith.constant 0 : index
    %c0_38 = arith.constant 0 : index
    %91 = vector.load %arg5[%c0_36, %c0_37, %c0_38] : memref<1x2x128xf32, #tpu.memory_space<vmem>>, vector<1x1x128xf32>
    tpu.vector_store %arg5[%c0_36, %c0_37, %c0_38], %90 {strides = array<i32>} : memref<1x2x128xf32, #tpu.memory_space<vmem>>, vector<1x1x128xf32>,
    %92 = arith.mulf %84, %84 : vector<16x16x128xf32>
    %cst_39 = arith.constant dense<0.000000e+00> : vector<128xf32>
    %93 = vector.multi_reduction <add>, %92, %cst_39 [0, 1] : vector<16x16x128xf32> to vector<128xf32>
    %94 = vector.shape_cast %93 : vector<128xf32> to vector<1x1x128xf32>
    %c0_40 = arith.constant 0 : index
    %c1_41 = arith.constant 1 : index
    %c0_42 = arith.constant 0 : index
    %95 = vector.load %arg5[%c0_40, %c1_41, %c0_42] : memref<1x2x128xf32, #tpu.memory_space<vmem>>, vector<1x1x128xf32>
    tpu.vector_store %arg5[%c0_40, %c1_41, %c0_42], %94 {strides = array<i32>} : memref<1x2x128xf32, #tpu.memory_space<vmem>>, vector<1x1x128xf32>,
    return
  }
  func.func @transform_0(%arg0: i32) -> (i32, i32, i32, i32) {
    %c0_i32 = arith.constant 0 : i32
    %c0_i32_0 = arith.constant 0 : i32
    %c0_i32_1 = arith.constant 0 : i32
    %c0_i32_2 = arith.constant 0 : i32
    return %arg0, %c0_i32, %c0_i32_0, %c0_i32_1 : i32, i32, i32, i32
  }
  func.func @transform_1(%arg0: i32) -> (i32, i32) {
    %c0_i32 = arith.constant 0 : i32
    %c0_i32_0 = arith.constant 0 : i32
    %c0_i32_1 = arith.constant 0 : i32
    return %c0_i32, %c0_i32_0 : i32, i32
  }
  func.func @transform_2(%arg0: i32) -> (i32, i32) {
    %c0_i32 = arith.constant 0 : i32
    %c0_i32_0 = arith.constant 0 : i32
    %c0_i32_1 = arith.constant 0 : i32
    return %c0_i32, %c0_i32_0 : i32, i32
  }
  func.func @transform_3(%arg0: i32) -> (i32, i32, i32, i32) {
    %c0_i32 = arith.constant 0 : i32
    %c0_i32_0 = arith.constant 0 : i32
    %c0_i32_1 = arith.constant 0 : i32
    %c0_i32_2 = arith.constant 0 : i32
    return %arg0, %c0_i32, %c0_i32_0, %c0_i32_1 : i32, i32, i32, i32
  }
  func.func @transform_4(%arg0: i32) -> (i32, i32, i32) {
    %c0_i32 = arith.constant 0 : i32
    %c0_i32_0 = arith.constant 0 : i32
    %c0_i32_1 = arith.constant 0 : i32
    return %arg0, %c0_i32, %c0_i32_0 : i32, i32, i32
  }
}

module attributes {stable_mosaic.version = 11 : i64} {
  func.func @_pointwise_stats_kernel(%arg0: i32, %arg1: memref<512x128xbf16, #tpu.memory_space<vmem>>, %arg2: memref<3x128xf32, #tpu.memory_space<vmem>>, %arg3: memref<128x128xbf16, #tpu.memory_space<vmem>>, %arg4: memref<512x128xbf16, #tpu.memory_space<vmem>>, %arg5: memref<1x2x128xf32, #tpu.memory_space<vmem>>) attributes {dimension_semantics = [#tpu.dimension_semantics<parallel>], iteration_bounds = array<i64: 1>, scalar_prefetch = 0 : i64, scratch_operands = 0 : i64, tpu.core_type = #tpu.core_type<tc>, window_params = [{transform_indices = @transform_0, window_bounds = array<i64: 512, 128>}, {pipeline_mode = #tpu.pipeline_mode<synchronous>, transform_indices = @transform_1, window_bounds = array<i64: 3, 128>}, {pipeline_mode = #tpu.pipeline_mode<synchronous>, transform_indices = @transform_2, window_bounds = array<i64: 128, 128>}, {transform_indices = @transform_3, window_bounds = array<i64: 512, 128>}, {transform_indices = @transform_4, window_bounds = array<i64: 1, 2, 128>}]} {
    %c0 = arith.constant 0 : index
    %c0_0 = arith.constant 0 : index
    %0 = vector.load %arg2[%c0, %c0_0] : memref<3x128xf32, #tpu.memory_space<vmem>>, vector<3x128xf32>
    %c0_1 = arith.constant 0 : index
    %c0_2 = arith.constant 0 : index
    %1 = vector.load %arg1[%c0_1, %c0_2] : memref<512x128xbf16, #tpu.memory_space<vmem>>, vector<512x128xbf16>
    %2 = arith.extf %1 : vector<512x128xbf16> to vector<512x128xf32>
    %3 = vector.extract_strided_slice %0 {offsets = [0, 0], sizes = [1, 128], strides = [1, 1]} : vector<3x128xf32> to vector<1x128xf32>
    %4 = vector.broadcast %3 : vector<1x128xf32> to vector<512x128xf32>
    %5 = arith.mulf %2, %4 : vector<512x128xf32>
    %6 = vector.extract_strided_slice %0 {offsets = [1, 0], sizes = [1, 128], strides = [1, 1]} : vector<3x128xf32> to vector<1x128xf32>
    %7 = vector.broadcast %6 : vector<1x128xf32> to vector<512x128xf32>
    %8 = arith.addf %5, %7 : vector<512x128xf32>
    %cst = arith.constant 0.000000e+00 : f32
    %9 = vector.broadcast %cst : f32 to vector<512x128xf32>
    %10 = arith.cmpf oge, %8, %9 : vector<512x128xf32>
    %11 = vector.extract_strided_slice %0 {offsets = [2, 0], sizes = [1, 128], strides = [1, 1]} : vector<3x128xf32> to vector<1x128xf32>
    %12 = vector.broadcast %11 : vector<1x128xf32> to vector<512x128xf32>
    %13 = arith.mulf %12, %8 : vector<512x128xf32>
    %14 = arith.select %10, %8, %13 : vector<512x128xi1>, vector<512x128xf32>
    %15 = arith.truncf %14 : vector<512x128xf32> to vector<512x128xbf16>
    %c0_3 = arith.constant 0 : index
    %c0_4 = arith.constant 0 : index
    %16 = vector.load %arg3[%c0_3, %c0_4] : memref<128x128xbf16, #tpu.memory_space<vmem>>, vector<128x128xbf16>
    %cst_5 = arith.constant dense<0.000000e+00> : vector<512x128xf32>
    %17 = tpu.matmul %15, %16, %cst_5 {dimension_numbers = #tpu.dot_dimension_numbers<[1], [0], [0], [1], [0, 0, 1, 1], [], []>} : vector<512x128xbf16>, vector<128x128xbf16>, vector<512x128xf32> -> vector<512x128xf32>
    %18 = arith.truncf %17 : vector<512x128xf32> to vector<512x128xbf16>
    %c0_6 = arith.constant 0 : index
    %c0_7 = arith.constant 0 : index
    %19 = vector.load %arg4[%c0_6, %c0_7] : memref<512x128xbf16, #tpu.memory_space<vmem>>, vector<512x128xbf16>
    tpu.vector_store %arg4[%c0_6, %c0_7], %18 {strides = array<i32>} : memref<512x128xbf16, #tpu.memory_space<vmem>>, vector<512x128xbf16>,
    %20 = tpu.iota {dimensions = array<i32: 0>} : vector<512x1xi32>
    %c512_i32 = arith.constant 512 : i32
    %21 = arith.muli %arg0, %c512_i32 : i32
    %22 = vector.broadcast %21 : i32 to vector<512x1xi32>
    %23 = arith.addi %20, %22 : vector<512x1xi32>
    %c512_i32_8 = arith.constant 512 : i32
    %24 = vector.broadcast %c512_i32_8 : i32 to vector<512x1xi32>
    %25 = arith.cmpi slt, %23, %24 : vector<512x1xi32>
    %26 = arith.extui %25 : vector<512x1xi1> to vector<512x1xi32>
    %27 = arith.sitofp %26 : vector<512x1xi32> to vector<512x1xf32>
    %28 = vector.broadcast %27 : vector<512x1xf32> to vector<512x128xf32>
    %29 = arith.mulf %17, %28 : vector<512x128xf32>
    %cst_9 = arith.constant dense<0.000000e+00> : vector<128xf32>
    %30 = vector.multi_reduction <add>, %29, %cst_9 [0] : vector<512x128xf32> to vector<128xf32>
    %31 = vector.shape_cast %30 : vector<128xf32> to vector<1x128xf32>
    %c0_10 = arith.constant 0 : index
    %c0_11 = arith.constant 0 : index
    %c0_12 = arith.constant 0 : index
    %32 = vector.load %arg5[%c0_10, %c0_11, %c0_12] : memref<1x2x128xf32, #tpu.memory_space<vmem>>, vector<1x1x128xf32>
    %33 = vector.shape_cast %32 : vector<1x1x128xf32> to vector<1x128xf32>
    %34 = vector.shape_cast %31 : vector<1x128xf32> to vector<1x1x128xf32>
    tpu.vector_store %arg5[%c0_10, %c0_11, %c0_12], %34 {strides = array<i32>} : memref<1x2x128xf32, #tpu.memory_space<vmem>>, vector<1x1x128xf32>,
    %35 = arith.mulf %17, %29 : vector<512x128xf32>
    %cst_13 = arith.constant dense<0.000000e+00> : vector<128xf32>
    %36 = vector.multi_reduction <add>, %35, %cst_13 [0] : vector<512x128xf32> to vector<128xf32>
    %37 = vector.shape_cast %36 : vector<128xf32> to vector<1x128xf32>
    %c0_14 = arith.constant 0 : index
    %c1 = arith.constant 1 : index
    %c0_15 = arith.constant 0 : index
    %38 = vector.load %arg5[%c0_14, %c1, %c0_15] : memref<1x2x128xf32, #tpu.memory_space<vmem>>, vector<1x1x128xf32>
    %39 = vector.shape_cast %38 : vector<1x1x128xf32> to vector<1x128xf32>
    %40 = vector.shape_cast %37 : vector<1x128xf32> to vector<1x1x128xf32>
    tpu.vector_store %arg5[%c0_14, %c1, %c0_15], %40 {strides = array<i32>} : memref<1x2x128xf32, #tpu.memory_space<vmem>>, vector<1x1x128xf32>,
    return
  }
  func.func @transform_0(%arg0: i32) -> (i32, i32) {
    %c0_i32 = arith.constant 0 : i32
    %c0_i32_0 = arith.constant 0 : i32
    return %arg0, %c0_i32 : i32, i32
  }
  func.func @transform_1(%arg0: i32) -> (i32, i32) {
    %c0_i32 = arith.constant 0 : i32
    %c0_i32_0 = arith.constant 0 : i32
    %c0_i32_1 = arith.constant 0 : i32
    return %c0_i32, %c0_i32_0 : i32, i32
  }
  func.func @transform_2(%arg0: i32) -> (i32, i32) {
    %c0_i32 = arith.constant 0 : i32
    %c0_i32_0 = arith.constant 0 : i32
    %c0_i32_1 = arith.constant 0 : i32
    return %c0_i32, %c0_i32_0 : i32, i32
  }
  func.func @transform_3(%arg0: i32) -> (i32, i32) {
    %c0_i32 = arith.constant 0 : i32
    %c0_i32_0 = arith.constant 0 : i32
    return %arg0, %c0_i32 : i32, i32
  }
  func.func @transform_4(%arg0: i32) -> (i32, i32, i32) {
    %c0_i32 = arith.constant 0 : i32
    %c0_i32_0 = arith.constant 0 : i32
    %c0_i32_1 = arith.constant 0 : i32
    return %arg0, %c0_i32, %c0_i32_0 : i32, i32, i32
  }
}

</mosaic_0001>

<bundles_post_ra>
// kernel: bottleneck_forward.5
= control target key start
LH: loop header
LB: loop body
LE: loop exit
PB: predicated region body
PF: predicated region fallthrough
CT: control target
= control target key end

     0   :  { %v146_v0 = vlaneseq  ;;  %s3102_s2 = inlined_call_operand.vmem [shape: bf16[128,128], index: 2, kind: input, shape index: {}]   ;;  %s3103_s0 = inlined_call_operand.vmem [shape: bf16[512,128], index: 0, kind: input, shape index: {}]   ;;  %s3104_s1 = inlined_call_operand.vmem [shape: f32[3,128], index: 1, kind: input, shape index: {}]   ;;  %s3105_s3 = inlined_call_operand.vmem [shape: bf16[512,128], index: 3, kind: output, shape index: {0}]   ;;  %s3106_s4 = inlined_call_operand.vmem [shape: f32[1,2,128], index: 4, kind: output, shape index: {1}]  }
   0x1   :  { %v2404_v1 = vld [vmem:[%s3102_s2] sm:$0xff]   ;;  %v2405_v2 = vld [vmem:[%s3102_s2 + $0x8] sm:$0xff]   ;;  %v2406_v4 = vld [vmem:[%s3102_s2 + $0x10] sm:$0xff]  }
   0x2   :  { %v147_v3 = vshrl.u32 %v146_v0, 7  ;;  %2308 = vmatprep.subr.bf16.mxu0 %v2404_v1  ;;  %2388 = vmatprep.subr.bf16.mxu1 %v2404_v1  ;;  %v2407_v8 = vld [vmem:[%s3102_s2 + $0x18] sm:$0xff]   ;;  %v17_v9 = vld [vmem:[%s3104_s1] sm:$0x7]  ;;  %v2206_v11 = vld [vmem:[%s3103_s0 + $0x8] sm:$0xff]  }
   0x3   :  { %2309 = vmatpush3.bf16.msra.mxu0 %v2404_v1  ;;  %2396 = vmatpush3.bf16.msra.mxu1 %v2404_v1  ;;  %v1919_v10 = vld [vmem:[%s3103_s0] sm:$0xff]   ;;  %v2207_v16 = vld [vmem:[%s3103_s0 + $0x10] sm:$0xff]   ;;  %v2208_v17 = vld [vmem:[%s3103_s0 + $0x18] sm:$0xff]   ;;  %v1924_v19 = vunpack.c.l.bf16 %v2206_v11  ;;  %v1925_v20 = vunpack.c.h.bf16 %v2206_v11 }
   0x4   :  { %2310 = vmatprep.subr.bf16.mxu0 %v2405_v2  ;;  %2389 = vmatprep.subr.bf16.mxu1 %v2405_v2  ;;  %v148_v5 = vsub.s32 0, %v147_v3  ;;  %v216_v6 = vsub.s32 1, %v147_v3  ;;  %v348_v7 = vsub.s32 2, %v147_v3  ;;  %v1920_v12 = vunpack.c.l.bf16 %v1919_v10  ;;  %v2408_v26 = vld [vmem:[%s3102_s2 + $0x20] sm:$0xff]   ;;  %v2409_v41 = vld [vmem:[%s3102_s2 + $0x28] sm:$0xff]   ;;  %v2410_v56 = vld [vmem:[%s3102_s2 + $0x30] sm:$0xff]  }
   0x5   :  { %v1921_v13 = vunpack.c.h.bf16 %v1919_v10  ;;  %v1928_v21 = vunpack.c.l.bf16 %v2207_v16  ;;  %v1929_v24 = vunpack.c.h.bf16 %v2207_v16  ;;  %v1932_v25 = vunpack.c.l.bf16 %v2208_v17  ;;  %v2209_v47 = vld [vmem:[%s3103_s0 + $0x20] sm:$0xff]   ;;  %v2210_v52 = vld [vmem:[%s3103_s0 + $0x28] sm:$0xff]   ;;  %v2211_v0 = vld [vmem:[%s3103_s0 + $0x30] sm:$0xff]  }
   0x6   :  { %v2458_v14 = vrot.slane %v17_v9, %v148_v5  ;;  %v2460_v15 = vrot.slane %v17_v9, %v216_v6  ;;  %v2468_v18 = vrot.slane %v17_v9, %v348_v7  ;;  %v1933_v30 = vunpack.c.h.bf16 %v2208_v17 }
   0x7   :  { %2311 = vmatpush3.bf16.msra.mxu0 %v2405_v2  ;;  %2397 = vmatpush3.bf16.msra.mxu1 %v2405_v2  ;;  %v1936_v59 = vunpack.c.l.bf16 %v2209_v47  ;;  %v1937_v60 = vunpack.c.h.bf16 %v2209_v47  ;;  %v1940_v63 = vunpack.c.l.bf16 %v2210_v52  ;;  %v1941_v6 = vunpack.c.h.bf16 %v2210_v52 }
   0x8   :  { %2312 = vmatprep.subr.bf16.mxu0 %v2406_v4  ;;  %2390 = vmatprep.subr.bf16.mxu1 %v2406_v4  ;;  %v150_v22 = vmul.f32 %v1920_v12, %v2458_v14  ;;  %v151_v23 = vmul.f32 %v1921_v13, %v2458_v14  ;;  %v152_v27 = vmul.f32 %v1924_v19, %v2458_v14  ;;  %v1944_v11 = vunpack.c.l.bf16 %v2211_v0 }
   0x9   :  { %v153_v28 = vmul.f32 %v1925_v20, %v2458_v14  ;;  %v154_v29 = vmul.f32 %v1928_v21, %v2458_v14  ;;  %v155_v33 = vmul.f32 %v1929_v24, %v2458_v14  ;;  %v156_v34 = vmul.f32 %v1932_v25, %v2458_v14 }
   0xa   :  { %v218_v31 = vadd.f32 %v2460_v15, %v150_v22  ;;  %v219_v32 = vadd.f32 %v2460_v15, %v151_v23  ;;  %v220_v35 = vadd.f32 %v2460_v15, %v152_v27  ;;  %v157_v38 = vmul.f32 %v1933_v30, %v2458_v14  ;;  %v2212_v23 = vld [vmem:[%s3103_s0 + $0x38] sm:$0xff]  }
   0xb   :  { %2313 = vmatpush3.bf16.msra.mxu0 %v2406_v4  ;;  %2398 = vmatpush3.bf16.msra.mxu1 %v2406_v4  ;;  %v221_v36 = vadd.f32 %v2460_v15, %v153_v28  ;;  %v222_v37 = vadd.f32 %v2460_v15, %v154_v29  ;;  %v223_v46 = vadd.f32 %v2460_v15, %v155_v33  ;;  %v1945_v12 = vunpack.c.h.bf16 %v2211_v0  ;;  %v2213_v33 = vld [vmem:[%s3103_s0 + $0x40] sm:$0xff]  }
   0xc   :  { %2314 = vmatprep.subr.bf16.mxu0 %v2407_v8  ;;  %2391 = vmatprep.subr.bf16.mxu1 %v2407_v8  ;;  %vm282_vm0 = vcmp.ge.f32.partialorder %v218_v31, 0.0  ;;  %vm283_vm1 = vcmp.ge.f32.partialorder %v219_v32, 0.0  ;;  %v350_v39 = vmul.f32 %v2468_v18, %v218_v31  ;;  %v351_v40 = vmul.f32 %v2468_v18, %v219_v32 }
   0xd   :  { %vm284_vm2 = vcmp.ge.f32.partialorder %v220_v35, 0.0  ;;  %vm285_vm3 = vcmp.ge.f32.partialorder %v221_v36, 0.0  ;;  %v352_v42 = vmul.f32 %v2468_v18, %v220_v35  ;;  %v353_v43 = vmul.f32 %v2468_v18, %v221_v36 }
   0xe   :  { %v414_v44 = vsel %vm282_vm0, %v218_v31, %v350_v39  ;;  %v415_v45 = vsel %vm283_vm1, %v219_v32, %v351_v40  ;;  %vm286_vm4 = vcmp.ge.f32.partialorder %v222_v37, 0.0  ;;  %v354_v51 = vmul.f32 %v2468_v18, %v222_v37 }
   0xf   :  { %2315 = vmatpush3.bf16.msra.mxu0 %v2407_v8  ;;  %2399 = vmatpush3.bf16.msra.mxu1 %v2407_v8  ;;  %v478_v48 = vpack.c.bf16 %v415_v45, %v414_v44  ;;  %v2497_v49 = vsel %vm284_vm2, %v220_v35, %v352_v42  ;;  %v2499_v50 = vsel %vm285_vm3, %v221_v36, %v353_v43  ;;  %vm287_vm5 = vcmp.ge.f32.partialorder %v223_v46, 0.0  ;;  %v2411_v8 = vld [vmem:[%s3102_s2 + $0x38] sm:$0xff]   ;;  %v2214_v36 = vld [vmem:[%s3103_s0 + $0x48] sm:$0xff]   ;;  %v2215_v45 = vld [vmem:[%s3103_s0 + $0x50] sm:$0xff]  }
  0x10   :  { %2316 = vmatprep.subr.bf16.mxu0 %v2408_v26  ;;  %2392 = vmatprep.subr.bf16.mxu1 %v2408_v26  ;;  %v479_v53 = vpack.c.bf16 %v2499_v50, %v2497_v49  ;;  %v355_v54 = vmul.f32 %v2468_v18, %v223_v46  ;;  %v224_v55 = vadd.f32 %v2460_v15, %v156_v34  ;;  %v1948_v32 = vunpack.c.l.bf16 %v2212_v23 }
  0x11   :  { %2324 = vmatprep.mubr.bf16.mxu0 %v478_v48  ;;  %v2513_v57 = vsel %vm286_vm4, %v222_v37, %v354_v51  ;;  %v225_v58 = vadd.f32 %v2460_v15, %v157_v38  ;;  %v158_v3 = vmul.f32 %v1936_v59, %v2458_v14  ;;  %v159_v5 = vmul.f32 %v1937_v60, %v2458_v14 }
  0x12   :  { %v2516_v61 = vsel %vm287_vm5, %v223_v46, %v355_v54  ;;  %vm288_vm6 = vcmp.ge.f32.partialorder %v224_v55, 0.0  ;;  %v356_v62 = vmul.f32 %v2468_v18, %v224_v55  ;;  %v160_v7 = vmul.f32 %v1940_v63, %v2458_v14 }
  0x13   :  { %2317 = vmatpush3.bf16.msra.mxu0 %v2408_v26  ;;  %2400 = vmatpush3.bf16.msra.mxu1 %v2408_v26  ;;  %v480_v1 = vpack.c.bf16 %v2516_v61, %v2513_v57  ;;  %vm289_vm7 = vcmp.ge.f32.partialorder %v225_v58, 0.0  ;;  %v357_v2 = vmul.f32 %v2468_v18, %v225_v58  ;;  %v226_v10 = vadd.f32 %v2460_v15, %v158_v3 }
  0x14   :  { %2318 = vmatprep.subr.bf16.mxu0 %v2409_v41  ;;  %2393 = vmatprep.subr.bf16.mxu1 %v2409_v41  ;;  %v2526_v4 = vsel %vm288_vm6, %v224_v55, %v356_v62  ;;  %v227_v16 = vadd.f32 %v2460_v15, %v159_v5  ;;  %v161_v17 = vmul.f32 %v1941_v6, %v2458_v14  ;;  %v1949_v40 = vunpack.c.h.bf16 %v2212_v23  ;;  %v2216_v6 = vld [vmem:[%s3103_s0 + $0x58] sm:$0xff]  }
  0x15   :  { %v2533_v9 = vsel %vm289_vm7, %v225_v58, %v357_v2  ;;  %v228_v19 = vadd.f32 %v2460_v15, %v160_v7  ;;  %vm290_vm8 = vcmp.ge.f32.partialorder %v226_v10, 0.0  ;;  %v358_v20 = vmul.f32 %v2468_v18, %v226_v10 }
  0x16   :  { %v481_v13 = vpack.c.bf16 %v2533_v9, %v2526_v4  ;;  %v162_v21 = vmul.f32 %v1944_v11, %v2458_v14  ;;  %v163_v22 = vmul.f32 %v1945_v12, %v2458_v14  ;;  %vm291_vm9 = vcmp.ge.f32.partialorder %v227_v16, 0.0  ;;  %v2217_v12 = vld [vmem:[%s3103_s0 + $0x60] sm:$0xff]  }
  0x17   :  { %2319 = vmatpush3.bf16.msra.mxu0 %v2409_v41  ;;  %2401 = vmatpush3.bf16.msra.mxu1 %v2409_v41  ;;  %v359_v24 = vmul.f32 %v2468_v18, %v227_v16  ;;  %v229_v25 = vadd.f32 %v2460_v15, %v161_v17  ;;  %vm292_vm10 = vcmp.ge.f32.partialorder %v228_v19, 0.0  ;;  %v2549_v26 = vsel %vm290_vm8, %v226_v10, %v358_v20 }
  0x18   :  { %2320 = vmatprep.subr.bf16.mxu0 %v2410_v56  ;;  %2394 = vmatprep.subr.bf16.mxu1 %v2410_v56  ;;  %v360_v27 = vmul.f32 %v2468_v18, %v228_v19  ;;  %v230_v28 = vadd.f32 %v2460_v15, %v162_v21  ;;  %v231_v29 = vadd.f32 %v2460_v15, %v163_v22  ;;  %v1952_v43 = vunpack.c.l.bf16 %v2213_v33 }
  0x19   :  { %v2554_v30 = vsel %vm291_vm9, %v227_v16, %v359_v24  ;;  %vm293_vm11 = vcmp.ge.f32.partialorder %v229_v25, 0.0  ;;  %v361_v31 = vmul.f32 %v2468_v18, %v229_v25  ;;  %v164_v42 = vmul.f32 %v1948_v32, %v2458_v14 }
  0x1a   :  { %v482_v34 = vpack.c.bf16 %v2554_v30, %v2549_v26  ;;  %v2562_v35 = vsel %vm292_vm10, %v228_v19, %v360_v27  ;;  %vm294_vm12 = vcmp.ge.f32.partialorder %v230_v28, 0.0  ;;  %vm295_vm13 = vcmp.ge.f32.partialorder %v231_v29, 0.0 }
  0x1b   :  { %2321 = vmatpush3.bf16.msra.mxu0 %v2410_v56  ;;  %2402 = vmatpush3.bf16.msra.mxu1 %v2410_v56  ;;  %v2567_v37 = vsel %vm293_vm11, %v229_v25, %v361_v31  ;;  %v362_v38 = vmul.f32 %v2468_v18, %v230_v28  ;;  %v363_v39 = vmul.f32 %v2468_v18, %v231_v29  ;;  %v1953_v44 = vunpack.c.h.bf16 %v2213_v33 }
  0x1c   :  { %2322 = vmatprep.subr.bf16.mxu0 %v2411_v8  ;;  %2395 = vmatprep.subr.bf16.mxu1 %v2411_v8  ;;  %v483_v41 = vpack.c.bf16 %v2567_v37, %v2562_v35  ;;  %v165_v48 = vmul.f32 %v1949_v40, %v2458_v14  ;;  %v1956_v51 = vunpack.c.l.bf16 %v2214_v36  ;;  %v232_v54 = vadd.f32 %v2460_v15, %v164_v42  ;;  %v2220_v35 = vld [vmem:[%s3103_s0 + $0x78] sm:$0xff]   ;;  %v2221_v37 = vld [vmem:[%s3103_s0 + $0x80] sm:$0xff]  }
  0x1d   :  { %v2577_v46 = vsel %vm294_vm12, %v230_v28, %v362_v38  ;;  %v2579_v47 = vsel %vm295_vm13, %v231_v29, %v363_v39  ;;  %v166_v55 = vmul.f32 %v1952_v43, %v2458_v14  ;;  %v167_v56 = vmul.f32 %v1953_v44, %v2458_v14  ;;  %v2218_v29 = vld [vmem:[%s3103_s0 + $0x68] sm:$0xff]  }
  0x1e   :  { %v484_v52 = vpack.c.bf16 %v2579_v47, %v2577_v46  ;;  %v233_v58 = vadd.f32 %v2460_v15, %v165_v48  ;;  %v1957_v59 = vunpack.c.h.bf16 %v2214_v36  ;;  %v168_v60 = vmul.f32 %v1956_v51, %v2458_v14  ;;  %v2219_v48 = vld [vmem:[%s3103_s0 + $0x70] sm:$0xff]  }
  0x1f   :  { %2323 = vmatpush3.bf16.msra.mxu0 %v2411_v8  ;;  %2403 = vmatpush3.bf16.msra.mxu1 %v2411_v8  ;;  %v1960_v49 = vunpack.c.l.bf16 %v2215_v45  ;;  %vm296_vm14 = vcmp.ge.f32.partialorder %v232_v54, 0.0  ;;  %v364_v50 = vmul.f32 %v2468_v18, %v232_v54  ;;  %v235_v62 = vadd.f32 %v2460_v15, %v167_v56 }
  0x20   :  { %vm297_vm15 = vcmp.ge.f32.partialorder %v233_v58, 0.0  ;;  %v365_v63 = vmul.f32 %v2468_v18, %v233_v58  ;;  %v169_v0 = vmul.f32 %v1957_v59, %v2458_v14  ;;  %v236_v57 = vadd.f32 %v2460_v15, %v168_v60 }
  0x21   :  { %v2601_v61 = vsel %vm296_vm14, %v232_v54, %v364_v50  ;;  %vm299_vm1 = vcmp.ge.f32.partialorder %v235_v62, 0.0  ;;  %v367_v3 = vmul.f32 %v2468_v18, %v235_v62  ;;  %v1961_v11 = vunpack.c.h.bf16 %v2215_v45 }
  0x22   :  { %2325 = vmatmul.mubr.bf16.vlgmr.msra.gmra.mrb[0].mxu0 %v479_v53  ;;  %v234_v53 = vadd.f32 %v2460_v15, %v166_v55  ;;  %v2604_v2 = vsel %vm297_vm15, %v233_v58, %v365_v63  ;;  %v237_v5 = vadd.f32 %v2460_v15, %v169_v0  ;;  %vm300_vm2 = vcmp.ge.f32.partialorder %v236_v57, 0.0 }
  0x23   :  { %2328 = vmatprep.mubr.bf16.mxu0 %v480_v1  ;;  %v485_v7 = vpack.c.bf16 %v2604_v2, %v2601_v61  ;;  %v368_v10 = vmul.f32 %v2468_v18, %v236_v57  ;;  %v2619_v16 = vsel %vm299_vm1, %v235_v62, %v367_v3  ;;  %v170_v19 = vmul.f32 %v1960_v49, %v2458_v14  ;;  %v2222_v2 = vld [vmem:[%s3103_s0 + $0x88] sm:$0xff]  }
  0x24   :  { %vm298_vm0 = vcmp.ge.f32.partialorder %v234_v53, 0.0  ;;  %v366_v1 = vmul.f32 %v2468_v18, %v234_v53  ;;  %vm301_vm3 = vcmp.ge.f32.partialorder %v237_v5, 0.0  ;;  %v369_v17 = vmul.f32 %v2468_v18, %v237_v5 }
  0x25   :  { %v2628_v21 = vsel %vm300_vm2, %v236_v57, %v368_v10  ;;  %v171_v22 = vmul.f32 %v1961_v11, %v2458_v14  ;;  %v1964_v23 = vunpack.c.l.bf16 %v2216_v6  ;;  %v238_v25 = vadd.f32 %v2460_v15, %v170_v19 }
  0x26   :  { %v2613_v8 = vsel %vm298_vm0, %v234_v53, %v366_v1  ;;  %v2631_v24 = vsel %vm301_vm3, %v237_v5, %v369_v17  ;;  %v1965_v26 = vunpack.c.h.bf16 %v2216_v6  ;;  %v1968_v27 = vunpack.c.l.bf16 %v2217_v12 }
  0x27   :  { %v486_v20 = vpack.c.bf16 %v2619_v16, %v2613_v8  ;;  %v487_v28 = vpack.c.bf16 %v2631_v24, %v2628_v21  ;;  %v239_v4 = vadd.f32 %v2460_v15, %v171_v22  ;;  %v172_v9 = vmul.f32 %v1964_v23, %v2458_v14  ;;  %v2223_v8 = vld [vmem:[%s3103_s0 + $0x90] sm:$0xff]  }
  0x28   :  { %vm302_vm4 = vcmp.ge.f32.partialorder %v238_v25, 0.0  ;;  %v370_v30 = vmul.f32 %v2468_v18, %v238_v25  ;;  %v173_v31 = vmul.f32 %v1965_v26, %v2458_v14  ;;  %v174_v32 = vmul.f32 %v1968_v27, %v2458_v14 }
  0x29   :  { %vm303_vm5 = vcmp.ge.f32.partialorder %v239_v4, 0.0  ;;  %v371_v33 = vmul.f32 %v2468_v18, %v239_v4  ;;  %v1972_v42 = vunpack.c.l.bf16 %v2218_v29  ;;  %v1973_v60 = vunpack.c.h.bf16 %v2218_v29 }
  0x2a   :  { %2329 = vmatmul.mubr.bf16.gmra.mrb[4].mxu0 %v481_v13  ;;  %v1969_v13 = vunpack.c.h.bf16 %v2217_v12  ;;  %v2647_v38 = vsel %vm302_vm4, %v238_v25, %v370_v30  ;;  %v241_v39 = vadd.f32 %v2460_v15, %v173_v31  ;;  %v242_v40 = vadd.f32 %v2460_v15, %v174_v32 }
  0x2b   :  { %2332 = vmatprep.mubr.bf16.mxu0 %v482_v34  ;;  %v240_v34 = vadd.f32 %v2460_v15, %v172_v9  ;;  %v2651_v43 = vsel %vm303_vm5, %v239_v4, %v371_v33  ;;  %v176_v49 = vmul.f32 %v1972_v42, %v2458_v14  ;;  %v1976_v50 = vunpack.c.l.bf16 %v2219_v48 }
  0x2c   :  { %v175_v36 = vmul.f32 %v1969_v13, %v2458_v14  ;;  %v488_v51 = vpack.c.bf16 %v2651_v43, %v2647_v38  ;;  %vm305_vm7 = vcmp.ge.f32.partialorder %v241_v39, 0.0  ;;  %v373_v54 = vmul.f32 %v2468_v18, %v241_v39  ;;  %v2225_v43 = vld [vmem:[%s3103_s0 + $0xa0] sm:$0xff]  }
  0x2d   :  { %vm304_vm6 = vcmp.ge.f32.partialorder %v240_v34, 0.0  ;;  %v372_v44 = vmul.f32 %v2468_v18, %v240_v34  ;;  %vm306_vm8 = vcmp.ge.f32.partialorder %v242_v40, 0.0  ;;  %v374_v56 = vmul.f32 %v2468_v18, %v242_v40 }
  0x2e   :  { %v243_v45 = vadd.f32 %v2460_v15, %v175_v36  ;;  %v2671_v59 = vsel %vm305_vm7, %v241_v39, %v373_v54  ;;  %v1977_v47 = vunpack.c.h.bf16 %v2219_v48  ;;  %v177_v62 = vmul.f32 %v1973_v60, %v2458_v14  ;;  %v2224_v48 = vld [vmem:[%s3103_s0 + $0x98] sm:$0xff]  }
  0x2f   :  { %v2664_v55 = vsel %vm304_vm6, %v240_v34, %v372_v44  ;;  %v2682_v53 = vsel %vm306_vm8, %v242_v40, %v374_v56  ;;  %v244_v63 = vadd.f32 %v2460_v15, %v176_v49  ;;  %v178_v0 = vmul.f32 %v1976_v50, %v2458_v14 }
  0x30   :  { %vm307_vm9 = vcmp.ge.f32.partialorder %v243_v45, 0.0  ;;  %v375_v58 = vmul.f32 %v2468_v18, %v243_v45  ;;  %v179_v57 = vmul.f32 %v1977_v47, %v2458_v14  ;;  %v1980_v1 = vunpack.c.l.bf16 %v2220_v35 }
  0x31   :  { %v1981_v3 = vunpack.c.h.bf16 %v2220_v35  ;;  %v1984_v5 = vunpack.c.l.bf16 %v2221_v37  ;;  %v245_v6 = vadd.f32 %v2460_v15, %v177_v62  ;;  %vm308_vm10 = vcmp.ge.f32.partialorder %v244_v63, 0.0 }
  0x32   :  { %2333 = vmatmul.mubr.bf16.gmra.mrb[8].mxu0 %v483_v41  ;;  %v489_v41 = vpack.c.bf16 %v2671_v59, %v2664_v55  ;;  %v2684_v46 = vsel %vm307_vm9, %v243_v45, %v375_v58  ;;  %v376_v10 = vmul.f32 %v2468_v18, %v244_v63  ;;  %v246_v11 = vadd.f32 %v2460_v15, %v178_v0 }
  0x33   :  { %2336 = vmatprep.mubr.bf16.mxu0 %v484_v52  ;;  %v490_v52 = vpack.c.bf16 %v2684_v46, %v2682_v53  ;;  %v247_v12 = vadd.f32 %v2460_v15, %v179_v57  ;;  %v180_v17 = vmul.f32 %v1980_v1, %v2458_v14  ;;  %v181_v19 = vmul.f32 %v1981_v3, %v2458_v14 }
  0x34   :  { %v1985_v22 = vunpack.c.h.bf16 %v2221_v37  ;;  %vm309_vm11 = vcmp.ge.f32.partialorder %v245_v6, 0.0  ;;  %v377_v23 = vmul.f32 %v2468_v18, %v245_v6  ;;  %v2699_v25 = vsel %vm308_vm10, %v244_v63, %v376_v10 }
  0x35   :  { %vm310_vm12 = vcmp.ge.f32.partialorder %v246_v11, 0.0  ;;  %vm311_vm13 = vcmp.ge.f32.partialorder %v247_v12, 0.0  ;;  %v378_v26 = vmul.f32 %v2468_v18, %v246_v11  ;;  %v379_v27 = vmul.f32 %v2468_v18, %v247_v12 }
  0x36   :  { %v248_v4 = vadd.f32 %v2460_v15, %v180_v17  ;;  %v2710_v9 = vsel %vm309_vm11, %v245_v6, %v377_v23  ;;  %v249_v13 = vadd.f32 %v2460_v15, %v181_v19  ;;  %v182_v29 = vmul.f32 %v1984_v5, %v2458_v14  ;;  %v2226_v19 = vld [vmem:[%s3103_s0 + $0xa8] sm:$0xff]  }
  0x37   :  { %v183_v61 = vmul.f32 %v1985_v22, %v2458_v14  ;;  %v2720_v30 = vsel %vm310_vm12, %v246_v11, %v378_v26  ;;  %v2722_v31 = vsel %vm311_vm13, %v247_v12, %v379_v27  ;;  %v1988_v36 = vunpack.c.l.bf16 %v2222_v2 }
  0x38   :  { %vm312_vm14 = vcmp.ge.f32.partialorder %v248_v4, 0.0  ;;  %v492_v16 = vpack.c.bf16 %v2722_v31, %v2720_v30  ;;  %vm313_vm15 = vcmp.ge.f32.partialorder %v249_v13, 0.0  ;;  %v381_v32 = vmul.f32 %v2468_v18, %v249_v13 }
  0x39   :  { %v250_v33 = vadd.f32 %v2460_v15, %v182_v29  ;;  %v251_v34 = vadd.f32 %v2460_v15, %v183_v61  ;;  %v1989_v39 = vunpack.c.h.bf16 %v2222_v2  ;;  %v1992_v44 = vunpack.c.l.bf16 %v2223_v8 }
  0x3a   :  { %2337 = vmatmul.mubr.bf16.gmra.mrb[12].mxu0 %v485_v7  ;;  %v491_v7 = vpack.c.bf16 %v2710_v9, %v2699_v25  ;;  %v2735_v42 = vsel %vm313_vm15, %v249_v13, %v381_v32  ;;  %v1993_v45 = vunpack.c.h.bf16 %v2223_v8  ;;  %v184_v60 = vmul.f32 %v1988_v36, %v2458_v14  ;;  %v2230_v9 = vld [vmem:[%s3103_s0 + $0xc8] sm:$0xff]  }
  0x3b   :  { %2340 = vmatprep.mubr.bf16.mxu0 %v486_v20  ;;  %v380_v20 = vmul.f32 %v2468_v18, %v248_v4  ;;  %vm314_vm0 = vcmp.ge.f32.partialorder %v250_v33, 0.0  ;;  %vm315_vm1 = vcmp.ge.f32.partialorder %v251_v34, 0.0  ;;  %v382_v56 = vmul.f32 %v2468_v18, %v250_v33 }
  0x3c   :  { %v383_v58 = vmul.f32 %v2468_v18, %v251_v34  ;;  %v185_v49 = vmul.f32 %v1989_v39, %v2458_v14  ;;  %v186_v50 = vmul.f32 %v1992_v44, %v2458_v14  ;;  %v187_v37 = vmul.f32 %v1993_v45, %v2458_v14  ;;  %v2228_v44 = vld [vmem:[%s3103_s0 + $0xb8] sm:$0xff]  }
  0x3d   :  { %v2733_v40 = vsel %vm312_vm14, %v248_v4, %v380_v20  ;;  %v446_v35 = vsel %vm314_vm0, %v250_v33, %v382_v56  ;;  %v1996_v47 = vunpack.c.l.bf16 %v2224_v48  ;;  %v1997_v62 = vunpack.c.h.bf16 %v2224_v48  ;;  %v2227_v4 = vld [vmem:[%s3103_s0 + $0xb0] sm:$0xff]  }
  0x3e   :  { %v493_v54 = vpack.c.bf16 %v2735_v42, %v2733_v40  ;;  %v447_v63 = vsel %vm315_vm1, %v251_v34, %v383_v58  ;;  %v252_v0 = vadd.f32 %v2460_v15, %v184_v60  ;;  %v253_v57 = vadd.f32 %v2460_v15, %v185_v49 }
  0x3f   :  { %v254_v1 = vadd.f32 %v2460_v15, %v186_v50  ;;  %v494_v3 = vpack.c.bf16 %v447_v63, %v446_v35  ;;  %v255_v21 = vadd.f32 %v2460_v15, %v187_v37  ;;  %v188_v24 = vmul.f32 %v1996_v47, %v2458_v14 }
  0x40   :  { %vm316_vm2 = vcmp.ge.f32.partialorder %v252_v0, 0.0  ;;  %vm317_vm3 = vcmp.ge.f32.partialorder %v253_v57, 0.0  ;;  %v384_v5 = vmul.f32 %v2468_v18, %v252_v0  ;;  %v385_v38 = vmul.f32 %v2468_v18, %v253_v57 }
  0x41   :  { %2356 = vmatprep.mubr.bf16.mxu1 %v494_v3  ;;  %vm318_vm4 = vcmp.ge.f32.partialorder %v254_v1, 0.0  ;;  %vm319_vm5 = vcmp.ge.f32.partialorder %v255_v21, 0.0  ;;  %v387_v6 = vmul.f32 %v2468_v18, %v255_v21  ;;  %v256_v12 = vadd.f32 %v2460_v15, %v188_v24  ;;  %v2229_v3 = vld [vmem:[%s3103_s0 + $0xc0] sm:$0xff]  }
  0x42   :  { %2341 = vmatmul.mubr.bf16.gmra.mrb[16].mxu0 %v487_v28  ;;  %v189_v28 = vmul.f32 %v1997_v62, %v2458_v14  ;;  %v448_v10 = vsel %vm316_vm2, %v252_v0, %v384_v5  ;;  %v449_v11 = vsel %vm317_vm3, %v253_v57, %v385_v38  ;;  %v2000_v27 = vunpack.c.l.bf16 %v2225_v43 }
  0x43   :  { %2344 = vmatprep.mubr.bf16.mxu0 %v488_v51  ;;  %v386_v51 = vmul.f32 %v2468_v18, %v254_v1  ;;  %v495_v22 = vpack.c.bf16 %v449_v11, %v448_v10  ;;  %v451_v26 = vsel %vm319_vm5, %v255_v21, %v387_v6  ;;  %vm320_vm6 = vcmp.ge.f32.partialorder %v256_v12, 0.0 }
  0x44   :  { %v257_v17 = vadd.f32 %v2460_v15, %v189_v28  ;;  %v388_v29 = vmul.f32 %v2468_v18, %v256_v12  ;;  %v2001_v2 = vunpack.c.h.bf16 %v2225_v43  ;;  %v190_v8 = vmul.f32 %v2000_v27, %v2458_v14  ;;  %v2232_v27 = vld [vmem:[%s3103_s0 + $0xd8] sm:$0xff]  }
  0x45   :  { %v450_v23 = vsel %vm318_vm4, %v254_v1, %v386_v51  ;;  %2357 = vmatmul.mubr.bf16.vlgmr.msra.gmra.mrb[0].mxu1 %v495_v22  ;;  %v2004_v20 = vunpack.c.l.bf16 %v2226_v19  ;;  %v2005_v33 = vunpack.c.h.bf16 %v2226_v19  ;;  %v2008_v34 = vunpack.c.l.bf16 %v2227_v4 }
  0x46   :  { %v496_v13 = vpack.c.bf16 %v451_v26, %v450_v23  ;;  %vm321_vm7 = vcmp.ge.f32.partialorder %v257_v17, 0.0  ;;  %v389_v61 = vmul.f32 %v2468_v18, %v257_v17  ;;  %v452_v32 = vsel %vm320_vm6, %v256_v12, %v388_v29 }
  0x47   :  { %v2009_v36 = vunpack.c.h.bf16 %v2227_v4  ;;  %v191_v55 = vmul.f32 %v2001_v2, %v2458_v14  ;;  %v258_v59 = vadd.f32 %v2460_v15, %v190_v8  ;;  %v193_v53 = vmul.f32 %v2005_v33, %v2458_v14 }
  0x48   :  { %2360 = vmatprep.mubr.bf16.mxu1 %v496_v13  ;;  %v453_v39 = vsel %vm321_vm7, %v257_v17, %v389_v61  ;;  %v194_v46 = vmul.f32 %v2008_v34, %v2458_v14  ;;  %v2012_v35 = vunpack.c.l.bf16 %v2228_v44  ;;  %v2013_v25 = vunpack.c.h.bf16 %v2228_v44 }
  0x49   :  { %v497_v45 = vpack.c.bf16 %v453_v39, %v452_v32  ;;  %v259_v48 = vadd.f32 %v2460_v15, %v191_v55  ;;  %vm322_vm8 = vcmp.ge.f32.partialorder %v258_v59, 0.0  ;;  %v390_v56 = vmul.f32 %v2468_v18, %v258_v59 }
  0x4a   :  { %2345 = vmatmul.mubr.bf16.gmra.mrb[20].mxu0 %v489_v41  ;;  %v192_v41 = vmul.f32 %v2004_v20, %v2458_v14  ;;  %v261_v60 = vadd.f32 %v2460_v15, %v193_v53  ;;  %v262_v49 = vadd.f32 %v2460_v15, %v194_v46  ;;  %v196_v51 = vmul.f32 %v2012_v35, %v2458_v14 }
  0x4b   :  { %2348 = vmatprep.mubr.bf16.mxu0 %v490_v52  ;;  %v195_v52 = vmul.f32 %v2009_v36, %v2458_v14  ;;  %vm323_vm9 = vcmp.ge.f32.partialorder %v259_v48, 0.0  ;;  %v391_v37 = vmul.f32 %v2468_v18, %v259_v48  ;;  %v454_v47 = vsel %vm322_vm8, %v258_v59, %v390_v56 }
  0x4c   :  { %v260_v58 = vadd.f32 %v2460_v15, %v192_v41  ;;  %vm325_vm11 = vcmp.ge.f32.partialorder %v261_v60, 0.0  ;;  %v393_v63 = vmul.f32 %v2468_v18, %v261_v60  ;;  %vm326_vm12 = vcmp.ge.f32.partialorder %v262_v49, 0.0 }
  0x4d   :  { %v263_v50 = vadd.f32 %v2460_v15, %v195_v52  ;;  %2361 = vmatmul.mubr.bf16.gmra.mrb[4].mxu1 %v497_v45  ;;  %v455_v0 = vsel %vm323_vm9, %v259_v48, %v391_v37  ;;  %v394_v57 = vmul.f32 %v2468_v18, %v262_v49  ;;  %v197_v31 = vmul.f32 %v2013_v25, %v2458_v14  ;;  %v2233_v52 = vld [vmem:[%s3103_s0 + $0xe0] sm:$0xff]  }
  0x4e   :  { %vm324_vm10 = vcmp.ge.f32.partialorder %v260_v58, 0.0  ;;  %v392_v62 = vmul.f32 %v2468_v18, %v260_v58  ;;  %v498_v21 = vpack.c.bf16 %v455_v0, %v454_v47  ;;  %v457_v28 = vsel %vm325_vm11, %v261_v60, %v393_v63 }
  0x4f   :  { %vm327_vm13 = vcmp.ge.f32.partialorder %v263_v50, 0.0  ;;  %v395_v1 = vmul.f32 %v2468_v18, %v263_v50  ;;  %v458_v38 = vsel %vm326_vm12, %v262_v49, %v394_v57  ;;  %v2017_v6 = vunpack.c.h.bf16 %v2229_v3 }
  0x50   :  { %v456_v24 = vsel %vm324_vm10, %v260_v58, %v392_v62  ;;  %2364 = vmatprep.mubr.bf16.mxu1 %v498_v21  ;;  %v264_v10 = vadd.f32 %v2460_v15, %v196_v51  ;;  %v2020_v11 = vunpack.c.l.bf16 %v2230_v9  ;;  %v2021_v12 = vunpack.c.h.bf16 %v2230_v9  ;;  %v2234_v62 = vld [vmem:[%s3103_s0 + $0xe8] sm:$0xff]   ;;  %v2235_v21 = vld [vmem:[%s3103_s0 + $0xf0] sm:$0xff]  }
  0x51   :  { %v499_v5 = vpack.c.bf16 %v457_v28, %v456_v24  ;;  %v459_v43 = vsel %vm327_vm13, %v263_v50, %v395_v1  ;;  %v265_v19 = vadd.f32 %v2460_v15, %v197_v31  ;;  %v199_v23 = vmul.f32 %v2017_v6, %v2458_v14 }
  0x52   :  { %2349 = vmatmul.mubr.bf16.gmra.mrb[24].mxu0 %v491_v7  ;;  %v2231_v7 = vld [vmem:[%s3103_s0 + $0xd0] sm:$0xff]   ;;  %v500_v30 = vpack.c.bf16 %v459_v43, %v458_v38  ;;  %vm328_vm14 = vcmp.ge.f32.partialorder %v264_v10, 0.0  ;;  %v396_v4 = vmul.f32 %v2468_v18, %v264_v10  ;;  %v200_v13 = vmul.f32 %v2020_v11, %v2458_v14 }
  0x53   :  { %2352 = vmatprep.mubr.bf16.mxu0 %v492_v16  ;;  %v2016_v16 = vunpack.c.l.bf16 %v2229_v3  ;;  %v2024_v17 = vunpack.c.l.bf16 %v2231_v7  ;;  %v2025_v26 = vunpack.c.h.bf16 %v2231_v7  ;;  %v201_v29 = vmul.f32 %v2021_v12, %v2458_v14 }
  0x54   :  { %vm329_vm15 = vcmp.ge.f32.partialorder %v265_v19, 0.0  ;;  %v397_v61 = vmul.f32 %v2468_v18, %v265_v19  ;;  %v267_v8 = vadd.f32 %v2460_v15, %v199_v23  ;;  %v460_v20 = vsel %vm328_vm14, %v264_v10, %v396_v4 }
  0x55   :  { %v198_v22 = vmul.f32 %v2016_v16, %v2458_v14  ;;  %2365 = vmatmul.mubr.bf16.gmra.mrb[8].mxu1 %v499_v5  ;;  %v268_v32 = vadd.f32 %v2460_v15, %v200_v13  ;;  %v269_v33 = vadd.f32 %v2460_v15, %v201_v29  ;;  %v2028_v34 = vunpack.c.l.bf16 %v2232_v27 }
  0x56   :  { %2368 = vmatprep.mubr.bf16.mxu1 %v500_v30  ;;  %v461_v36 = vsel %vm329_vm15, %v265_v19, %v397_v61  ;;  %vm331_vm1 = vcmp.ge.f32.partialorder %v267_v8, 0.0  ;;  %v399_v59 = vmul.f32 %v2468_v18, %v267_v8  ;;  %v203_v45 = vmul.f32 %v2025_v26, %v2458_v14 }
  0x57   :  { %v266_v2 = vadd.f32 %v2460_v15, %v198_v22  ;;  %v501_v55 = vpack.c.bf16 %v461_v36, %v460_v20  ;;  %vm332_vm2 = vcmp.ge.f32.partialorder %v268_v32, 0.0  ;;  %v400_v40 = vmul.f32 %v2468_v18, %v268_v32 }
  0x58   :  { %v401_v42 = vmul.f32 %v2468_v18, %v269_v33  ;;  %v463_v44 = vsel %vm331_vm1, %v267_v8, %v399_v59  ;;  %v2029_v53 = vunpack.c.h.bf16 %v2232_v27  ;;  %v204_v46 = vmul.f32 %v2028_v34, %v2458_v14 }
  0x59   :  { %vm330_vm0 = vcmp.ge.f32.partialorder %v266_v2, 0.0  ;;  %v398_v39 = vmul.f32 %v2468_v18, %v266_v2  ;;  %vm333_vm3 = vcmp.ge.f32.partialorder %v269_v33, 0.0  ;;  %v464_v58 = vsel %vm332_vm2, %v268_v32, %v400_v40 }
  0x5a   :  { %2353 = vmatmul.mubr.bf16.gmra.mrb[28].mxu0 %v493_v54  ;;  %v202_v54 = vmul.f32 %v2024_v17, %v2458_v14  ;;  %v271_v60 = vadd.f32 %v2460_v15, %v203_v45  ;;  %v205_v49 = vmul.f32 %v2029_v53, %v2458_v14  ;;  %v272_v50 = vadd.f32 %v2460_v15, %v204_v46  ;;  %v2236_v17 = vld [vmem:[%s3103_s0 + $0xf8] sm:$0xff]  }
  0x5b   :  { %v462_v41 = vsel %vm330_vm0, %v266_v2, %v398_v39  ;;  %v2032_v37 = vunpack.c.l.bf16 %v2233_v52  ;;  %v2033_v47 = vunpack.c.h.bf16 %v2233_v52  ;;  %v465_v63 = vsel %vm333_vm3, %v269_v33, %v401_v42 }
  0x5c   :  { %v502_v48 = vpack.c.bf16 %v463_v44, %v462_v41  ;;  %v270_v56 = vadd.f32 %v2460_v15, %v202_v54  ;;  %vm335_vm5 = vcmp.ge.f32.partialorder %v271_v60, 0.0  ;;  %v403_v0 = vmul.f32 %v2468_v18, %v271_v60 }
  0x5d   :  { %2369 = vmatmul.mubr.bf16.gmra.mrb[12].mxu1 %v501_v55  ;;  %v273_v57 = vadd.f32 %v2460_v15, %v205_v49  ;;  %v206_v1 = vmul.f32 %v2032_v37, %v2458_v14  ;;  %v207_v3 = vmul.f32 %v2033_v47, %v2458_v14  ;;  %v2036_v25 = vunpack.c.l.bf16 %v2234_v62 }
  0x5e   :  { %vm334_vm4 = vcmp.ge.f32.partialorder %v270_v56, 0.0  ;;  %v402_v35 = vmul.f32 %v2468_v18, %v270_v56  ;;  %2372 = vmatprep.mubr.bf16.mxu1 %v502_v48  ;;  %v467_v28 = vsel %vm335_vm5, %v271_v60, %v403_v0  ;;  %v503_v9 = vpack.c.bf16 %v465_v63, %v464_v58 }
  0x5f   :  { %v404_v7 = vmul.f32 %v2468_v18, %v272_v50  ;;  %v274_v5 = vadd.f32 %v2460_v15, %v206_v1  ;;  %v275_v38 = vadd.f32 %v2460_v15, %v207_v3  ;;  %v405_v43 = vmul.f32 %v2468_v18, %v273_v57 }
  0x60   :  { %v466_v24 = vsel %vm334_vm4, %v270_v56, %v402_v35  ;;  %v2037_v51 = vunpack.c.h.bf16 %v2234_v62  ;;  %v208_v30 = vmul.f32 %v2036_v25, %v2458_v14  ;;  %v2040_v31 = vunpack.c.l.bf16 %v2235_v21 }
  0x61   :  { %v504_v16 = vpack.c.bf16 %v467_v28, %v466_v24  ;;  %vm336_vm6 = vcmp.ge.f32.partialorder %v272_v50, 0.0  ;;  %vm337_vm7 = vcmp.ge.f32.partialorder %v273_v57, 0.0  ;;  %v406_v6 = vmul.f32 %v2468_v18, %v274_v5 }
  0x62   :  { %v407_v10 = vmul.f32 %v2468_v18, %v275_v38  ;;  %v209_v11 = vmul.f32 %v2037_v51, %v2458_v14  ;;  %v2041_v12 = vunpack.c.h.bf16 %v2235_v21  ;;  %vm338_vm8 = vcmp.ge.f32.partialorder %v274_v5, 0.0 }
  0x63   :  { %vm339_vm9 = vcmp.ge.f32.partialorder %v275_v38, 0.0  ;;  %v210_v19 = vmul.f32 %v2040_v31, %v2458_v14  ;;  %v468_v22 = vsel %vm336_vm6, %v272_v50, %v404_v7  ;;  %v469_v23 = vsel %vm337_vm7, %v273_v57, %v405_v43 }
  0x64   :  { %v276_v26 = vadd.f32 %v2460_v15, %v208_v30  ;;  %v277_v27 = vadd.f32 %v2460_v15, %v209_v11  ;;  %v211_v4 = vmul.f32 %v2041_v12, %v2458_v14  ;;  %v2044_v13 = vunpack.c.l.bf16 %v2236_v17 }
  0x65   :  { %2373 = vmatmul.mubr.bf16.gmra.mrb[16].mxu1 %v503_v9  ;;  %v2045_v29 = vunpack.c.h.bf16 %v2236_v17  ;;  %v470_v61 = vsel %vm338_vm8, %v274_v5, %v406_v6  ;;  %v471_v2 = vsel %vm339_vm9, %v275_v38, %v407_v10  ;;  %v278_v8 = vadd.f32 %v2460_v15, %v210_v19 }
  0x66   :  { %2376 = vmatprep.mubr.bf16.mxu1 %v504_v16  ;;  %v279_v20 = vadd.f32 %v2460_v15, %v211_v4  ;;  %v505_v32 = vpack.c.bf16 %v469_v23, %v468_v22  ;;  %v408_v33 = vmul.f32 %v2468_v18, %v276_v26  ;;  %v506_v34 = vpack.c.bf16 %v471_v2, %v470_v61 }
  0x67   :  { %v409_v36 = vmul.f32 %v2468_v18, %v277_v27  ;;  %v212_v39 = vmul.f32 %v2044_v13, %v2458_v14  ;;  %v213_v55 = vmul.f32 %v2045_v29, %v2458_v14  ;;  %vm340_vm10 = vcmp.ge.f32.partialorder %v276_v26, 0.0 }
  0x68   :  { %vm341_vm11 = vcmp.ge.f32.partialorder %v277_v27, 0.0  ;;  %v410_v59 = vmul.f32 %v2468_v18, %v278_v8  ;;  %v411_v41 = vmul.f32 %v2468_v18, %v279_v20  ;;  %vm342_vm12 = vcmp.ge.f32.partialorder %v278_v8, 0.0 }
  0x69   :  { %vm343_vm13 = vcmp.ge.f32.partialorder %v279_v20, 0.0  ;;  %v472_v40 = vsel %vm340_vm10, %v276_v26, %v408_v33  ;;  %v473_v42 = vsel %vm341_vm11, %v277_v27, %v409_v36  ;;  %v280_v54 = vadd.f32 %v2460_v15, %v212_v39 }
  0x6a   :  { %v281_v44 = vadd.f32 %v2460_v15, %v213_v55  ;;  %v474_v45 = vsel %vm342_vm12, %v278_v8, %v410_v59  ;;  %v475_v53 = vsel %vm343_vm13, %v279_v20, %v411_v41  ;;  %v507_v46 = vpack.c.bf16 %v473_v42, %v472_v40 }
  0x6b   :  { %v508_v14 = vpack.c.bf16 %v475_v53, %v474_v45  ;;  %v412_v52 = vmul.f32 %v2468_v18, %v280_v54  ;;  %vm344_vm14 = vcmp.ge.f32.partialorder %v280_v54, 0.0 }
  0x6c   :  { %v413_v48 = vmul.f32 %v2468_v18, %v281_v44  ;;  %vm345_vm15 = vcmp.ge.f32.partialorder %v281_v44, 0.0 }
  0x6d   :  { %2377 = vmatmul.mubr.bf16.gmra.mrb[20].mxu1 %v505_v32  ;;  %v476_v56 = vsel %vm344_vm14, %v280_v54, %v412_v52 }
  0x6e   :  { %2380 = vmatprep.mubr.bf16.mxu1 %v506_v34  ;;  %v477_v58 = vsel %vm345_vm15, %v281_v44, %v413_v48 }
  0x6f   :  { %v509_v60 = vpack.c.bf16 %v477_v58, %v476_v56 }
  0x75   :  { %2381 = vmatmul.mubr.bf16.gmra.mrb[24].mxu1 %v507_v46 }
  0x76   :  { %2384 = vmatprep.mubr.bf16.mxu1 %v508_v14 }
  0x7d   :  { %2385 = vmatmul.mubr.bf16.gmra.mrb[28].mxu1 %v509_v60 }
  0xf5   :  { %v2326_v49 = vpop.f32.mrb[0].mxu0 }
  0xf6   :  { %v608_v50 = vpop.f32.mrb[1].mxu0  ;;  %v1642_v18 = vmul.f32 %v2326_v49, %v2326_v49 }
  0xf7   :  { %v2327_v35 = vpop.f32.mrb[2].mxu0  ;;  %v1640_v47 = vmul.f32 %v608_v50, %v608_v50 }
  0xf8   :  { %v2054_v15 = vpack.c.bf16 %v2327_v35, %v2326_v49  ;;  %v611_v37 = vpop.f32.mrb[3].mxu0  ;;  %v1643_v3 = vmul.f32 %v2327_v35, %v2327_v35 }
  0xf9   :  { %v2049_v62 = vpack.c.bf16 %v611_v37, %v608_v50  ;;  %v1570_v63 = vadd.f32 %v611_v37, %v608_v50  ;;  %v1641_v0 = vmul.f32 %v611_v37, %v611_v37 }
  0xfa   :  { %2237 = vst [vmem:[%s3105_s3 + $0x8] sm:$0xff] %v2054_v15  }
  0xfb   :  { %2050 = vst [vmem:[%s3105_s3] sm:$0xff] %v2049_v62   ;;  %v1571_v57 = vadd.f32 %v2326_v49, %v1570_v63  ;;  %v1704_v1 = vadd.f32 %v1641_v0, %v1640_v47 }
  0xfd   :  { %v1705_v21 = vadd.f32 %v1704_v1, %v1642_v18  ;;  %v2330_v24 = vpop.f32.mrb[4].mxu0  ;;  %v1572_v28 = vadd.f32 %v2327_v35, %v1571_v57 }
  0xfe   :  { %v624_v25 = vpop.f32.mrb[5].mxu0  ;;  %v1646_v10 = vmul.f32 %v2330_v24, %v2330_v24 }
  0xff   :  { %v1573_v9 = vadd.f32 %v1572_v28, %v624_v25  ;;  %v1644_v7 = vmul.f32 %v624_v25, %v624_v25  ;;  %v1706_v5 = vadd.f32 %v1705_v21, %v1643_v3  ;;  %v2331_v38 = vpop.f32.mrb[6].mxu0 }
 0x100   :  { %v2064_v43 = vpack.c.bf16 %v2331_v38, %v2330_v24  ;;  %v627_v51 = vpop.f32.mrb[7].mxu0  ;;  %v1647_v17 = vmul.f32 %v2331_v38, %v2331_v38 }
 0x101   :  { %v1707_v30 = vadd.f32 %v1706_v5, %v1644_v7  ;;  %v2059_v31 = vpack.c.bf16 %v627_v51, %v624_v25  ;;  %v1574_v16 = vadd.f32 %v1573_v9, %v627_v51  ;;  %v1645_v6 = vmul.f32 %v627_v51, %v627_v51 }
 0x102   :  { %2239 = vst [vmem:[%s3105_s3 + $0x18] sm:$0xff] %v2064_v43  }
 0x103   :  { %2238 = vst [vmem:[%s3105_s3 + $0x10] sm:$0xff] %v2059_v31   ;;  %v1575_v11 = vadd.f32 %v2330_v24, %v1574_v16  ;;  %v1708_v12 = vadd.f32 %v1707_v30, %v1645_v6 }
 0x105   :  { %v1709_v19 = vadd.f32 %v1708_v12, %v1646_v10  ;;  %v2334_v22 = vpop.f32.mrb[8].mxu0  ;;  %v1576_v23 = vadd.f32 %v2331_v38, %v1575_v11 }
 0x106   :  { %v640_v26 = vpop.f32.mrb[9].mxu0  ;;  %v1650_v34 = vmul.f32 %v2334_v22, %v2334_v22 }
 0x107   :  { %v1577_v27 = vadd.f32 %v1576_v23, %v640_v26  ;;  %v1648_v4 = vmul.f32 %v640_v26, %v640_v26  ;;  %v1710_v13 = vadd.f32 %v1709_v19, %v1647_v17  ;;  %v2335_v29 = vpop.f32.mrb[10].mxu0 }
 0x108   :  { %v2074_v61 = vpack.c.bf16 %v2335_v29, %v2334_v22  ;;  %v643_v2 = vpop.f32.mrb[11].mxu0  ;;  %v1651_v55 = vmul.f32 %v2335_v29, %v2335_v29 }
 0x109   :  { %v1711_v8 = vadd.f32 %v1710_v13, %v1648_v4  ;;  %v2069_v20 = vpack.c.bf16 %v643_v2, %v640_v26  ;;  %v1578_v32 = vadd.f32 %v1577_v27, %v643_v2  ;;  %v1649_v33 = vmul.f32 %v643_v2, %v643_v2 }
 0x10a   :  { %2241 = vst [vmem:[%s3105_s3 + $0x28] sm:$0xff] %v2074_v61  }
 0x10b   :  { %2240 = vst [vmem:[%s3105_s3 + $0x20] sm:$0xff] %v2069_v20   ;;  %v1579_v36 = vadd.f32 %v2334_v22, %v1578_v32  ;;  %v1712_v39 = vadd.f32 %v1711_v8, %v1649_v33 }
 0x10d   :  { %v1713_v59 = vadd.f32 %v1712_v39, %v1650_v34  ;;  %v2338_v41 = vpop.f32.mrb[12].mxu0  ;;  %v1580_v40 = vadd.f32 %v2335_v29, %v1579_v36 }
 0x10e   :  { %v656_v42 = vpop.f32.mrb[13].mxu0  ;;  %v1654_v60 = vmul.f32 %v2338_v41, %v2338_v41 }
 0x10f   :  { %v1581_v54 = vadd.f32 %v1580_v40, %v656_v42  ;;  %v1652_v44 = vmul.f32 %v656_v42, %v656_v42  ;;  %v1714_v45 = vadd.f32 %v1713_v59, %v1651_v55  ;;  %v2339_v53 = vpop.f32.mrb[14].mxu0 }
 0x110   :  { %v2084_v46 = vpack.c.bf16 %v2339_v53, %v2338_v41  ;;  %v659_v14 = vpop.f32.mrb[15].mxu0  ;;  %v1655_v35 = vmul.f32 %v2339_v53, %v2339_v53 }
 0x111   :  { %v1715_v52 = vadd.f32 %v1714_v45, %v1652_v44  ;;  %v2079_v48 = vpack.c.bf16 %v659_v14, %v656_v42  ;;  %v1582_v56 = vadd.f32 %v1581_v54, %v659_v14  ;;  %v1653_v58 = vmul.f32 %v659_v14, %v659_v14 }
 0x112   :  { %2243 = vst [vmem:[%s3105_s3 + $0x38] sm:$0xff] %v2084_v46  }
 0x113   :  { %2242 = vst [vmem:[%s3105_s3 + $0x30] sm:$0xff] %v2079_v48   ;;  %v1583_v49 = vadd.f32 %v2338_v41, %v1582_v56  ;;  %v1716_v50 = vadd.f32 %v1715_v52, %v1653_v58 }
 0x115   :  { %v1717_v15 = vadd.f32 %v1716_v50, %v1654_v60  ;;  %v2342_v37 = vpop.f32.mrb[16].mxu0  ;;  %v1584_v47 = vadd.f32 %v2339_v53, %v1583_v49 }
 0x116   :  { %v672_v62 = vpop.f32.mrb[17].mxu0  ;;  %v1658_v9 = vmul.f32 %v2342_v37, %v2342_v37 }
 0x117   :  { %v1585_v63 = vadd.f32 %v1584_v47, %v672_v62  ;;  %v1656_v0 = vmul.f32 %v672_v62, %v672_v62  ;;  %v1718_v18 = vadd.f32 %v1717_v15, %v1655_v35  ;;  %v2343_v57 = vpop.f32.mrb[18].mxu0 }
 0x118   :  { %v2094_v1 = vpack.c.bf16 %v2343_v57, %v2342_v37  ;;  %v675_v3 = vpop.f32.mrb[19].mxu0  ;;  %v1659_v38 = vmul.f32 %v2343_v57, %v2343_v57  ;;  %v2922_v31 = vpop.f32.mrb[0].mxu1 }
 0x119   :  { %v1719_v21 = vadd.f32 %v1718_v18, %v1656_v0  ;;  %v2089_v24 = vpack.c.bf16 %v675_v3, %v672_v62  ;;  %v1586_v28 = vadd.f32 %v1585_v63, %v675_v3  ;;  %v1657_v25 = vmul.f32 %v675_v3, %v675_v3  ;;  %v2924_v6 = vpop.f32.mrb[1].mxu1 }
 0x11a   :  { %2245 = vst [vmem:[%s3105_s3 + $0x48] sm:$0xff] %v2094_v1   ;;  %v2926_v19 = vpop.f32.mrb[2].mxu1 }
 0x11b   :  { %2244 = vst [vmem:[%s3105_s3 + $0x40] sm:$0xff] %v2089_v24   ;;  %v1587_v7 = vadd.f32 %v2342_v37, %v1586_v28  ;;  %v1720_v5 = vadd.f32 %v1719_v21, %v1657_v25  ;;  %v2134_v26 = vpack.c.bf16 %v2926_v19, %v2922_v31  ;;  %v2930_v27 = vpop.f32.mrb[3].mxu1 }
 0x11c   :  { %v2129_v2 = vpack.c.bf16 %v2930_v27, %v2924_v6 }
 0x11d   :  { %v1721_v43 = vadd.f32 %v1720_v5, %v1658_v9  ;;  %v2346_v51 = vpop.f32.mrb[20].mxu0  ;;  %v1588_v30 = vadd.f32 %v2343_v57, %v1587_v7  ;;  %2253 = vst [vmem:[%s3105_s3 + $0x88] sm:$0xff] %v2134_v26   ;;  %v1672_v26 = vmul.f32 %v2924_v6, %v2924_v6 }
 0x11e   :  { %v688_v16 = vpop.f32.mrb[21].mxu0  ;;  %v1662_v8 = vmul.f32 %v2346_v51, %v2346_v51  ;;  %2252 = vst [vmem:[%s3105_s3 + $0x80] sm:$0xff] %v2129_v2  }
 0x11f   :  { %v1589_v10 = vadd.f32 %v1588_v30, %v688_v16  ;;  %v1660_v11 = vmul.f32 %v688_v16, %v688_v16  ;;  %v1722_v12 = vadd.f32 %v1721_v43, %v1659_v38  ;;  %v2347_v17 = vpop.f32.mrb[22].mxu0 }
 0x120   :  { %v2104_v22 = vpack.c.bf16 %v2347_v17, %v2346_v51  ;;  %v691_v23 = vpop.f32.mrb[23].mxu0  ;;  %v1663_v33 = vmul.f32 %v2347_v17, %v2347_v17  ;;  %v2946_v55 = vpop.f32.mrb[4].mxu1 }
 0x121   :  { %v1723_v4 = vadd.f32 %v1722_v12, %v1660_v11  ;;  %v2099_v13 = vpack.c.bf16 %v691_v23, %v688_v16  ;;  %v1590_v29 = vadd.f32 %v1589_v10, %v691_v23  ;;  %v1661_v61 = vmul.f32 %v691_v23, %v691_v23  ;;  %v2948_v41 = vpop.f32.mrb[5].mxu1 }
 0x122   :  { %2247 = vst [vmem:[%s3105_s3 + $0x58] sm:$0xff] %v2104_v22   ;;  %v2950_v45 = vpop.f32.mrb[6].mxu1 }
 0x123   :  { %2246 = vst [vmem:[%s3105_s3 + $0x50] sm:$0xff] %v2099_v13   ;;  %v1591_v20 = vadd.f32 %v2346_v51, %v1590_v29  ;;  %v1724_v32 = vadd.f32 %v1723_v4, %v1661_v61  ;;  %v2144_v14 = vpack.c.bf16 %v2950_v45, %v2946_v55  ;;  %v2954_v52 = vpop.f32.mrb[7].mxu1 }
 0x124   :  { %v2139_v49 = vpack.c.bf16 %v2954_v52, %v2948_v41 }
 0x125   :  { %v1725_v34 = vadd.f32 %v1724_v32, %v1662_v8  ;;  %v2350_v36 = vpop.f32.mrb[24].mxu0  ;;  %v1592_v39 = vadd.f32 %v2347_v17, %v1591_v20  ;;  %2255 = vst [vmem:[%s3105_s3 + $0x98] sm:$0xff] %v2144_v14  }
 0x126   :  { %v704_v59 = vpop.f32.mrb[25].mxu0  ;;  %v1666_v50 = vmul.f32 %v2350_v36, %v2350_v36  ;;  %2254 = vst [vmem:[%s3105_s3 + $0x90] sm:$0xff] %v2139_v49  }
 0x127   :  { %v1593_v40 = vadd.f32 %v1592_v39, %v704_v59  ;;  %v1664_v42 = vmul.f32 %v704_v59, %v704_v59  ;;  %v1726_v54 = vadd.f32 %v1725_v34, %v1663_v33  ;;  %v2351_v44 = vpop.f32.mrb[26].mxu0  ;;  %v1673_v34 = vmul.f32 %v2930_v27, %v2930_v27 }
 0x128   :  { %v2114_v53 = vpack.c.bf16 %v2351_v44, %v2350_v36  ;;  %v707_v46 = vpop.f32.mrb[27].mxu0  ;;  %v1667_v37 = vmul.f32 %v2351_v44, %v2351_v44  ;;  %v2970_v0 = vpop.f32.mrb[8].mxu1 }
 0x129   :  { %v1727_v48 = vadd.f32 %v1726_v54, %v1664_v42  ;;  %v2109_v56 = vpack.c.bf16 %v707_v46, %v704_v59  ;;  %v1594_v58 = vadd.f32 %v1593_v40, %v707_v46  ;;  %v1665_v60 = vmul.f32 %v707_v46, %v707_v46  ;;  %v2972_v57 = vpop.f32.mrb[9].mxu1 }
 0x12a   :  { %2249 = vst [vmem:[%s3105_s3 + $0x68] sm:$0xff] %v2114_v53   ;;  %v2974_v28 = vpop.f32.mrb[10].mxu1  ;;  %v1675_v40 = vmul.f32 %v2926_v19, %v2926_v19  ;;  %v1676_v54 = vmul.f32 %v2948_v41, %v2948_v41 }
 0x12b   :  { %2248 = vst [vmem:[%s3105_s3 + $0x60] sm:$0xff] %v2109_v56   ;;  %v1595_v35 = vadd.f32 %v2350_v36, %v1594_v58  ;;  %v1728_v15 = vadd.f32 %v1727_v48, %v1665_v60  ;;  %v2154_v7 = vpack.c.bf16 %v2974_v28, %v2970_v0  ;;  %v2978_v5 = vpop.f32.mrb[11].mxu1 }
 0x12c   :  { %v2149_v16 = vpack.c.bf16 %v2978_v5, %v2972_v57 }
 0x12d   :  { %v1729_v47 = vadd.f32 %v1728_v15, %v1666_v50  ;;  %v2354_v62 = vpop.f32.mrb[28].mxu0  ;;  %v1596_v63 = vadd.f32 %v2351_v44, %v1595_v35  ;;  %2257 = vst [vmem:[%s3105_s3 + $0xa8] sm:$0xff] %v2154_v7   ;;  %v1679_v15 = vmul.f32 %v2950_v45, %v2950_v45 }
 0x12e   :  { %v720_v18 = vpop.f32.mrb[29].mxu0  ;;  %v1670_v10 = vmul.f32 %v2354_v62, %v2354_v62  ;;  %2256 = vst [vmem:[%s3105_s3 + $0xa0] sm:$0xff] %v2149_v16  }
 0x12f   :  { %v1597_v1 = vadd.f32 %v1596_v63, %v720_v18  ;;  %v1668_v3 = vmul.f32 %v720_v18, %v720_v18  ;;  %v1730_v21 = vadd.f32 %v1729_v47, %v1667_v37  ;;  %v2355_v24 = vpop.f32.mrb[30].mxu0  ;;  %v1680_v47 = vmul.f32 %v2972_v57, %v2972_v57 }
 0x130   :  { %v2124_v25 = vpack.c.bf16 %v2355_v24, %v2354_v62  ;;  %v723_v9 = vpop.f32.mrb[31].mxu0  ;;  %v1671_v17 = vmul.f32 %v2355_v24, %v2355_v24  ;;  %v2996_v4 = vpop.f32.mrb[12].mxu1 }
 0x131   :  { %v1731_v38 = vadd.f32 %v1730_v21, %v1668_v3  ;;  %v2119_v43 = vpack.c.bf16 %v723_v9, %v720_v18  ;;  %v1598_v51 = vadd.f32 %v1597_v1, %v723_v9  ;;  %v1669_v30 = vmul.f32 %v723_v9, %v723_v9  ;;  %v784_v13 = vpop.f32.mrb[13].mxu1 }
 0x132   :  { %2251 = vst [vmem:[%s3105_s3 + $0x78] sm:$0xff] %v2124_v25   ;;  %v2999_v2 = vpop.f32.mrb[14].mxu1 }
 0x133   :  { %2250 = vst [vmem:[%s3105_s3 + $0x70] sm:$0xff] %v2119_v43   ;;  %v1599_v11 = vadd.f32 %v2354_v62, %v1598_v51  ;;  %v1732_v12 = vadd.f32 %v1731_v38, %v1669_v30  ;;  %v2164_v8 = vpack.c.bf16 %v2999_v2, %v2996_v4  ;;  %v787_v20 = vpop.f32.mrb[15].mxu1  ;;  %v1683_v43 = vmul.f32 %v2974_v28, %v2974_v28 }
 0x134   :  { %v2159_v36 = vpack.c.bf16 %v787_v20, %v784_v13  ;;  %v1684_v30 = vmul.f32 %v784_v13, %v784_v13 }
 0x135   :  { %v1733_v22 = vadd.f32 %v1732_v12, %v1670_v10  ;;  %v1600_v23 = vadd.f32 %v2355_v24, %v1599_v11  ;;  %2259 = vst [vmem:[%s3105_s3 + $0xb8] sm:$0xff] %v2164_v8   ;;  %v1686_v8 = vmul.f32 %v2996_v4, %v2996_v4 }
 0x136   :  { %2258 = vst [vmem:[%s3105_s3 + $0xb0] sm:$0xff] %v2159_v36  }
 0x137   :  { %v1601_v29 = vadd.f32 %v1600_v23, %v2924_v6  ;;  %v1734_v61 = vadd.f32 %v1733_v22, %v1671_v17  ;;  %v1674_v6 = vmul.f32 %v2922_v31, %v2922_v31 }
 0x138   :  { %v3020_v44 = vpop.f32.mrb[16].mxu1 }
 0x139   :  { %v1735_v32 = vadd.f32 %v1734_v61, %v1672_v26  ;;  %v1602_v33 = vadd.f32 %v1601_v29, %v2930_v27  ;;  %v800_v53 = vpop.f32.mrb[17].mxu1  ;;  %v1685_v29 = vmul.f32 %v787_v20, %v787_v20 }
 0x13a   :  { %v3023_v14 = vpop.f32.mrb[18].mxu1 }
 0x13b   :  { %v1603_v39 = vadd.f32 %v2922_v31, %v1602_v33  ;;  %v1736_v59 = vadd.f32 %v1735_v32, %v1673_v34  ;;  %v2174_v48 = vpack.c.bf16 %v3023_v14, %v3020_v44  ;;  %v803_v56 = vpop.f32.mrb[19].mxu1  ;;  %v1688_v34 = vmul.f32 %v800_v53, %v800_v53 }
 0x13c   :  { %v2169_v49 = vpack.c.bf16 %v803_v56, %v800_v53 }
 0x13d   :  { %v1737_v42 = vadd.f32 %v1736_v59, %v1674_v6  ;;  %v1604_v27 = vadd.f32 %v2926_v19, %v1603_v39  ;;  %v1677_v19 = vmul.f32 %v2954_v52, %v2954_v52  ;;  %2261 = vst [vmem:[%s3105_s3 + $0xc8] sm:$0xff] %v2174_v48   ;;  %v1690_v48 = vmul.f32 %v3020_v44, %v3020_v44 }
 0x13e   :  { %2260 = vst [vmem:[%s3105_s3 + $0xc0] sm:$0xff] %v2169_v49  }
 0x13f   :  { %v1605_v46 = vadd.f32 %v1604_v27, %v2948_v41  ;;  %v1738_v31 = vadd.f32 %v1737_v42, %v1675_v40  ;;  %v1678_v41 = vmul.f32 %v2946_v55, %v2946_v55 }
 0x140   :  { %v3044_v62 = vpop.f32.mrb[20].mxu1 }
 0x141   :  { %v1739_v58 = vadd.f32 %v1738_v31, %v1676_v54  ;;  %v1606_v60 = vadd.f32 %v1605_v46, %v2954_v52  ;;  %v816_v63 = vpop.f32.mrb[21].mxu1  ;;  %v1689_v46 = vmul.f32 %v803_v56, %v803_v56 }
 0x142   :  { %v3047_v1 = vpop.f32.mrb[22].mxu1 }
 0x143   :  { %v1607_v50 = vadd.f32 %v2946_v55, %v1606_v60  ;;  %v1740_v35 = vadd.f32 %v1739_v58, %v1677_v19  ;;  %v2184_v3 = vpack.c.bf16 %v3047_v1, %v3044_v62  ;;  %v819_v21 = vpop.f32.mrb[23].mxu1  ;;  %v1692_v19 = vmul.f32 %v816_v63, %v816_v63 }
 0x144   :  { %v2179_v9 = vpack.c.bf16 %v819_v21, %v816_v63 }
 0x145   :  { %v1741_v37 = vadd.f32 %v1740_v35, %v1678_v41  ;;  %v1608_v52 = vadd.f32 %v2950_v45, %v1607_v50  ;;  %v1681_v45 = vmul.f32 %v2978_v5, %v2978_v5  ;;  %2263 = vst [vmem:[%s3105_s3 + $0xd8] sm:$0xff] %v2184_v3  }
 0x146   :  { %2262 = vst [vmem:[%s3105_s3 + $0xd0] sm:$0xff] %v2179_v9  }
 0x147   :  { %v1609_v18 = vadd.f32 %v1608_v52, %v2972_v57  ;;  %v1742_v55 = vadd.f32 %v1741_v37, %v1679_v15  ;;  %v1682_v57 = vmul.f32 %v2970_v0, %v2970_v0  ;;  %v1693_v15 = vmul.f32 %v819_v21, %v819_v21 }
 0x148   :  { %v2382_v16 = vpop.f32.mrb[24].mxu1 }
 0x149   :  { %v1743_v24 = vadd.f32 %v1742_v55, %v1680_v47  ;;  %v1610_v25 = vadd.f32 %v1609_v18, %v2978_v5  ;;  %v832_v10 = vpop.f32.mrb[25].mxu1  ;;  %v1695_v47 = vmul.f32 %v3047_v1, %v3047_v1  ;;  %v1698_v9 = vmul.f32 %v2382_v16, %v2382_v16 }
 0x14a   :  { %v2383_v17 = vpop.f32.mrb[26].mxu1  ;;  %v1696_v3 = vmul.f32 %v832_v10, %v832_v10 }
 0x14b   :  { %v1611_v7 = vadd.f32 %v2970_v0, %v1610_v25  ;;  %v1744_v38 = vadd.f32 %v1743_v24, %v1681_v45  ;;  %v2194_v22 = vpack.c.bf16 %v2383_v17, %v2382_v16  ;;  %v835_v23 = vpop.f32.mrb[27].mxu1 }
 0x14c   :  { %v2189_v61 = vpack.c.bf16 %v835_v23, %v832_v10  ;;  %v1697_v45 = vmul.f32 %v835_v23, %v835_v23 }
 0x14d   :  { %v1745_v51 = vadd.f32 %v1744_v38, %v1682_v57  ;;  %v1612_v5 = vadd.f32 %v2974_v28, %v1611_v7  ;;  %2265 = vst [vmem:[%s3105_s3 + $0xe8] sm:$0xff] %v2194_v22   ;;  %v1699_v7 = vmul.f32 %v2383_v17, %v2383_v17 }
 0x14e   :  { %2264 = vst [vmem:[%s3105_s3 + $0xe0] sm:$0xff] %v2189_v61  }
 0x14f   :  { %v1613_v11 = vadd.f32 %v1612_v5, %v784_v13  ;;  %v1746_v12 = vadd.f32 %v1745_v51, %v1683_v43  ;;  %v1687_v13 = vmul.f32 %v2999_v2, %v2999_v2 }
 0x150   :  { %v2386_v36 = vpop.f32.mrb[28].mxu1 }
 0x151   :  { %v1747_v0 = vadd.f32 %v1746_v12, %v1684_v30  ;;  %v1614_v26 = vadd.f32 %v1613_v11, %v787_v20  ;;  %v848_v6 = vpop.f32.mrb[29].mxu1  ;;  %v1702_v22 = vmul.f32 %v2386_v36, %v2386_v36 }
 0x152   :  { %v2387_v40 = vpop.f32.mrb[30].mxu1 }
 0x153   :  { %v1615_v28 = vadd.f32 %v2996_v4, %v1614_v26  ;;  %v1748_v32 = vadd.f32 %v1747_v0, %v1685_v29  ;;  %v2204_v42 = vpack.c.bf16 %v2387_v40, %v2386_v36  ;;  %v851_v27 = vpop.f32.mrb[31].mxu1 }
 0x154   :  { %v2199_v31 = vpack.c.bf16 %v851_v27, %v848_v6  ;;  %v1701_v12 = vmul.f32 %v851_v27, %v851_v27 }
 0x155   :  { %v1749_v33 = vadd.f32 %v1748_v32, %v1686_v8  ;;  %v1616_v20 = vadd.f32 %v2999_v2, %v1615_v28  ;;  %2267 = vst [vmem:[%s3105_s3 + $0xf8] sm:$0xff] %v2204_v42  }
 0x156   :  { %2266 = vst [vmem:[%s3105_s3 + $0xf0] sm:$0xff] %v2199_v31  }
 0x157   :  { %v1617_v39 = vadd.f32 %v1616_v20, %v800_v53  ;;  %v1750_v59 = vadd.f32 %v1749_v33, %v1687_v13  ;;  %v1691_v53 = vmul.f32 %v3023_v14, %v3023_v14 }
 0x159   :  { %v1751_v4 = vadd.f32 %v1750_v59, %v1688_v34  ;;  %v1618_v54 = vadd.f32 %v1617_v39, %v803_v56 }
 0x15b   :  { %v1619_v2 = vadd.f32 %v3020_v44, %v1618_v54  ;;  %v1752_v58 = vadd.f32 %v1751_v4, %v1689_v46  ;;  %v1694_v44 = vmul.f32 %v3044_v62, %v3044_v62 }
 0x15d   :  { %v1753_v60 = vadd.f32 %v1752_v58, %v1690_v48  ;;  %v1620_v56 = vadd.f32 %v3023_v14, %v1619_v2 }
 0x15f   :  { %v1621_v49 = vadd.f32 %v1620_v56, %v816_v63  ;;  %v1754_v41 = vadd.f32 %v1753_v60, %v1691_v53 }
 0x161   :  { %v1755_v50 = vadd.f32 %v1754_v41, %v1692_v19  ;;  %v1622_v35 = vadd.f32 %v1621_v49, %v819_v21 }
 0x163   :  { %v1623_v37 = vadd.f32 %v3044_v62, %v1622_v35  ;;  %v1756_v52 = vadd.f32 %v1755_v50, %v1693_v15  ;;  %v1700_v62 = vmul.f32 %v848_v6, %v848_v6 }
 0x165   :  { %v1757_v18 = vadd.f32 %v1756_v52, %v1694_v44  ;;  %v1624_v55 = vadd.f32 %v3047_v1, %v1623_v37 }
 0x167   :  { %v1625_v14 = vadd.f32 %v1624_v55, %v832_v10  ;;  %v1758_v24 = vadd.f32 %v1757_v18, %v1695_v47  ;;  %v1703_v10 = vmul.f32 %v2387_v40, %v2387_v40 }
 0x169   :  { %v1759_v63 = vadd.f32 %v1758_v24, %v1696_v3  ;;  %v1626_v25 = vadd.f32 %v1625_v14, %v835_v23 }
 0x16b   :  { %v1627_v21 = vadd.f32 %v2382_v16, %v1626_v25  ;;  %v1760_v57 = vadd.f32 %v1759_v63, %v1697_v45 }
 0x16d   :  { %v1761_v38 = vadd.f32 %v1760_v57, %v1698_v9  ;;  %v1628_v43 = vadd.f32 %v2383_v17, %v1627_v21 }
 0x16f   :  { %v1629_v51 = vadd.f32 %v1628_v43, %v848_v6  ;;  %v1762_v5 = vadd.f32 %v1761_v38, %v1699_v7 }
 0x171   :  { %v1763_v30 = vadd.f32 %v1762_v5, %v1700_v62  ;;  %v1630_v11 = vadd.f32 %v1629_v51, %v851_v27 }
 0x173   :  { %v1631_v1 = vadd.f32 %v2386_v36, %v1630_v11  ;;  %v1764_v0 = vadd.f32 %v1763_v30, %v1701_v12 }
 0x175   :  { %v1632_v26 = vadd.f32 %v2387_v40, %v1631_v1  ;;  %v1765_v29 = vadd.f32 %v1764_v0, %v1702_v22 }
 0x177   :  { %v1633_v61 = vrot.slane %v1632_v26, 4  ;;  %v1766_v23 = vadd.f32 %v1765_v29, %v1703_v10 }
 0x179   :  { %v1634_v8 = vadd.f32 %v1633_v61, %v1632_v26  ;;  %v1767_v16 = vrot.slane %v1766_v23, 4 }
 0x17b   :  { %v1635_v28 = vrot.slane %v1634_v8, 2  ;;  %v1768_v32 = vadd.f32 %v1767_v16, %v1766_v23 }
 0x17d   :  { %v1636_v13 = vadd.f32 %v1635_v28, %v1634_v8  ;;  %v1769_v17 = vrot.slane %v1768_v32, 2 }
 0x17f   :  { %v1637_v33 = vrot.slane %v1636_v13, 1  ;;  %v1770_v20 = vadd.f32 %v1769_v17, %v1768_v32 }
 0x181   :  { %v1638_v34 = vadd.f32 %v1637_v33, %v1636_v13  ;;  %v1771_v6 = vrot.slane %v1770_v20, 1 }
 0x183   :  { %1639 = vst [vmem:[%s3106_s4] sm:$0x1] %v1638_v34  ;;  %v1772_v36 = vadd.f32 %v1771_v6, %v1770_v20 }
 0x185   :  { %1773 = vst [vmem:[%s3106_s4 + $0x1] sm:$0x1] %v1772_v36 }

// kernel: bottleneck_forward.3
= control target key start
LH: loop header
LB: loop body
LE: loop exit
PB: predicated region body
PF: predicated region fallthrough
CT: control target
= control target key end

     0   :  { %s2511_s1 = inlined_call_operand.vmem [shape: bf16[128,128], index: 1, kind: input, shape index: {}]   ;;  %s2512_s0 = inlined_call_operand.vmem [shape: bf16[512,128], index: 0, kind: input, shape index: {}]   ;;  %s2513_s2 = inlined_call_operand.vmem [shape: bf16[512,128], index: 2, kind: output, shape index: {0}]   ;;  %s2514_s3 = inlined_call_operand.vmem [shape: f32[1,2,128], index: 3, kind: output, shape index: {1}]  }
   0x1   :  { %v2037_v0 = vld [vmem:[%s2511_s1] sm:$0xff]   ;;  %v2038_v1 = vld [vmem:[%s2511_s1 + $0x8] sm:$0xff]   ;;  %v2039_v2 = vld [vmem:[%s2511_s1 + $0x10] sm:$0xff]  }
   0x2   :  { %1941 = vmatprep.subr.bf16.mxu0 %v2037_v0  ;;  %2021 = vmatprep.subr.bf16.mxu1 %v2037_v0  ;;  %v2040_v3 = vld [vmem:[%s2511_s1 + $0x18] sm:$0xff]   ;;  %v2045_v4 = vld [vmem:[%s2512_s0] sm:$0xff]   ;;  %v2042_v6 = vld [vmem:[%s2511_s1 + $0x28] sm:$0xff]  }
   0x3   :  { %1942 = vmatpush3.bf16.msra.mxu0 %v2037_v0  ;;  %2029 = vmatpush3.bf16.msra.mxu1 %v2037_v0  ;;  %v2041_v5 = vld [vmem:[%s2511_s1 + $0x20] sm:$0xff]   ;;  %v2043_v7 = vld [vmem:[%s2511_s1 + $0x30] sm:$0xff]   ;;  %v2044_v8 = vld [vmem:[%s2511_s1 + $0x38] sm:$0xff]  }
   0x4   :  { %1943 = vmatprep.subr.bf16.mxu0 %v2038_v1  ;;  %2022 = vmatprep.subr.bf16.mxu1 %v2038_v1  ;;  %v2061_v9 = vld [vmem:[%s2512_s0 + $0x80] sm:$0xff]   ;;  %v2046_v10 = vld [vmem:[%s2512_s0 + $0x8] sm:$0xff]   ;;  %v2047_v11 = vld [vmem:[%s2512_s0 + $0x10] sm:$0xff]  }
   0x5   :  { %1957 = vmatprep.mubr.bf16.mxu0 %v2045_v4  ;;  %1989 = vmatprep.mubr.bf16.mxu1 %v2061_v9  ;;  %v2062_v12 = vld [vmem:[%s2512_s0 + $0x88] sm:$0xff]   ;;  %v2063_v13 = vld [vmem:[%s2512_s0 + $0x90] sm:$0xff]   ;;  %v2048_v14 = vld [vmem:[%s2512_s0 + $0x18] sm:$0xff]  }
   0x6   :  { %v2049_v15 = vld [vmem:[%s2512_s0 + $0x20] sm:$0xff]   ;;  %v2064_v16 = vld [vmem:[%s2512_s0 + $0x98] sm:$0xff]   ;;  %v2050_v18 = vld [vmem:[%s2512_s0 + $0x28] sm:$0xff]  }
   0x7   :  { %1944 = vmatpush3.bf16.msra.mxu0 %v2038_v1  ;;  %2030 = vmatpush3.bf16.msra.mxu1 %v2038_v1  ;;  %v2065_v17 = vld [vmem:[%s2512_s0 + $0xa0] sm:$0xff]   ;;  %v2066_v19 = vld [vmem:[%s2512_s0 + $0xa8] sm:$0xff]   ;;  %v2051_v20 = vld [vmem:[%s2512_s0 + $0x30] sm:$0xff]  }
   0x8   :  { %1945 = vmatprep.subr.bf16.mxu0 %v2039_v2  ;;  %2023 = vmatprep.subr.bf16.mxu1 %v2039_v2  ;;  %v2067_v21 = vld [vmem:[%s2512_s0 + $0xb0] sm:$0xff]   ;;  %v2052_v22 = vld [vmem:[%s2512_s0 + $0x38] sm:$0xff]   ;;  %v2053_v24 = vld [vmem:[%s2512_s0 + $0x40] sm:$0xff]  }
   0x9   :  { %v2068_v23 = vld [vmem:[%s2512_s0 + $0xb8] sm:$0xff]   ;;  %v2069_v25 = vld [vmem:[%s2512_s0 + $0xc0] sm:$0xff]   ;;  %v2054_v26 = vld [vmem:[%s2512_s0 + $0x48] sm:$0xff]  }
   0xa   :  { %v2070_v27 = vld [vmem:[%s2512_s0 + $0xc8] sm:$0xff]   ;;  %v2055_v28 = vld [vmem:[%s2512_s0 + $0x50] sm:$0xff]   ;;  %v2056_v30 = vld [vmem:[%s2512_s0 + $0x58] sm:$0xff]  }
   0xb   :  { %1946 = vmatpush3.bf16.msra.mxu0 %v2039_v2  ;;  %2031 = vmatpush3.bf16.msra.mxu1 %v2039_v2  ;;  %v2071_v29 = vld [vmem:[%s2512_s0 + $0xd0] sm:$0xff]   ;;  %v2072_v31 = vld [vmem:[%s2512_s0 + $0xd8] sm:$0xff]   ;;  %v2057_v32 = vld [vmem:[%s2512_s0 + $0x60] sm:$0xff]  }
   0xc   :  { %1947 = vmatprep.subr.bf16.mxu0 %v2040_v3  ;;  %2024 = vmatprep.subr.bf16.mxu1 %v2040_v3  ;;  %v2073_v33 = vld [vmem:[%s2512_s0 + $0xe0] sm:$0xff]   ;;  %v2058_v34 = vld [vmem:[%s2512_s0 + $0x68] sm:$0xff]   ;;  %v2059_v36 = vld [vmem:[%s2512_s0 + $0x70] sm:$0xff]  }
   0xd   :  { %v2074_v35 = vld [vmem:[%s2512_s0 + $0xe8] sm:$0xff]   ;;  %v2075_v37 = vld [vmem:[%s2512_s0 + $0xf0] sm:$0xff]   ;;  %v2060_v38 = vld [vmem:[%s2512_s0 + $0x78] sm:$0xff]  }
   0xe   :  { %v2076_v39 = vld [vmem:[%s2512_s0 + $0xf8] sm:$0xff]  }
   0xf   :  { %1948 = vmatpush3.bf16.msra.mxu0 %v2040_v3  ;;  %2032 = vmatpush3.bf16.msra.mxu1 %v2040_v3 }
  0x10   :  { %1949 = vmatprep.subr.bf16.mxu0 %v2041_v5  ;;  %2025 = vmatprep.subr.bf16.mxu1 %v2041_v5 }
  0x13   :  { %1950 = vmatpush3.bf16.msra.mxu0 %v2041_v5  ;;  %2033 = vmatpush3.bf16.msra.mxu1 %v2041_v5 }
  0x14   :  { %1951 = vmatprep.subr.bf16.mxu0 %v2042_v6  ;;  %2026 = vmatprep.subr.bf16.mxu1 %v2042_v6 }
  0x17   :  { %1952 = vmatpush3.bf16.msra.mxu0 %v2042_v6  ;;  %2034 = vmatpush3.bf16.msra.mxu1 %v2042_v6 }
  0x18   :  { %1953 = vmatprep.subr.bf16.mxu0 %v2043_v7  ;;  %2027 = vmatprep.subr.bf16.mxu1 %v2043_v7 }
  0x1b   :  { %1954 = vmatpush3.bf16.msra.mxu0 %v2043_v7  ;;  %2035 = vmatpush3.bf16.msra.mxu1 %v2043_v7 }
  0x1c   :  { %1955 = vmatprep.subr.bf16.mxu0 %v2044_v8  ;;  %2028 = vmatprep.subr.bf16.mxu1 %v2044_v8 }
  0x1f   :  { %1956 = vmatpush3.bf16.msra.mxu0 %v2044_v8  ;;  %2036 = vmatpush3.bf16.msra.mxu1 %v2044_v8 }
  0x22   :  { %1958 = vmatmul.mubr.bf16.vlgmr.msra.gmra.mrb[0].mxu0 %v2046_v10  ;;  %1990 = vmatmul.mubr.bf16.vlgmr.msra.gmra.mrb[0].mxu1 %v2062_v12 }
  0x23   :  { %1961 = vmatprep.mubr.bf16.mxu0 %v2047_v11  ;;  %1993 = vmatprep.mubr.bf16.mxu1 %v2063_v13 }
  0x2a   :  { %1962 = vmatmul.mubr.bf16.gmra.mrb[4].mxu0 %v2048_v14  ;;  %1994 = vmatmul.mubr.bf16.gmra.mrb[4].mxu1 %v2064_v16 }
  0x2b   :  { %1965 = vmatprep.mubr.bf16.mxu0 %v2049_v15  ;;  %1997 = vmatprep.mubr.bf16.mxu1 %v2065_v17 }
  0x32   :  { %1966 = vmatmul.mubr.bf16.gmra.mrb[8].mxu0 %v2050_v18  ;;  %1998 = vmatmul.mubr.bf16.gmra.mrb[8].mxu1 %v2066_v19 }
  0x33   :  { %1969 = vmatprep.mubr.bf16.mxu0 %v2051_v20  ;;  %2001 = vmatprep.mubr.bf16.mxu1 %v2067_v21 }
  0x3a   :  { %1970 = vmatmul.mubr.bf16.gmra.mrb[12].mxu0 %v2052_v22  ;;  %2002 = vmatmul.mubr.bf16.gmra.mrb[12].mxu1 %v2068_v23 }
  0x3b   :  { %1973 = vmatprep.mubr.bf16.mxu0 %v2053_v24  ;;  %2005 = vmatprep.mubr.bf16.mxu1 %v2069_v25 }
  0x42   :  { %1974 = vmatmul.mubr.bf16.gmra.mrb[16].mxu0 %v2054_v26  ;;  %2006 = vmatmul.mubr.bf16.gmra.mrb[16].mxu1 %v2070_v27 }
  0x43   :  { %1977 = vmatprep.mubr.bf16.mxu0 %v2055_v28  ;;  %2009 = vmatprep.mubr.bf16.mxu1 %v2071_v29 }
  0x4a   :  { %1978 = vmatmul.mubr.bf16.gmra.mrb[20].mxu0 %v2056_v30  ;;  %2010 = vmatmul.mubr.bf16.gmra.mrb[20].mxu1 %v2072_v31 }
  0x4b   :  { %1981 = vmatprep.mubr.bf16.mxu0 %v2057_v32  ;;  %2013 = vmatprep.mubr.bf16.mxu1 %v2073_v33 }
  0x52   :  { %1982 = vmatmul.mubr.bf16.gmra.mrb[24].mxu0 %v2058_v34  ;;  %2014 = vmatmul.mubr.bf16.gmra.mrb[24].mxu1 %v2074_v35 }
  0x53   :  { %1985 = vmatprep.mubr.bf16.mxu0 %v2059_v36  ;;  %2017 = vmatprep.mubr.bf16.mxu1 %v2075_v37 }
  0x5a   :  { %1986 = vmatmul.mubr.bf16.gmra.mrb[28].mxu0 %v2060_v38  ;;  %2018 = vmatmul.mubr.bf16.gmra.mrb[28].mxu1 %v2076_v39 }
  0xf5   :  { %v1959_v40 = vpop.f32.mrb[0].mxu0  ;;  %v2217_v41 = vpop.f32.mrb[0].mxu1 }
  0xf6   :  { %v368_v42 = vpop.f32.mrb[1].mxu0  ;;  %v2219_v43 = vpop.f32.mrb[1].mxu1  ;;  %v1402_v55 = vmul.f32 %v1959_v40, %v1959_v40 }
  0xf7   :  { %v1960_v44 = vpop.f32.mrb[2].mxu0  ;;  %v2221_v45 = vpop.f32.mrb[2].mxu1  ;;  %v1400_v46 = vmul.f32 %v368_v42, %v368_v42 }
  0xf8   :  { %v1718_v47 = vpack.c.bf16 %v1960_v44, %v1959_v40  ;;  %v371_v48 = vpop.f32.mrb[3].mxu0  ;;  %v1798_v49 = vpack.c.bf16 %v2221_v45, %v2217_v41  ;;  %v2225_v50 = vpop.f32.mrb[3].mxu1  ;;  %v1403_v58 = vmul.f32 %v1960_v44, %v1960_v44 }
  0xf9   :  { %v1713_v51 = vpack.c.bf16 %v371_v48, %v368_v42  ;;  %v1330_v52 = vadd.f32 %v371_v48, %v368_v42  ;;  %v1401_v53 = vmul.f32 %v371_v48, %v371_v48  ;;  %v1793_v54 = vpack.c.bf16 %v2225_v50, %v2219_v43 }
  0xfa   :  { %1870 = vst [vmem:[%s2513_s2 + $0x8] sm:$0xff] %v1718_v47   ;;  %1886 = vst [vmem:[%s2513_s2 + $0x88] sm:$0xff] %v1798_v49  }
  0xfb   :  { %1714 = vst [vmem:[%s2513_s2] sm:$0xff] %v1713_v51   ;;  %v1331_v56 = vadd.f32 %v1959_v40, %v1330_v52  ;;  %v1464_v57 = vadd.f32 %v1401_v53, %v1400_v46  ;;  %1885 = vst [vmem:[%s2513_s2 + $0x80] sm:$0xff] %v1793_v54  }
  0xfd   :  { %v1465_v59 = vadd.f32 %v1464_v57, %v1402_v55  ;;  %v1963_v60 = vpop.f32.mrb[4].mxu0  ;;  %v1332_v61 = vadd.f32 %v1960_v44, %v1331_v56  ;;  %v2241_v62 = vpop.f32.mrb[4].mxu1 }
  0xfe   :  { %v384_v63 = vpop.f32.mrb[5].mxu0  ;;  %v2243_v0 = vpop.f32.mrb[5].mxu1  ;;  %v1406_v15 = vmul.f32 %v1963_v60, %v1963_v60 }
  0xff   :  { %v1333_v1 = vadd.f32 %v1332_v61, %v384_v63  ;;  %v1404_v2 = vmul.f32 %v384_v63, %v384_v63  ;;  %v1466_v3 = vadd.f32 %v1465_v59, %v1403_v58  ;;  %v1964_v4 = vpop.f32.mrb[6].mxu0  ;;  %v2245_v5 = vpop.f32.mrb[6].mxu1 }
 0x100   :  { %v1728_v6 = vpack.c.bf16 %v1964_v4, %v1963_v60  ;;  %v387_v7 = vpop.f32.mrb[7].mxu0  ;;  %v1808_v8 = vpack.c.bf16 %v2245_v5, %v2241_v62  ;;  %v2249_v9 = vpop.f32.mrb[7].mxu1  ;;  %v1407_v18 = vmul.f32 %v1964_v4, %v1964_v4 }
 0x101   :  { %v1467_v10 = vadd.f32 %v1466_v3, %v1404_v2  ;;  %v1723_v11 = vpack.c.bf16 %v387_v7, %v384_v63  ;;  %v1334_v12 = vadd.f32 %v1333_v1, %v387_v7  ;;  %v1405_v13 = vmul.f32 %v387_v7, %v387_v7 }
 0x102   :  { %1872 = vst [vmem:[%s2513_s2 + $0x18] sm:$0xff] %v1728_v6   ;;  %1888 = vst [vmem:[%s2513_s2 + $0x98] sm:$0xff] %v1808_v8   ;;  %v1803_v14 = vpack.c.bf16 %v2249_v9, %v2243_v0 }
 0x103   :  { %1871 = vst [vmem:[%s2513_s2 + $0x10] sm:$0xff] %v1723_v11   ;;  %v1335_v16 = vadd.f32 %v1963_v60, %v1334_v12  ;;  %v1468_v17 = vadd.f32 %v1467_v10, %v1405_v13 }
 0x104   :  { %1887 = vst [vmem:[%s2513_s2 + $0x90] sm:$0xff] %v1803_v14  }
 0x105   :  { %v1469_v19 = vadd.f32 %v1468_v17, %v1406_v15  ;;  %v1967_v20 = vpop.f32.mrb[8].mxu0  ;;  %v1336_v21 = vadd.f32 %v1964_v4, %v1335_v16  ;;  %v2265_v22 = vpop.f32.mrb[8].mxu1 }
 0x106   :  { %v400_v23 = vpop.f32.mrb[9].mxu0  ;;  %v2267_v24 = vpop.f32.mrb[9].mxu1  ;;  %v1410_v39 = vmul.f32 %v1967_v20, %v1967_v20 }
 0x107   :  { %v1337_v25 = vadd.f32 %v1336_v21, %v400_v23  ;;  %v1408_v26 = vmul.f32 %v400_v23, %v400_v23  ;;  %v1470_v27 = vadd.f32 %v1469_v19, %v1407_v18  ;;  %v1968_v28 = vpop.f32.mrb[10].mxu0  ;;  %v2269_v29 = vpop.f32.mrb[10].mxu1 }
 0x108   :  { %v1738_v30 = vpack.c.bf16 %v1968_v28, %v1967_v20  ;;  %v403_v31 = vpop.f32.mrb[11].mxu0  ;;  %v1818_v32 = vpack.c.bf16 %v2269_v29, %v2265_v22  ;;  %v2273_v33 = vpop.f32.mrb[11].mxu1  ;;  %v1411_v44 = vmul.f32 %v1968_v28, %v1968_v28 }
 0x109   :  { %v1471_v34 = vadd.f32 %v1470_v27, %v1408_v26  ;;  %v1733_v35 = vpack.c.bf16 %v403_v31, %v400_v23  ;;  %v1338_v36 = vadd.f32 %v1337_v25, %v403_v31  ;;  %v1409_v37 = vmul.f32 %v403_v31, %v403_v31 }
 0x10a   :  { %1874 = vst [vmem:[%s2513_s2 + $0x28] sm:$0xff] %v1738_v30   ;;  %1890 = vst [vmem:[%s2513_s2 + $0xa8] sm:$0xff] %v1818_v32   ;;  %v1813_v38 = vpack.c.bf16 %v2273_v33, %v2267_v24 }
 0x10b   :  { %1873 = vst [vmem:[%s2513_s2 + $0x20] sm:$0xff] %v1733_v35   ;;  %v1339_v40 = vadd.f32 %v1967_v20, %v1338_v36  ;;  %v1472_v42 = vadd.f32 %v1471_v34, %v1409_v37 }
 0x10c   :  { %1889 = vst [vmem:[%s2513_s2 + $0xa0] sm:$0xff] %v1813_v38  }
 0x10d   :  { %v1473_v46 = vadd.f32 %v1472_v42, %v1410_v39  ;;  %v1971_v47 = vpop.f32.mrb[12].mxu0  ;;  %v1340_v48 = vadd.f32 %v1968_v28, %v1339_v40  ;;  %v2289_v49 = vpop.f32.mrb[12].mxu1 }
 0x10e   :  { %v416_v51 = vpop.f32.mrb[13].mxu0  ;;  %v2291_v52 = vpop.f32.mrb[13].mxu1  ;;  %v1414_v6 = vmul.f32 %v1971_v47, %v1971_v47 }
 0x10f   :  { %v1341_v53 = vadd.f32 %v1340_v48, %v416_v51  ;;  %v1412_v54 = vmul.f32 %v416_v51, %v416_v51  ;;  %v1474_v55 = vadd.f32 %v1473_v46, %v1411_v44  ;;  %v1972_v56 = vpop.f32.mrb[14].mxu0  ;;  %v2293_v57 = vpop.f32.mrb[14].mxu1 }
 0x110   :  { %v1748_v58 = vpack.c.bf16 %v1972_v56, %v1971_v47  ;;  %v419_v59 = vpop.f32.mrb[15].mxu0  ;;  %v1828_v60 = vpack.c.bf16 %v2293_v57, %v2289_v49  ;;  %v2297_v61 = vpop.f32.mrb[15].mxu1  ;;  %v1415_v10 = vmul.f32 %v1972_v56, %v1972_v56 }
 0x111   :  { %v1475_v63 = vadd.f32 %v1474_v55, %v1412_v54  ;;  %v1743_v1 = vpack.c.bf16 %v419_v59, %v416_v51  ;;  %v1342_v2 = vadd.f32 %v1341_v53, %v419_v59  ;;  %v1413_v3 = vmul.f32 %v419_v59, %v419_v59 }
 0x112   :  { %1876 = vst [vmem:[%s2513_s2 + $0x38] sm:$0xff] %v1748_v58   ;;  %1892 = vst [vmem:[%s2513_s2 + $0xb8] sm:$0xff] %v1828_v60   ;;  %v1823_v4 = vpack.c.bf16 %v2297_v61, %v2291_v52 }
 0x113   :  { %1875 = vst [vmem:[%s2513_s2 + $0x30] sm:$0xff] %v1743_v1   ;;  %v1343_v7 = vadd.f32 %v1971_v47, %v1342_v2  ;;  %v1476_v8 = vadd.f32 %v1475_v63, %v1413_v3 }
 0x114   :  { %1891 = vst [vmem:[%s2513_s2 + $0xb0] sm:$0xff] %v1823_v4  }
 0x115   :  { %v1477_v11 = vadd.f32 %v1476_v8, %v1414_v6  ;;  %v1975_v12 = vpop.f32.mrb[16].mxu0  ;;  %v1344_v13 = vadd.f32 %v1972_v56, %v1343_v7  ;;  %v2313_v14 = vpop.f32.mrb[16].mxu1 }
 0x116   :  { %v432_v15 = vpop.f32.mrb[17].mxu0  ;;  %v2315_v16 = vpop.f32.mrb[17].mxu1  ;;  %v1418_v35 = vmul.f32 %v1975_v12, %v1975_v12 }
 0x117   :  { %v1345_v17 = vadd.f32 %v1344_v13, %v432_v15  ;;  %v1416_v18 = vmul.f32 %v432_v15, %v432_v15  ;;  %v1478_v19 = vadd.f32 %v1477_v11, %v1415_v10  ;;  %v1976_v20 = vpop.f32.mrb[18].mxu0  ;;  %v2317_v21 = vpop.f32.mrb[18].mxu1 }
 0x118   :  { %v1758_v23 = vpack.c.bf16 %v1976_v20, %v1975_v12  ;;  %v435_v25 = vpop.f32.mrb[19].mxu0  ;;  %v1838_v26 = vpack.c.bf16 %v2317_v21, %v2313_v14  ;;  %v2321_v27 = vpop.f32.mrb[19].mxu1  ;;  %v1419_v38 = vmul.f32 %v1976_v20, %v1976_v20 }
 0x119   :  { %v1479_v28 = vadd.f32 %v1478_v19, %v1416_v18  ;;  %v1753_v30 = vpack.c.bf16 %v435_v25, %v432_v15  ;;  %v1346_v31 = vadd.f32 %v1345_v17, %v435_v25  ;;  %v1417_v32 = vmul.f32 %v435_v25, %v435_v25 }
 0x11a   :  { %1878 = vst [vmem:[%s2513_s2 + $0x48] sm:$0xff] %v1758_v23   ;;  %1894 = vst [vmem:[%s2513_s2 + $0xc8] sm:$0xff] %v1838_v26   ;;  %v1833_v34 = vpack.c.bf16 %v2321_v27, %v2315_v16 }
 0x11b   :  { %1877 = vst [vmem:[%s2513_s2 + $0x40] sm:$0xff] %v1753_v30   ;;  %v1347_v36 = vadd.f32 %v1975_v12, %v1346_v31  ;;  %v1480_v37 = vadd.f32 %v1479_v28, %v1417_v32 }
 0x11c   :  { %1893 = vst [vmem:[%s2513_s2 + $0xc0] sm:$0xff] %v1833_v34  }
 0x11d   :  { %v1481_v39 = vadd.f32 %v1480_v37, %v1418_v35  ;;  %v1979_v40 = vpop.f32.mrb[20].mxu0  ;;  %v1348_v42 = vadd.f32 %v1976_v20, %v1347_v36  ;;  %v2337_v44 = vpop.f32.mrb[20].mxu1 }
 0x11e   :  { %v448_v46 = vpop.f32.mrb[21].mxu0  ;;  %v2339_v47 = vpop.f32.mrb[21].mxu1  ;;  %v1422_v6 = vmul.f32 %v1979_v40, %v1979_v40 }
 0x11f   :  { %v1349_v48 = vadd.f32 %v1348_v42, %v448_v46  ;;  %v1420_v51 = vmul.f32 %v448_v46, %v448_v46  ;;  %v1482_v53 = vadd.f32 %v1481_v39, %v1419_v38  ;;  %v1980_v54 = vpop.f32.mrb[22].mxu0  ;;  %v2341_v55 = vpop.f32.mrb[22].mxu1 }
 0x120   :  { %v1768_v56 = vpack.c.bf16 %v1980_v54, %v1979_v40  ;;  %v451_v58 = vpop.f32.mrb[23].mxu0  ;;  %v1848_v59 = vpack.c.bf16 %v2341_v55, %v2337_v44  ;;  %v2345_v60 = vpop.f32.mrb[23].mxu1  ;;  %v1423_v10 = vmul.f32 %v1980_v54, %v1980_v54 }
 0x121   :  { %v1483_v63 = vadd.f32 %v1482_v53, %v1420_v51  ;;  %v1763_v1 = vpack.c.bf16 %v451_v58, %v448_v46  ;;  %v1350_v2 = vadd.f32 %v1349_v48, %v451_v58  ;;  %v1421_v3 = vmul.f32 %v451_v58, %v451_v58 }
 0x122   :  { %1880 = vst [vmem:[%s2513_s2 + $0x58] sm:$0xff] %v1768_v56   ;;  %1896 = vst [vmem:[%s2513_s2 + $0xd8] sm:$0xff] %v1848_v59   ;;  %v1843_v4 = vpack.c.bf16 %v2345_v60, %v2339_v47 }
 0x123   :  { %1879 = vst [vmem:[%s2513_s2 + $0x50] sm:$0xff] %v1763_v1   ;;  %v1351_v7 = vadd.f32 %v1979_v40, %v1350_v2  ;;  %v1484_v8 = vadd.f32 %v1483_v63, %v1421_v3 }
 0x124   :  { %1895 = vst [vmem:[%s2513_s2 + $0xd0] sm:$0xff] %v1843_v4  }
 0x125   :  { %v1485_v11 = vadd.f32 %v1484_v8, %v1422_v6  ;;  %v1983_v12 = vpop.f32.mrb[24].mxu0  ;;  %v1352_v13 = vadd.f32 %v1980_v54, %v1351_v7  ;;  %v2361_v15 = vpop.f32.mrb[24].mxu1 }
 0x126   :  { %v464_v17 = vpop.f32.mrb[25].mxu0  ;;  %v2363_v18 = vpop.f32.mrb[25].mxu1  ;;  %v1426_v39 = vmul.f32 %v1983_v12, %v1983_v12 }
 0x127   :  { %v1353_v19 = vadd.f32 %v1352_v13, %v464_v17  ;;  %v1424_v20 = vmul.f32 %v464_v17, %v464_v17  ;;  %v1486_v23 = vadd.f32 %v1485_v11, %v1423_v10  ;;  %v1984_v25 = vpop.f32.mrb[26].mxu0  ;;  %v2365_v26 = vpop.f32.mrb[26].mxu1 }
 0x128   :  { %v1778_v28 = vpack.c.bf16 %v1984_v25, %v1983_v12  ;;  %v467_v30 = vpop.f32.mrb[27].mxu0  ;;  %v1858_v31 = vpack.c.bf16 %v2365_v26, %v2361_v15  ;;  %v2369_v32 = vpop.f32.mrb[27].mxu1  ;;  %v1427_v46 = vmul.f32 %v1984_v25, %v1984_v25 }
 0x129   :  { %v1487_v34 = vadd.f32 %v1486_v23, %v1424_v20  ;;  %v1773_v35 = vpack.c.bf16 %v467_v30, %v464_v17  ;;  %v1354_v36 = vadd.f32 %v1353_v19, %v467_v30  ;;  %v1425_v37 = vmul.f32 %v467_v30, %v467_v30 }
 0x12a   :  { %1882 = vst [vmem:[%s2513_s2 + $0x68] sm:$0xff] %v1778_v28   ;;  %1898 = vst [vmem:[%s2513_s2 + $0xe8] sm:$0xff] %v1858_v31   ;;  %v1853_v38 = vpack.c.bf16 %v2369_v32, %v2363_v18  ;;  %v1432_v31 = vmul.f32 %v2219_v43, %v2219_v43 }
 0x12b   :  { %1881 = vst [vmem:[%s2513_s2 + $0x60] sm:$0xff] %v1773_v35   ;;  %v1355_v40 = vadd.f32 %v1983_v12, %v1354_v36  ;;  %v1488_v42 = vadd.f32 %v1487_v34, %v1425_v37 }
 0x12c   :  { %1897 = vst [vmem:[%s2513_s2 + $0xe0] sm:$0xff] %v1853_v38   ;;  %v1433_v38 = vmul.f32 %v2225_v50, %v2225_v50 }
 0x12d   :  { %v1489_v48 = vadd.f32 %v1488_v42, %v1426_v39  ;;  %v1987_v51 = vpop.f32.mrb[28].mxu0  ;;  %v1356_v53 = vadd.f32 %v1984_v25, %v1355_v40  ;;  %v2385_v54 = vpop.f32.mrb[28].mxu1  ;;  %v1434_v39 = vmul.f32 %v2217_v41, %v2217_v41 }
 0x12e   :  { %v480_v56 = vpop.f32.mrb[29].mxu0  ;;  %v2387_v58 = vpop.f32.mrb[29].mxu1  ;;  %v1430_v19 = vmul.f32 %v1987_v51, %v1987_v51 }
 0x12f   :  { %v1357_v59 = vadd.f32 %v1356_v53, %v480_v56  ;;  %v1428_v63 = vmul.f32 %v480_v56, %v480_v56  ;;  %v1490_v1 = vadd.f32 %v1489_v48, %v1427_v46  ;;  %v1988_v2 = vpop.f32.mrb[30].mxu0  ;;  %v2389_v3 = vpop.f32.mrb[30].mxu1  ;;  %v1435_v46 = vmul.f32 %v2221_v45, %v2221_v45 }
 0x130   :  { %v1788_v4 = vpack.c.bf16 %v1988_v2, %v1987_v51  ;;  %v483_v6 = vpop.f32.mrb[31].mxu0  ;;  %v1868_v7 = vpack.c.bf16 %v2389_v3, %v2385_v54  ;;  %v2393_v8 = vpop.f32.mrb[31].mxu1  ;;  %v1431_v25 = vmul.f32 %v1988_v2, %v1988_v2 }
 0x131   :  { %v1491_v10 = vadd.f32 %v1490_v1, %v1428_v63  ;;  %v1783_v11 = vpack.c.bf16 %v483_v6, %v480_v56  ;;  %v1358_v12 = vadd.f32 %v1357_v59, %v483_v6  ;;  %v1429_v13 = vmul.f32 %v483_v6, %v483_v6 }
 0x132   :  { %1884 = vst [vmem:[%s2513_s2 + $0x78] sm:$0xff] %v1788_v4   ;;  %1900 = vst [vmem:[%s2513_s2 + $0xf8] sm:$0xff] %v1868_v7   ;;  %v1863_v17 = vpack.c.bf16 %v2393_v8, %v2387_v58  ;;  %v1437_v63 = vmul.f32 %v2249_v9, %v2249_v9 }
 0x133   :  { %1883 = vst [vmem:[%s2513_s2 + $0x70] sm:$0xff] %v1783_v11   ;;  %v1359_v20 = vadd.f32 %v1987_v51, %v1358_v12  ;;  %v1492_v23 = vadd.f32 %v1491_v10, %v1429_v13  ;;  %v1441_v12 = vmul.f32 %v2273_v33, %v2273_v33 }
 0x134   :  { %1899 = vst [vmem:[%s2513_s2 + $0xf0] sm:$0xff] %v1863_v17  }
 0x135   :  { %v1493_v28 = vadd.f32 %v1492_v23, %v1430_v19  ;;  %v1360_v30 = vadd.f32 %v1988_v2, %v1359_v20 }
 0x137   :  { %v1361_v34 = vadd.f32 %v1360_v30, %v2219_v43  ;;  %v1494_v35 = vadd.f32 %v1493_v28, %v1431_v25  ;;  %v1436_v43 = vmul.f32 %v2243_v0, %v2243_v0  ;;  %v1445_v30 = vmul.f32 %v2297_v61, %v2297_v61 }
 0x139   :  { %v1495_v36 = vadd.f32 %v1494_v35, %v1432_v31  ;;  %v1362_v37 = vadd.f32 %v1361_v34, %v2225_v50 }
 0x13b   :  { %v1363_v40 = vadd.f32 %v2217_v41, %v1362_v37  ;;  %v1496_v42 = vadd.f32 %v1495_v36, %v1433_v38  ;;  %v1438_v41 = vmul.f32 %v2241_v62, %v2241_v62 }
 0x13d   :  { %v1497_v48 = vadd.f32 %v1496_v42, %v1434_v39  ;;  %v1364_v51 = vadd.f32 %v2221_v45, %v1363_v40  ;;  %v1439_v45 = vmul.f32 %v2245_v5, %v2245_v5  ;;  %v1449_v40 = vmul.f32 %v2321_v27, %v2321_v27 }
 0x13f   :  { %v1365_v53 = vadd.f32 %v1364_v51, %v2243_v0  ;;  %v1498_v56 = vadd.f32 %v1497_v48, %v1435_v46  ;;  %v1440_v0 = vmul.f32 %v2267_v24, %v2267_v24 }
 0x141   :  { %v1499_v59 = vadd.f32 %v1498_v56, %v1436_v43  ;;  %v1366_v50 = vadd.f32 %v1365_v53, %v2249_v9 }
 0x143   :  { %v1367_v1 = vadd.f32 %v2241_v62, %v1366_v50  ;;  %v1500_v2 = vadd.f32 %v1499_v59, %v1437_v63  ;;  %v1442_v62 = vmul.f32 %v2265_v22, %v2265_v22  ;;  %v1453_v59 = vmul.f32 %v2345_v60, %v2345_v60 }
 0x145   :  { %v1501_v4 = vadd.f32 %v1500_v2, %v1438_v41  ;;  %v1368_v6 = vadd.f32 %v2245_v5, %v1367_v1  ;;  %v1443_v5 = vmul.f32 %v2269_v29, %v2269_v29 }
 0x147   :  { %v1369_v7 = vadd.f32 %v1368_v6, %v2267_v24  ;;  %v1502_v10 = vadd.f32 %v1501_v4, %v1439_v45  ;;  %v1444_v24 = vmul.f32 %v2291_v52, %v2291_v52  ;;  %v1457_v6 = vmul.f32 %v2369_v32, %v2369_v32 }
 0x149   :  { %v1503_v11 = vadd.f32 %v1502_v10, %v1440_v0  ;;  %v1370_v9 = vadd.f32 %v1369_v7, %v2273_v33 }
 0x14b   :  { %v1371_v13 = vadd.f32 %v2265_v22, %v1370_v9  ;;  %v1504_v17 = vadd.f32 %v1503_v11, %v1441_v12  ;;  %v1446_v22 = vmul.f32 %v2289_v49, %v2289_v49 }
 0x14d   :  { %v1505_v19 = vadd.f32 %v1504_v17, %v1442_v62  ;;  %v1372_v20 = vadd.f32 %v2269_v29, %v1371_v13  ;;  %v1447_v29 = vmul.f32 %v2293_v57, %v2293_v57  ;;  %v1461_v13 = vmul.f32 %v2393_v8, %v2393_v8 }
 0x14f   :  { %v1373_v23 = vadd.f32 %v1372_v20, %v2291_v52  ;;  %v1506_v25 = vadd.f32 %v1505_v19, %v1443_v5  ;;  %v1448_v52 = vmul.f32 %v2315_v16, %v2315_v16 }
 0x151   :  { %v1507_v28 = vadd.f32 %v1506_v25, %v1444_v24  ;;  %v1374_v33 = vadd.f32 %v1373_v23, %v2297_v61 }
 0x153   :  { %v1375_v31 = vadd.f32 %v2289_v49, %v1374_v33  ;;  %v1508_v34 = vadd.f32 %v1507_v28, %v1445_v30  ;;  %v1450_v49 = vmul.f32 %v2313_v14, %v2313_v14 }
 0x155   :  { %v1509_v35 = vadd.f32 %v1508_v34, %v1446_v22  ;;  %v1376_v36 = vadd.f32 %v2293_v57, %v1375_v31  ;;  %v1451_v57 = vmul.f32 %v2317_v21, %v2317_v21 }
 0x157   :  { %v1377_v37 = vadd.f32 %v1376_v36, %v2315_v16  ;;  %v1510_v38 = vadd.f32 %v1509_v35, %v1447_v29  ;;  %v1452_v16 = vmul.f32 %v2339_v47, %v2339_v47 }
 0x159   :  { %v1511_v39 = vadd.f32 %v1510_v38, %v1448_v52  ;;  %v1378_v61 = vadd.f32 %v1377_v37, %v2321_v27 }
 0x15b   :  { %v1379_v42 = vadd.f32 %v2313_v14, %v1378_v61  ;;  %v1512_v46 = vadd.f32 %v1511_v39, %v1449_v40  ;;  %v1454_v14 = vmul.f32 %v2337_v44, %v2337_v44 }
 0x15d   :  { %v1513_v48 = vadd.f32 %v1512_v46, %v1450_v49  ;;  %v1380_v51 = vadd.f32 %v2317_v21, %v1379_v42  ;;  %v1455_v21 = vmul.f32 %v2341_v55, %v2341_v55 }
 0x15f   :  { %v1381_v43 = vadd.f32 %v1380_v51, %v2339_v47  ;;  %v1514_v53 = vadd.f32 %v1513_v48, %v1451_v57  ;;  %v1456_v47 = vmul.f32 %v2363_v18, %v2363_v18 }
 0x161   :  { %v1515_v56 = vadd.f32 %v1514_v53, %v1452_v16  ;;  %v1382_v27 = vadd.f32 %v1381_v43, %v2345_v60 }
 0x163   :  { %v1383_v50 = vadd.f32 %v2337_v44, %v1382_v27  ;;  %v1516_v63 = vadd.f32 %v1515_v56, %v1453_v59  ;;  %v1458_v44 = vmul.f32 %v2361_v15, %v2361_v15 }
 0x165   :  { %v1517_v41 = vadd.f32 %v1516_v63, %v1454_v14  ;;  %v1384_v1 = vadd.f32 %v2341_v55, %v1383_v50  ;;  %v1459_v55 = vmul.f32 %v2365_v26, %v2365_v26 }
 0x167   :  { %v1385_v2 = vadd.f32 %v1384_v1, %v2363_v18  ;;  %v1518_v45 = vadd.f32 %v1517_v41, %v1455_v21  ;;  %v1460_v18 = vmul.f32 %v2387_v58, %v2387_v58 }
 0x169   :  { %v1519_v4 = vadd.f32 %v1518_v45, %v1456_v47  ;;  %v1386_v60 = vadd.f32 %v1385_v2, %v2369_v32 }
 0x16b   :  { %v1387_v0 = vadd.f32 %v2361_v15, %v1386_v60  ;;  %v1520_v7 = vadd.f32 %v1519_v4, %v1457_v6  ;;  %v1462_v15 = vmul.f32 %v2385_v54, %v2385_v54 }
 0x16d   :  { %v1521_v10 = vadd.f32 %v1520_v7, %v1458_v44  ;;  %v1388_v11 = vadd.f32 %v2365_v26, %v1387_v0  ;;  %v1463_v26 = vmul.f32 %v2389_v3, %v2389_v3 }
 0x16f   :  { %v1389_v9 = vadd.f32 %v1388_v11, %v2387_v58  ;;  %v1522_v12 = vadd.f32 %v1521_v10, %v1459_v55 }
 0x171   :  { %v1523_v62 = vadd.f32 %v1522_v12, %v1460_v18  ;;  %v1390_v32 = vadd.f32 %v1389_v9, %v2393_v8 }
 0x173   :  { %v1391_v17 = vadd.f32 %v2385_v54, %v1390_v32  ;;  %v1524_v5 = vadd.f32 %v1523_v62, %v1461_v13 }
 0x175   :  { %v1392_v19 = vadd.f32 %v2389_v3, %v1391_v17  ;;  %v1525_v20 = vadd.f32 %v1524_v5, %v1462_v15 }
 0x177   :  { %v1393_v58 = vrot.slane %v1392_v19, 4  ;;  %v1526_v24 = vadd.f32 %v1525_v20, %v1463_v26 }
 0x179   :  { %v1394_v23 = vadd.f32 %v1393_v58, %v1392_v19  ;;  %v1527_v25 = vrot.slane %v1526_v24, 4 }
 0x17b   :  { %v1395_v28 = vrot.slane %v1394_v23, 2  ;;  %v1528_v33 = vadd.f32 %v1527_v25, %v1526_v24 }
 0x17d   :  { %v1396_v30 = vadd.f32 %v1395_v28, %v1394_v23  ;;  %v1529_v8 = vrot.slane %v1528_v33, 2 }
 0x17f   :  { %v1397_v22 = vrot.slane %v1396_v30, 1  ;;  %v1530_v31 = vadd.f32 %v1529_v8, %v1528_v33 }
 0x181   :  { %v1398_v34 = vadd.f32 %v1397_v22, %v1396_v30  ;;  %v1531_v29 = vrot.slane %v1530_v31, 1 }
 0x183   :  { %1399 = vst [vmem:[%s2514_s3] sm:$0x1] %v1398_v34  ;;  %v1532_v54 = vadd.f32 %v1531_v29, %v1530_v31 }
 0x185   :  { %1533 = vst [vmem:[%s2514_s3 + $0x1] sm:$0x1] %v1532_v54 }

// kernel: bottleneck_forward.4
= control target key start
LH: loop header
LB: loop body
LE: loop exit
PB: predicated region body
PF: predicated region fallthrough
CT: control target
= control target key end

     0   :  { %s2992_s15 = smov 0   ;;  %s4241_s0 = inlined_call_operand.vmem [shape: bf16[2,16,16,128], index: 0, kind: input, shape index: {}]   ;;  %s4242_s1 = inlined_call_operand.vmem [shape: f32[3,128], index: 1, kind: input, shape index: {}]   ;;  %s4243_s2 = inlined_call_operand.vmem [shape: f32[9,128], index: 2, kind: input, shape index: {}]   ;;  %s4244_s3 = inlined_call_operand.vmem [shape: bf16[2,16,16,128], index: 3, kind: output, shape index: {0}]   ;;  %s4245_s4 = inlined_call_operand.vmem [shape: f32[2,2,128], index: 4, kind: output, shape index: {1}]  }
   0x1 LB: > { %s2693_s16 = sadd.s32 4294967295, %s2964_s15   ;;  %p2697_p0 = scmp.ge.s32.totalorder %s2964_s15, 1  ;;  %s2964_s15 = sphi %s2992_s15, %s15_s15  }
   0x2   : > { %p165_p1 = scmp.lt.s32.totalorder %s2964_s15, 3 }
   0x4   : > { %p166_p2 = pnand %p2697_p0, %p165_p1 }
   0x5   : > { %p3002_p3 = scmp.lt.s32.totalorder (!%p166_p2), %s2693_s16, 1  ;;  %v274_v0 = vlaneseq (!%p166_p2)  ;;  %v2966_v1 = vmov (!%p166_p2), 0.0   ;;  %v209_v3 = vld [vmem:[%s4242_s1] sm:$0x7] (!%p166_p2)  ;;  %vm740_vm8 = vcmask (!%p166_p2), 1046528   ;;  %vm985_vm13 = vcmask (!%p166_p2), 1045504  }
   0x6   : > { %169 = sbr.rel (%p166_p2) target bundleno = 393 (0x189), region = 32  ;;  %446 = vst [vmem:[#allocation2] sm:$0xff] (!%p166_p2), %v2966_v1  ;;  %447 = vst [vmem:[#allocation2 + $0x8] sm:$0xff] (!%p166_p2), %v2966_v1  ;;  %v3024_v7 = vld [vmem:[%s4243_s2] sm:$0xff] (!%p166_p2) }
   0x7   : > { %448 = vst [vmem:[#allocation2 + $0x10] sm:$0x3] (!%p166_p2), %v2966_v1  ;;  %450 = vst [vmem:[#allocation2 + $0x198] sm:$0xff] (!%p166_p2), %v2966_v1  ;;  %v3012_v2 = vshrl.u32 (!%p166_p2), %v274_v0, 7 }
   0x8   : > { %452 = vst [vmem:[#allocation2 + $0x1a8] sm:$0x3] (!%p166_p2), %v2966_v1  ;;  %454 = vst [vmem:[#allocation2 + $0x18] sm:$0x1] (!%p166_p2), %v2966_v1 }
   0x9   : > { %455 = vst [vmem:[#allocation2 + $0x30] sm:$0x1] (!%p166_p2), %v2966_v1  ;;  %456 = vst [vmem:[#allocation2 + $0x48] sm:$0x1] (!%p166_p2), %v2966_v1  ;;  %v276_v4 = vsub.s32 (!%p166_p2), 0, %v3012_v2  ;;  %v312_v5 = vsub.s32 (!%p166_p2), 1, %v3012_v2 }
   0xa   : > { %457 = vst [vmem:[#allocation2 + $0x60] sm:$0x1] (!%p166_p2), %v2966_v1  ;;  %458 = vst [vmem:[#allocation2 + $0x78] sm:$0x1] (!%p166_p2), %v2966_v1  ;;  %v380_v6 = vsub.s32 (!%p166_p2), 2, %v3012_v2  ;;  %v1248_v8 = vsub.s32 (!%p166_p2), 4, %v3012_v2 }
   0xb   : > { %459 = vst [vmem:[#allocation2 + $0x90] sm:$0x1] (!%p166_p2), %v2966_v1  ;;  %460 = vst [vmem:[#allocation2 + $0xa8] sm:$0x1] (!%p166_p2), %v2966_v1  ;;  %v1492_v9 = vsub.s32 (!%p166_p2), 5, %v3012_v2  ;;  %v1853_v10 = vsub.s32 (!%p166_p2), 7, %v3012_v2  ;;  %v3039_v14 = vrot.slane (!%p166_p2), %v209_v3, %v276_v4  ;;  %v3041_v15 = vrot.slane (!%p166_p2), %v209_v3, %v312_v5 }
   0xc   : > { %461 = vst [vmem:[#allocation2 + $0xc0] sm:$0x1] (!%p166_p2), %v2966_v1  ;;  %462 = vst [vmem:[#allocation2 + $0xd8] sm:$0x1] (!%p166_p2), %v2966_v1  ;;  %v1180_v11 = vsub.s32 (!%p166_p2), 3, %v3012_v2  ;;  %v1785_v12 = vsub.s32 (!%p166_p2), 6, %v3012_v2  ;;  %v3043_v16 = vrot.slane (!%p166_p2), %v209_v3, %v380_v6  ;;  %v3046_v17 = vrot.slane (!%p166_p2), %v3024_v7, %v276_v4 }
   0xd   : > { %463 = vst [vmem:[#allocation2 + $0xf0] sm:$0x1] %v2966_v1  ;;  %464 = vst [vmem:[#allocation2 + $0x108] sm:$0x1] %v2966_v1  ;;  %s4248_s16 = smov (!%p3002_p3, %s2693_s16), 1  ;;  %v3051_v21 = vrot.slane %v3024_v7, %v312_v5  ;;  %v3054_v22 = vrot.slane %v3024_v7, %v380_v6 }
   0xe   : > { %465 = vst [vmem:[#allocation2 + $0x120] sm:$0x1] %v2966_v1  ;;  %466 = vst [vmem:[#allocation2 + $0x138] sm:$0x1] %v2966_v1  ;;  %s2738_s20 = sshll.u32 %s4248_s16, 7  ;;  %s2702_s9 = sshll.u32 %s4248_s16, 1 }
   0xf   : > { %467 = vst [vmem:[#allocation2 + $0x150] sm:$0x1] %v2966_v1  ;;  %468 = vst [vmem:[#allocation2 + $0x168] sm:$0x1] %v2966_v1  ;;  %s3032_s25 = scalar_lea.vmem %s4241_s0, %s2738_s20  ;;  %s3211_s30 = scalar_lea.vmem %s4244_s3, %s2738_s20 }
  0x10   : > { %469 = vst [vmem:[#allocation2 + $0x180] sm:$0x1] %v2966_v1  ;;  %472 = vst [vmem:[#allocation2 + $0x29] sm:$0x1] %v2966_v1  ;;  %v2773_v13 = vld [vmem:[%s3032_s25] sm:$0xff]   ;;  %v2916_v18 = vld [vmem:[%s3032_s25 + $0x8] sm:$0xff]   ;;  %s208_s12 = scalar_lea.vmem %s4245_s4, %s2702_s9 }
  0x11   : > { %473 = vst [vmem:[#allocation2 + $0x41] sm:$0x1] %v2966_v1  ;;  %474 = vst [vmem:[#allocation2 + $0x59] sm:$0x1] %v2966_v1  ;;  %v2917_v19 = vld [vmem:[%s3032_s25 + $0x10] sm:$0xff]   ;;  %v2774_v20 = vunpack.c.l.bf16 %v2773_v13  ;;  %v2775_v23 = vunpack.c.h.bf16 %v2773_v13  ;;  %v2918_v24 = vld [vmem:[%s3032_s25 + $0x18] sm:$0xff]   ;;  %v2778_v25 = vunpack.c.l.bf16 %v2916_v18  ;;  %v2779_v26 = vunpack.c.h.bf16 %v2916_v18 }
  0x12   : > { %475 = vst [vmem:[#allocation2 + $0x71] sm:$0x1] %v2966_v1  ;;  %476 = vst [vmem:[#allocation2 + $0x89] sm:$0x1] %v2966_v1  ;;  %v2782_v27 = vunpack.c.l.bf16 %v2917_v19  ;;  %v2783_v28 = vunpack.c.h.bf16 %v2917_v19  ;;  %v2786_v31 = vunpack.c.l.bf16 %v2918_v24  ;;  %v2787_v32 = vunpack.c.h.bf16 %v2918_v24  ;;  %v2919_v49 = vld [vmem:[%s3032_s25 + $0x20] sm:$0xff]   ;;  %v2920_v53 = vld [vmem:[%s3032_s25 + $0x28] sm:$0xff]  }
  0x13   : > { %477 = vst [vmem:[#allocation2 + $0xa1] sm:$0x1] %v2966_v1  ;;  %478 = vst [vmem:[#allocation2 + $0xb9] sm:$0x1] %v2966_v1  ;;  %v278_v29 = vmul.f32 %v2774_v20, %v3039_v14  ;;  %v279_v30 = vmul.f32 %v2775_v23, %v3039_v14  ;;  %v280_v33 = vmul.f32 %v2778_v25, %v3039_v14  ;;  %v2790_v60 = vunpack.c.l.bf16 %v2919_v49  ;;  %v2922_v19 = vld [vmem:[%s3032_s25 + $0x38] sm:$0xff]  }
  0x14   : > { %479 = vst [vmem:[#allocation2 + $0xd1] sm:$0x1] %v2966_v1  ;;  %480 = vst [vmem:[#allocation2 + $0xe9] sm:$0x1] %v2966_v1  ;;  %v281_v34 = vmul.f32 %v2779_v26, %v3039_v14  ;;  %v282_v35 = vmul.f32 %v2782_v27, %v3039_v14  ;;  %v283_v36 = vmul.f32 %v2783_v28, %v3039_v14  ;;  %v2791_v62 = vunpack.c.h.bf16 %v2919_v49 }
  0x15   : > { %481 = vst [vmem:[#allocation2 + $0x101] sm:$0x1] %v2966_v1  ;;  %482 = vst [vmem:[#allocation2 + $0x119] sm:$0x1] %v2966_v1  ;;  %v314_v37 = vadd.f32 %v3041_v15, %v278_v29  ;;  %v315_v38 = vadd.f32 %v3041_v15, %v279_v30  ;;  %v284_v39 = vmul.f32 %v2786_v31, %v3039_v14  ;;  %v2794_v63 = vunpack.c.l.bf16 %v2920_v53 }
  0x16   : > { %483 = vst [vmem:[#allocation2 + $0x131] sm:$0x1] %v2966_v1  ;;  %484 = vst [vmem:[#allocation2 + $0x149] sm:$0x1] %v2966_v1  ;;  %v285_v40 = vmul.f32 %v2787_v32, %v3039_v14  ;;  %v316_v41 = vadd.f32 %v3041_v15, %v280_v33  ;;  %v317_v42 = vadd.f32 %v3041_v15, %v281_v34  ;;  %v2795_v0 = vunpack.c.h.bf16 %v2920_v53 }
  0x17   : > { %485 = vst [vmem:[#allocation2 + $0x161] sm:$0x1] %v2966_v1  ;;  %486 = vst [vmem:[#allocation2 + $0x179] sm:$0x1] %v2966_v1  ;;  %v318_v43 = vadd.f32 %v3041_v15, %v282_v35  ;;  %v319_v44 = vadd.f32 %v3041_v15, %v283_v36  ;;  %vm346_vm0 = vcmp.ge.f32.partialorder %v314_v37, 0.0  ;;  %v382_v45 = vmul.f32 %v3043_v16, %v314_v37 }
  0x18   : > { %487 = vst [vmem:[#allocation2 + $0x191] sm:$0x1] %v2966_v1  ;;  %453 = vst [vmem:[#allocation2] sm:$0x1] %v2966_v1  ;;  %vm347_vm1 = vcmp.ge.f32.partialorder %v315_v38, 0.0  ;;  %v383_v46 = vmul.f32 %v3043_v16, %v315_v38  ;;  %vm348_vm2 = vcmp.ge.f32.partialorder %v316_v41, 0.0  ;;  %v384_v47 = vmul.f32 %v3043_v16, %v316_v41 }
  0x19   : > { %470 = vst [vmem:[#allocation2 + $0x198] sm:$0x1] %v2966_v1  ;;  %471 = vst [vmem:[#allocation2 + $0x11] sm:$0x1] %v2966_v1  ;;  %vm349_vm3 = vcmp.ge.f32.partialorder %v317_v42, 0.0  ;;  %v385_v48 = vmul.f32 %v3043_v16, %v317_v42  ;;  %v414_v50 = vsel %vm346_vm0, %v314_v37, %v382_v45  ;;  %vm350_vm4 = vcmp.ge.f32.partialorder %v318_v43, 0.0 }
  0x1a   : > { %488 = vst [vmem:[#allocation2 + $0x1a9] sm:$0x1] %v2966_v1  ;;  %v415_v51 = vsel %vm347_vm1, %v315_v38, %v383_v46  ;;  %v386_v52 = vmul.f32 %v3043_v16, %v318_v43  ;;  %490 = vst [vmem:[#allocation2 + $0x19] sm:$0xff] %v414_v50  ;;  %v416_v54 = vsel %vm348_vm2, %v316_v41, %v384_v47  ;;  %vm351_vm5 = vcmp.ge.f32.partialorder %v319_v44, 0.0  ;;  %v2921_v1 = vld [vmem:[%s3032_s25 + $0x30] sm:$0xff]  }
  0x1b   : > { %491 = vst [vmem:[#allocation2 + $0x21] sm:$0xff] %v415_v51  ;;  %v417_v55 = vsel %vm349_vm3, %v317_v42, %v385_v48  ;;  %v387_v56 = vmul.f32 %v3043_v16, %v319_v44  ;;  %492 = vst [vmem:[#allocation2 + $0x31] sm:$0xff] %v416_v54  ;;  %v320_v58 = vadd.f32 %v3041_v15, %v284_v39  ;;  %v2798_v24 = vunpack.c.l.bf16 %v2921_v1 }
  0x1c   : > { %493 = vst [vmem:[#allocation2 + $0x39] sm:$0xff] %v417_v55  ;;  %v418_v57 = vsel %vm350_vm4, %v318_v43, %v386_v52  ;;  %v321_v59 = vadd.f32 %v3041_v15, %v285_v40  ;;  %v286_v5 = vmul.f32 %v2790_v60, %v3039_v14  ;;  %v287_v6 = vmul.f32 %v2791_v62, %v3039_v14 }
  0x1d   : > { %494 = vst [vmem:[#allocation2 + $0x49] sm:$0xff] %v418_v57  ;;  %v419_v61 = vsel %vm351_vm5, %v319_v44, %v387_v56  ;;  %vm352_vm6 = vcmp.ge.f32.partialorder %v320_v58, 0.0  ;;  %v388_v3 = vmul.f32 %v3043_v16, %v320_v58  ;;  %v288_v13 = vmul.f32 %v2794_v63, %v3039_v14 }
  0x1e   : > { %495 = vst [vmem:[#allocation2 + $0x51] sm:$0xff] %v419_v61  ;;  %vm353_vm7 = vcmp.ge.f32.partialorder %v321_v59, 0.0  ;;  %v389_v4 = vmul.f32 %v3043_v16, %v321_v59  ;;  %v289_v18 = vmul.f32 %v2795_v0, %v3039_v14  ;;  %v2799_v25 = vunpack.c.h.bf16 %v2921_v1 }
  0x1f   : > { %v420_v20 = vsel %vm352_vm6, %v320_v58, %v388_v3  ;;  %v322_v26 = vadd.f32 %v3041_v15, %v286_v5  ;;  %v323_v27 = vadd.f32 %v3041_v15, %v287_v6  ;;  %v324_v28 = vadd.f32 %v3041_v15, %v288_v13  ;;  %v524_v46 = vld [vmem:[#allocation2] sm:$0xff] }
  0x20   : > { %v421_v23 = vsel %vm353_vm7, %v321_v59, %v389_v4  ;;  %496 = vst [vmem:[#allocation2 + $0x61] sm:$0xff] %v420_v20  ;;  %v325_v29 = vadd.f32 %v3041_v15, %v289_v18  ;;  %v290_v30 = vmul.f32 %v2798_v24, %v3039_v14  ;;  %v291_v31 = vmul.f32 %v2799_v25, %v3039_v14  ;;  %v526_v51 = vld [vmem:[#allocation2 + $0x10] sm:$0x3] }
  0x21   : > { %497 = vst [vmem:[#allocation2 + $0x69] sm:$0xff] %v421_v23  ;;  %v2802_v32 = vunpack.c.l.bf16 %v2922_v19  ;;  %v2803_v33 = vunpack.c.h.bf16 %v2922_v19  ;;  %vm354_vm9 = vcmp.ge.f32.partialorder %v322_v26, 0.0  ;;  %v390_v34 = vmul.f32 %v3043_v16, %v322_v26  ;;  %v3117_v5 = vld [vmem:[#allocation2 + $0x18] sm:$0xff] }
  0x22   : > { %vm355_vm10 = vcmp.ge.f32.partialorder %v323_v27, 0.0  ;;  %v391_v35 = vmul.f32 %v3043_v16, %v323_v27  ;;  %vm356_vm11 = vcmp.ge.f32.partialorder %v324_v28, 0.0  ;;  %v392_v36 = vmul.f32 %v3043_v16, %v324_v28  ;;  %v3119_v6 = vld [vmem:[#allocation2 + $0x20] sm:$0xff] }
  0x23   : > { %vm357_vm12 = vcmp.ge.f32.partialorder %v325_v29, 0.0  ;;  %v393_v37 = vmul.f32 %v3043_v16, %v325_v29  ;;  %v422_v38 = vsel %vm354_vm9, %v322_v26, %v390_v34  ;;  %v326_v40 = vadd.f32 %v3041_v15, %v290_v30  ;;  %v1132_v26 = vld [vmem:[#allocation2 + $0x28] sm:$0x3] }
  0x24   : > { %v423_v39 = vsel %vm355_vm10, %v323_v27, %v391_v35  ;;  %v327_v41 = vadd.f32 %v3041_v15, %v291_v31  ;;  %498 = vst [vmem:[#allocation2 + $0x79] sm:$0xff] %v422_v38  ;;  %v424_v42 = vsel %vm356_vm11, %v324_v28, %v392_v36  ;;  %v292_v44 = vmul.f32 %v2802_v32, %v3039_v14 }
  0x25   : > { %499 = vst [vmem:[#allocation2 + $0x81] sm:$0xff] %v423_v39  ;;  %v425_v43 = vsel %vm357_vm12, %v325_v29, %v393_v37  ;;  %v293_v45 = vmul.f32 %v2803_v33, %v3039_v14  ;;  %500 = vst [vmem:[#allocation2 + $0x91] sm:$0xff] %v424_v42  ;;  %vm358_vm14 = vcmp.ge.f32.partialorder %v326_v40, 0.0  ;;  %v394_v47 = vmul.f32 %v3043_v16, %v326_v40 }
  0x26   : > { %501 = vst [vmem:[#allocation2 + $0x99] sm:$0xff] %v425_v43  ;;  %vm359_vm15 = vcmp.ge.f32.partialorder %v327_v41, 0.0  ;;  %v395_v48 = vmul.f32 %v3043_v16, %v327_v41  ;;  %v328_v49 = vadd.f32 %v3041_v15, %v292_v44  ;;  %v576_v52 = vmul.f32 %v3046_v17, %v524_v46 }
  0x27   : > { %v329_v50 = vadd.f32 %v3041_v15, %v293_v45  ;;  %v577_v53 = vmul.f32 0.0, %v3046_v17  ;;  %v426_v54 = vsel %vm358_vm14, %v326_v40, %v394_v47  ;;  %v644_v56 = vmul.f32 %v3051_v21, %v524_v46 }
  0x28   : > { %v427_v55 = vsel %vm359_vm15, %v327_v41, %v395_v48  ;;  %v645_v57 = vmul.f32 0.0, %v3051_v21  ;;  %502 = vst [vmem:[#allocation2 + $0xa9] sm:$0xff] %v426_v54  ;;  %vm360_vm0 = vcmp.ge.f32.partialorder %v328_v49, 0.0  ;;  %v396_v58 = vmul.f32 %v3043_v16, %v328_v49 }
  0x29   : > { %503 = vst [vmem:[#allocation2 + $0xb1] sm:$0xff] %v427_v55  ;;  %vm361_vm1 = vcmp.ge.f32.partialorder %v329_v50, 0.0  ;;  %v397_v59 = vmul.f32 %v3043_v16, %v329_v50  ;;  %v646_v60 = vmul.f32 %v3051_v21, %v526_v51  ;;  %v741_v61 = vrot.slane %v644_v56, 1 }
  0x2a   : > { %v742_v62 = vrot.slane %v645_v57, 1  ;;  %v889_v63 = vmul.f32 %v3054_v22, %v524_v46  ;;  %v428_v0 = vsel %vm360_vm0, %v328_v49, %v396_v58  ;;  %v890_v3 = vmul.f32 0.0, %v3054_v22  ;;  %v3159_v49 = vld [vmem:[#allocation2 + $0x30] sm:$0xff] }
  0x2b   : > { %v429_v1 = vsel %vm361_vm1, %v329_v50, %v397_v59  ;;  %v891_v4 = vmul.f32 %v3054_v22, %v526_v51  ;;  %504 = vst [vmem:[#allocation2 + $0xc1] sm:$0xff] %v428_v0  ;;  %v744_v18 = vrot.slane %v646_v60, 1  ;;  %v3125_v20 = vrot.slane %v3024_v7, %v1180_v11  ;;  %v3177_v59 = vld [vmem:[#allocation2 + $0x38] sm:$0xff] }
  0x2c   : > { %505 = vst [vmem:[#allocation2 + $0xc9] sm:$0xff] %v429_v1  ;;  %v743_v13 = vsel %vm740_vm8, %v741_v61, %v742_v62  ;;  %v986_v19 = vrot.slane %v889_v63, 2  ;;  %v987_v24 = vrot.slane %v890_v3, 2  ;;  %v3130_v27 = vrot.slane %v3024_v7, %v1248_v8  ;;  %v2923_v1 = vld [vmem:[%s3032_s25 + $0x40] sm:$0xff]  }
  0x2d   : > { %v853_v23 = vadd.f32 %v743_v13, %v576_v52  ;;  %v989_v25 = vrot.slane %v891_v4, 2  ;;  %v745_v28 = vsel %vm740_vm8, %v742_v62, %v744_v18  ;;  %v1182_v29 = vmul.f32 %v3125_v20, %v3117_v5 }
  0x2e   : > { %v1183_v30 = vmul.f32 %v3125_v20, %v3119_v6  ;;  %v3140_v11 = vrot.slane %v3024_v7, %v1492_v9  ;;  %v854_v31 = vadd.f32 %v745_v28, %v577_v53  ;;  %v988_v32 = vsel %vm985_vm13, %v986_v19, %v987_v24  ;;  %v3154_v9 = vld [vmem:[%s4243_s2 + $0x8] ss:$0 sm:$0xff]  ;;  %v1737_v53 = vld [vmem:[#allocation2 + $0x40] sm:$0x3] }
  0x2f   : > { %v990_v33 = vsel %vm985_vm13, %v987_v24, %v989_v25  ;;  %v1250_v8 = vmul.f32 %v3130_v27, %v3117_v5  ;;  %v1098_v34 = vadd.f32 %v988_v32, %v853_v23  ;;  %v1251_v35 = vmul.f32 %v3130_v27, %v3119_v6  ;;  %v2924_v19 = vld [vmem:[%s3032_s25 + $0x48] sm:$0xff]  }
  0x30   : > { %v1252_v36 = vmul.f32 %v3130_v27, %v1132_v26  ;;  %v1494_v37 = vmul.f32 %v3140_v11, %v3117_v5  ;;  %v1099_v38 = vadd.f32 %v990_v33, %v854_v31  ;;  %v1495_v40 = vmul.f32 %v3140_v11, %v3119_v6 }
  0x31   : > { %v1346_v39 = vrot.slane %v1250_v8, 1  ;;  %v1496_v41 = vmul.f32 %v3140_v11, %v1132_v26  ;;  %v1214_v42 = vadd.f32 %v1182_v29, %v1098_v34  ;;  %v1347_v43 = vrot.slane %v1251_v35, 1 }
  0x32   : > { %v1349_v44 = vrot.slane %v1252_v36, 1  ;;  %v1590_v45 = vrot.slane %v1494_v37, 2  ;;  %v1215_v46 = vadd.f32 %v1183_v30, %v1099_v38  ;;  %v1591_v47 = vrot.slane %v1495_v40, 2 }
  0x33   : > { %v1593_v48 = vrot.slane %v1496_v41, 2  ;;  %v3164_v50 = vrot.slane %v3024_v7, %v1785_v12  ;;  %v1348_v51 = vsel %vm740_vm8, %v1346_v39, %v1347_v43  ;;  %v3171_v54 = vrot.slane %v3024_v7, %v1853_v10 }
  0x34   : > { %v1350_v52 = vsel %vm740_vm8, %v1347_v43, %v1349_v44  ;;  %v2099_v55 = vmul.f32 %v3154_v9, %v3159_v49  ;;  %v1458_v56 = vadd.f32 %v1348_v51, %v1214_v42  ;;  %v1592_v58 = vsel %vm985_vm13, %v1590_v45, %v1591_v47 }
  0x35   : > { %v1459_v57 = vadd.f32 %v1350_v52, %v1215_v46  ;;  %v1594_v12 = vsel %vm985_vm13, %v1591_v47, %v1593_v48  ;;  %v1787_v60 = vmul.f32 %v3164_v50, %v3159_v49  ;;  %v1788_v2 = vmul.f32 %v3164_v50, %v3177_v59 }
  0x36   : > { %v1855_v7 = vmul.f32 %v3171_v54, %v3159_v49  ;;  %v1856_v10 = vmul.f32 %v3171_v54, %v3177_v59  ;;  %v1702_v61 = vadd.f32 %v1592_v58, %v1458_v56  ;;  %v1857_v63 = vmul.f32 %v3171_v54, %v1737_v53 }
  0x37   : > { %v1703_v62 = vadd.f32 %v1594_v12, %v1459_v57  ;;  %v2100_v0 = vmul.f32 %v3154_v9, %v3177_v59  ;;  %v2101_v13 = vmul.f32 %v3154_v9, %v1737_v53  ;;  %v2195_v18 = vrot.slane %v2099_v55, 2  ;;  %v529_v57 = vld [vmem:[#allocation2 + $0x28] sm:$0x3] }
  0x38   : > { %v1951_v3 = vrot.slane %v1855_v7, 1  ;;  %v1952_v4 = vrot.slane %v1856_v10, 1  ;;  %v1819_v23 = vadd.f32 %v1787_v60, %v1702_v61  ;;  %v1954_v25 = vrot.slane %v1857_v63, 1 }
  0x39   : > { %v1820_v24 = vadd.f32 %v1788_v2, %v1703_v62  ;;  %v2196_v26 = vrot.slane %v2100_v0, 2  ;;  %v2198_v29 = vrot.slane %v2101_v13, 2  ;;  %v2806_v30 = vunpack.c.l.bf16 %v2923_v1 }
  0x3a   : > { %v1953_v28 = vsel %vm740_vm8, %v1951_v3, %v1952_v4  ;;  %v2807_v31 = vunpack.c.h.bf16 %v2923_v1  ;;  %v1955_v32 = vsel %vm740_vm8, %v1952_v4, %v1954_v25  ;;  %v2810_v34 = vunpack.c.l.bf16 %v2924_v19 }
  0x3b   : > { %v2063_v33 = vadd.f32 %v1953_v28, %v1819_v23  ;;  %v2197_v8 = vsel %vm985_vm13, %v2195_v18, %v2196_v26  ;;  %v2064_v35 = vadd.f32 %v1955_v32, %v1820_v24  ;;  %v2199_v36 = vsel %vm985_vm13, %v2196_v26, %v2198_v29  ;;  %v1135_v26 = vld [vmem:[#allocation2 + $0x40] sm:$0x3] }
  0x3c   : > { %v294_v37 = vmul.f32 %v2806_v30, %v3039_v14  ;;  %v295_v38 = vmul.f32 %v2807_v31, %v3039_v14  ;;  %v296_v40 = vmul.f32 %v2810_v34, %v3039_v14  ;;  %v2811_v41 = vunpack.c.h.bf16 %v2924_v19 }
  0x3d   : > { %v2307_v39 = vadd.f32 %v2197_v8, %v2063_v33  ;;  %v578_v42 = vmul.f32 %v3117_v5, %v3046_v17  ;;  %v2308_v43 = vadd.f32 %v2199_v36, %v2064_v35  ;;  %v579_v46 = vmul.f32 %v3119_v6, %v3046_v17 }
  0x3e   : > { %v330_v44 = vadd.f32 %v3041_v15, %v294_v37  ;;  %v331_v45 = vadd.f32 %v3041_v15, %v295_v38  ;;  %v332_v48 = vadd.f32 %v3041_v15, %v296_v40  ;;  %v297_v51 = vmul.f32 %v2811_v41, %v3039_v14 }
  0x3f   : > { %v2537_v47 = vmul.f32 %v2307_v39, %v2307_v39  ;;  %v647_v52 = vmul.f32 %v3117_v5, %v3051_v21  ;;  %v2839_v53 = vpack.c.bf16 %v2308_v43, %v2307_v39  ;;  %v3217_v55 = vadd.f32 %v2308_v43, %v2307_v39 }
  0x40   : > { %v2538_v56 = vmul.f32 %v2308_v43, %v2308_v43  ;;  %vm362_vm2 = vcmp.ge.f32.partialorder %v330_v44, 0.0  ;;  %v398_v58 = vmul.f32 %v3043_v16, %v330_v44  ;;  %vm363_vm3 = vcmp.ge.f32.partialorder %v331_v45, 0.0 }
  0x41   : > { %v399_v12 = vmul.f32 %v3043_v16, %v331_v45  ;;  %vm364_vm4 = vcmp.ge.f32.partialorder %v332_v48, 0.0  ;;  %2840 = vst [vmem:[%s3211_s30] sm:$0xff] %v2839_v53   ;;  %v400_v2 = vmul.f32 %v3043_v16, %v332_v48  ;;  %v333_v7 = vadd.f32 %v3041_v15, %v297_v51  ;;  %v3256_v53 = vld [vmem:[#allocation2 + $0x50] sm:$0xff] }
  0x42   : > { %v3222_v60 = vadd.f32 %v2538_v56, %v2537_v47  ;;  %v648_v10 = vmul.f32 %v3119_v6, %v3051_v21  ;;  %v430_v61 = vsel %vm362_vm2, %v330_v44, %v398_v58  ;;  %v649_v63 = vmul.f32 %v3051_v21, %v529_v57  ;;  %v3253_v47 = vld [vmem:[#allocation2 + $0x48] sm:$0xff]  ;;  %v1740_v56 = vld [vmem:[#allocation2 + $0x58] sm:$0x3] }
  0x43   : > { %v431_v62 = vsel %vm363_vm3, %v331_v45, %v399_v12  ;;  %v746_v0 = vrot.slane %v647_v52, 1  ;;  %506 = vst [vmem:[#allocation2 + $0xd9] sm:$0xff] %v430_v61  ;;  %v432_v1 = vsel %vm364_vm4, %v332_v48, %v400_v2  ;;  %vm365_vm5 = vcmp.ge.f32.partialorder %v333_v7, 0.0 }
  0x44   : > { %507 = vst [vmem:[#allocation2 + $0xe1] sm:$0xff] %v431_v62  ;;  %v401_v3 = vmul.f32 %v3043_v16, %v333_v7  ;;  %v747_v4 = vrot.slane %v648_v10, 1  ;;  %508 = vst [vmem:[#allocation2 + $0xf1] sm:$0xff] %v432_v1  ;;  %v749_v13 = vrot.slane %v649_v63, 1  ;;  %v892_v18 = vmul.f32 %v3117_v5, %v3054_v22 }
  0x45   : > { %v893_v19 = vmul.f32 %v3119_v6, %v3054_v22  ;;  %v894_v23 = vmul.f32 %v3054_v22, %v529_v57  ;;  %v1184_v28 = vmul.f32 %v3159_v49, %v3125_v20  ;;  %v1185_v29 = vmul.f32 %v3177_v59, %v3125_v20 }
  0x46   : > { %v433_v24 = vsel %vm365_vm5, %v333_v7, %v401_v3  ;;  %v748_v25 = vsel %vm740_vm8, %v746_v0, %v747_v4  ;;  %v750_v30 = vsel %vm740_vm8, %v747_v4, %v749_v13  ;;  %v991_v5 = vrot.slane %v892_v18, 2 }
  0x47   : > { %509 = vst [vmem:[#allocation2 + $0xf9] sm:$0xff] %v433_v24  ;;  %v855_v31 = vadd.f32 %v748_v25, %v578_v42  ;;  %v992_v32 = vrot.slane %v893_v19, 2  ;;  %v856_v33 = vadd.f32 %v750_v30, %v579_v46  ;;  %v994_v6 = vrot.slane %v894_v23, 2 }
  0x48   : > { %v1253_v8 = vmul.f32 %v3159_v49, %v3130_v27  ;;  %v1254_v34 = vmul.f32 %v3177_v59, %v3130_v27  ;;  %v1255_v36 = vmul.f32 %v3130_v27, %v1135_v26  ;;  %v1497_v37 = vmul.f32 %v3159_v49, %v3140_v11 }
  0x49   : > { %v993_v35 = vsel %vm985_vm13, %v991_v5, %v992_v32  ;;  %v1498_v38 = vmul.f32 %v3177_v59, %v3140_v11  ;;  %v995_v39 = vsel %vm985_vm13, %v992_v32, %v994_v6  ;;  %v1499_v45 = vmul.f32 %v3140_v11, %v1135_v26  ;;  %v532_v5 = vld [vmem:[#allocation2 + $0x40] sm:$0x3] }
  0x4a   : > { %v1100_v40 = vadd.f32 %v993_v35, %v855_v31  ;;  %v1351_v41 = vrot.slane %v1253_v8, 1  ;;  %v1352_v42 = vrot.slane %v1254_v34, 1  ;;  %v1101_v43 = vadd.f32 %v995_v39, %v856_v33 }
  0x4b   : > { %v1354_v44 = vrot.slane %v1255_v36, 1  ;;  %v1595_v46 = vrot.slane %v1497_v37, 2  ;;  %v1596_v52 = vrot.slane %v1498_v38, 2  ;;  %v1789_v57 = vmul.f32 %v3164_v50, %v3253_v47 }
  0x4c   : > { %v1216_v48 = vadd.f32 %v1184_v28, %v1100_v40  ;;  %v1353_v51 = vsel %vm740_vm8, %v1351_v41, %v1352_v42  ;;  %v1217_v58 = vadd.f32 %v1185_v29, %v1101_v43  ;;  %v1598_v2 = vrot.slane %v1499_v45, 2 }
  0x4d   : > { %v1355_v12 = vsel %vm740_vm8, %v1352_v42, %v1354_v44  ;;  %v1790_v7 = vmul.f32 %v3164_v50, %v3256_v53  ;;  %v1597_v61 = vsel %vm985_vm13, %v1595_v46, %v1596_v52  ;;  %v1858_v62 = vmul.f32 %v3171_v54, %v3253_v47 }
  0x4e   : > { %v1460_v10 = vadd.f32 %v1353_v51, %v1216_v48  ;;  %v1859_v63 = vmul.f32 %v3171_v54, %v3256_v53  ;;  %v1461_v0 = vadd.f32 %v1355_v12, %v1217_v58  ;;  %v1599_v1 = vsel %vm985_vm13, %v1596_v52, %v1598_v2 }
  0x4f   : > { %v1860_v3 = vmul.f32 %v3171_v54, %v1740_v56  ;;  %v2102_v4 = vmul.f32 %v3154_v9, %v3253_v47  ;;  %v1956_v18 = vrot.slane %v1858_v62, 1  ;;  %v2103_v23 = vmul.f32 %v3154_v9, %v3256_v53  ;;  %v1138_v62 = vld [vmem:[#allocation2 + $0x58] sm:$0x3] }
  0x50   : > { %v1704_v13 = vadd.f32 %v1597_v61, %v1460_v10  ;;  %v1957_v19 = vrot.slane %v1859_v63, 1  ;;  %v1705_v24 = vadd.f32 %v1599_v1, %v1461_v0  ;;  %v2104_v26 = vmul.f32 %v3154_v9, %v1740_v56 }
  0x51   : > { %v1959_v25 = vrot.slane %v1860_v3, 1  ;;  %v2200_v28 = vrot.slane %v2102_v4, 2  ;;  %v2201_v31 = vrot.slane %v2103_v23, 2  ;;  %v580_v32 = vmul.f32 %v3159_v49, %v3046_v17 }
  0x52   : > { %v1821_v29 = vadd.f32 %v1789_v57, %v1704_v13  ;;  %v1958_v30 = vsel %vm740_vm8, %v1956_v18, %v1957_v19  ;;  %v1822_v33 = vadd.f32 %v1790_v7, %v1705_v24  ;;  %v2203_v8 = vrot.slane %v2104_v26, 2 }
  0x53   : > { %v1960_v6 = vsel %vm740_vm8, %v1957_v19, %v1959_v25  ;;  %v581_v34 = vmul.f32 %v3177_v59, %v3046_v17  ;;  %v2202_v36 = vsel %vm985_vm13, %v2200_v28, %v2201_v31  ;;  %v650_v37 = vmul.f32 %v3159_v49, %v3051_v21 }
  0x54   : > { %v2065_v35 = vadd.f32 %v1958_v30, %v1821_v29  ;;  %v651_v38 = vmul.f32 %v3177_v59, %v3051_v21  ;;  %v2066_v39 = vadd.f32 %v1960_v6, %v1822_v33  ;;  %v2204_v40 = vsel %vm985_vm13, %v2201_v31, %v2203_v8 }
  0x55   : > { %v652_v41 = vmul.f32 %v3051_v21, %v532_v5  ;;  %v895_v42 = vmul.f32 %v3159_v49, %v3054_v22  ;;  %v751_v44 = vrot.slane %v650_v37, 1  ;;  %v896_v46 = vmul.f32 %v3177_v59, %v3054_v22 }
  0x56   : > { %v2309_v43 = vadd.f32 %v2202_v36, %v2065_v35  ;;  %v752_v45 = vrot.slane %v651_v38, 1  ;;  %v2310_v48 = vadd.f32 %v2204_v40, %v2066_v39  ;;  %v897_v52 = vmul.f32 %v3054_v22, %v532_v5  ;;  %v1743_v35 = vld [vmem:[#allocation2 + $0x70] sm:$0x3] }
  0x57   : > { %v754_v51 = vrot.slane %v652_v41, 1  ;;  %v996_v56 = vrot.slane %v895_v42, 2  ;;  %v997_v2 = vrot.slane %v896_v46, 2  ;;  %v1186_v4 = vmul.f32 %v3253_v47, %v3125_v20 }
  0x58   : > { %v2500_v57 = vadd.f32 %v3217_v55, %v2309_v43  ;;  %v2539_v58 = vmul.f32 %v2309_v43, %v2309_v43  ;;  %v753_v12 = vsel %vm740_vm8, %v751_v44, %v752_v45  ;;  %v2844_v7 = vpack.c.bf16 %v2310_v48, %v2309_v43 }
  0x59   : > { %v2540_v49 = vmul.f32 %v2310_v48, %v2310_v48  ;;  %v755_v10 = vsel %vm740_vm8, %v752_v45, %v754_v51  ;;  %v857_v61 = vadd.f32 %v753_v12, %v580_v32  ;;  %v998_v1 = vsel %vm985_vm13, %v996_v56, %v997_v2  ;;  %v3317_v32 = vld [vmem:[#allocation2 + $0x60] sm:$0xff] }
  0x5a   : > { %v3296_v63 = vadd.f32 %v2500_v57, %v2310_v48  ;;  %v2570_v59 = vadd.f32 %v3222_v60, %v2539_v58  ;;  %v858_v0 = vadd.f32 %v755_v10, %v581_v34  ;;  %2931 = vst [vmem:[%s3211_s30 + $0x8] sm:$0xff] %v2844_v7   ;;  %v999_v3 = vrot.slane %v897_v52, 2  ;;  %v3320_v34 = vld [vmem:[#allocation2 + $0x68] sm:$0xff] }
  0x5b   : > { %v1102_v55 = vadd.f32 %v998_v1, %v857_v61  ;;  %v1187_v13 = vmul.f32 %v3256_v53, %v3125_v20  ;;  %v1256_v19 = vmul.f32 %v3253_v47, %v3130_v27  ;;  %v1257_v60 = vmul.f32 %v3256_v53, %v3130_v27 }
  0x5c   : > { %v3305_v18 = vadd.f32 %v2570_v59, %v2540_v49  ;;  %v1258_v23 = vmul.f32 %v3130_v27, %v1138_v62  ;;  %v1000_v24 = vsel %vm985_vm13, %v997_v2, %v999_v3  ;;  %v1500_v26 = vmul.f32 %v3253_v47, %v3140_v11  ;;  %v535_v59 = vld [vmem:[#allocation2 + $0x58] sm:$0x3] }
  0x5d   : > { %v1218_v25 = vadd.f32 %v1186_v4, %v1102_v55  ;;  %v1501_v28 = vmul.f32 %v3256_v53, %v3140_v11  ;;  %v1103_v29 = vadd.f32 %v1000_v24, %v858_v0  ;;  %v1356_v30 = vrot.slane %v1256_v19, 1 }
  0x5e   : > { %v1357_v31 = vrot.slane %v1257_v60, 1  ;;  %v1359_v5 = vrot.slane %v1258_v23, 1  ;;  %v1502_v33 = vmul.f32 %v3140_v11, %v1138_v62  ;;  %v1600_v6 = vrot.slane %v1500_v26, 2 }
  0x5f   : > { %v1601_v8 = vrot.slane %v1501_v28, 2  ;;  %v1791_v36 = vmul.f32 %v3164_v50, %v3317_v32  ;;  %v1219_v37 = vadd.f32 %v1187_v13, %v1103_v29  ;;  %v1792_v40 = vmul.f32 %v3164_v50, %v3320_v34 }
  0x60   : > { %v1358_v38 = vsel %vm740_vm8, %v1356_v30, %v1357_v31  ;;  %v1360_v39 = vsel %vm740_vm8, %v1357_v31, %v1359_v5  ;;  %v1603_v43 = vrot.slane %v1502_v33, 2  ;;  %v1861_v44 = vmul.f32 %v3171_v54, %v3317_v32 }
  0x61   : > { %v1462_v41 = vadd.f32 %v1358_v38, %v1218_v25  ;;  %v1602_v42 = vsel %vm985_vm13, %v1600_v6, %v1601_v8  ;;  %v1463_v45 = vadd.f32 %v1360_v39, %v1219_v37  ;;  %v1862_v46 = vmul.f32 %v3171_v54, %v3320_v34 }
  0x62   : > { %v1863_v48 = vmul.f32 %v3171_v54, %v1743_v35  ;;  %v2105_v51 = vmul.f32 %v3154_v9, %v3317_v32  ;;  %v1604_v52 = vsel %vm985_vm13, %v1601_v8, %v1603_v43  ;;  %v1961_v57 = vrot.slane %v1861_v44, 1 }
  0x63   : > { %v1706_v56 = vadd.f32 %v1602_v42, %v1462_v41  ;;  %v2106_v58 = vmul.f32 %v3154_v9, %v3320_v34  ;;  %v1707_v12 = vadd.f32 %v1604_v52, %v1463_v45  ;;  %v1962_v2 = vrot.slane %v1862_v46, 1  ;;  %v1141_v46 = vld [vmem:[#allocation2 + $0x70] sm:$0x3] }
  0x64   : > { %v1964_v7 = vrot.slane %v1863_v48, 1  ;;  %v2107_v49 = vmul.f32 %v3154_v9, %v1743_v35  ;;  %v2205_v61 = vrot.slane %v2105_v51, 2  ;;  %v582_v0 = vmul.f32 %v3253_v47, %v3046_v17 }
  0x65   : > { %v1823_v10 = vadd.f32 %v1791_v36, %v1706_v56  ;;  %v2206_v62 = vrot.slane %v2106_v58, 2  ;;  %v1824_v1 = vadd.f32 %v1792_v40, %v1707_v12  ;;  %v1963_v3 = vsel %vm740_vm8, %v1961_v57, %v1962_v2 }
  0x66   : > { %v1965_v55 = vsel %vm740_vm8, %v1962_v2, %v1964_v7  ;;  %v2208_v4 = vrot.slane %v2107_v49, 2  ;;  %v583_v60 = vmul.f32 %v3256_v53, %v3046_v17  ;;  %v653_v23 = vmul.f32 %v3253_v47, %v3051_v21 }
  0x67   : > { %v2067_v13 = vadd.f32 %v1963_v3, %v1823_v10  ;;  %v2207_v19 = vsel %vm985_vm13, %v2205_v61, %v2206_v62  ;;  %v2068_v24 = vadd.f32 %v1965_v55, %v1824_v1  ;;  %v654_v26 = vmul.f32 %v3256_v53, %v3051_v21 }
  0x68   : > { %v2209_v25 = vsel %vm985_vm13, %v2206_v62, %v2208_v4  ;;  %v655_v28 = vmul.f32 %v3051_v21, %v535_v59  ;;  %v756_v30 = vrot.slane %v653_v23, 1  ;;  %v898_v31 = vmul.f32 %v3253_v47, %v3054_v22 }
  0x69   : > { %v2311_v29 = vadd.f32 %v2207_v19, %v2067_v13  ;;  %v899_v5 = vmul.f32 %v3256_v53, %v3054_v22  ;;  %v2312_v33 = vadd.f32 %v2209_v25, %v2068_v24  ;;  %v757_v6 = vrot.slane %v654_v26, 1  ;;  %v3385_v13 = vld [vmem:[#allocation2 + $0x80] sm:$0xff]  ;;  %v1746_v19 = vld [vmem:[#allocation2 + $0x88] sm:$0x3] }
  0x6a   : > { %v759_v8 = vrot.slane %v655_v28, 1  ;;  %v900_v35 = vmul.f32 %v3054_v22, %v535_v59  ;;  %v1001_v38 = vrot.slane %v898_v31, 2  ;;  %v1188_v51 = vmul.f32 %v3317_v32, %v3125_v20 }
  0x6b   : > { %v2502_v36 = vadd.f32 %v3296_v63, %v2311_v29  ;;  %v2541_v37 = vmul.f32 %v2311_v29, %v2311_v29  ;;  %v1002_v39 = vrot.slane %v899_v5, 2  ;;  %v2849_v40 = vpack.c.bf16 %v2312_v33, %v2311_v29 }
  0x6c   : > { %v2542_v41 = vmul.f32 %v2312_v33, %v2312_v33  ;;  %v758_v42 = vsel %vm740_vm8, %v756_v30, %v757_v6  ;;  %v760_v47 = vsel %vm740_vm8, %v757_v6, %v759_v8  ;;  %v1004_v63 = vrot.slane %v900_v35, 2 }
  0x6d   : > { %v3361_v43 = vadd.f32 %v2502_v36, %v2312_v33  ;;  %v2572_v53 = vadd.f32 %v3305_v18, %v2541_v37  ;;  %v859_v44 = vadd.f32 %v758_v42, %v582_v0  ;;  %v860_v45 = vadd.f32 %v760_v47, %v583_v60  ;;  %2932 = vst [vmem:[%s3211_s30 + $0x10] sm:$0xff] %v2849_v40   ;;  %v3382_v0 = vld [vmem:[#allocation2 + $0x78] sm:$0xff] }
  0x6e   : > { %v1003_v48 = vsel %vm985_vm13, %v1001_v38, %v1002_v39  ;;  %v1189_v52 = vmul.f32 %v3320_v34, %v3125_v20  ;;  %v1259_v58 = vmul.f32 %v3317_v32, %v3130_v27  ;;  %v1260_v18 = vmul.f32 %v3320_v34, %v3130_v27  ;;  %v2925_v38 = vld [vmem:[%s3032_s25 + $0x50] sm:$0xff]  }
  0x6f   : > { %v3370_v56 = vadd.f32 %v2572_v53, %v2542_v41  ;;  %v1104_v57 = vadd.f32 %v1003_v48, %v859_v44  ;;  %v1005_v12 = vsel %vm985_vm13, %v1002_v39, %v1004_v63  ;;  %v1261_v2 = vmul.f32 %v3130_v27, %v1141_v46 }
  0x70   : > { %v1503_v7 = vmul.f32 %v3317_v32, %v3140_v11  ;;  %v1504_v49 = vmul.f32 %v3320_v34, %v3140_v11  ;;  %v1105_v10 = vadd.f32 %v1005_v12, %v860_v45  ;;  %v1361_v62 = vrot.slane %v1259_v58, 1  ;;  %v538_v12 = vld [vmem:[#allocation2 + $0x70] sm:$0x3] }
  0x71   : > { %v1220_v61 = vadd.f32 %v1188_v51, %v1104_v57  ;;  %v1362_v59 = vrot.slane %v1260_v18, 1  ;;  %v1364_v1 = vrot.slane %v1261_v2, 1  ;;  %v1505_v3 = vmul.f32 %v3140_v11, %v1141_v46 }
  0x72   : > { %v1605_v55 = vrot.slane %v1503_v7, 2  ;;  %v1606_v4 = vrot.slane %v1504_v49, 2  ;;  %v1221_v60 = vadd.f32 %v1189_v52, %v1105_v10  ;;  %v1793_v24 = vmul.f32 %v3164_v50, %v3382_v0 }
  0x73   : > { %v1363_v23 = vsel %vm740_vm8, %v1361_v62, %v1362_v59  ;;  %v1794_v25 = vmul.f32 %v3164_v50, %v3385_v13  ;;  %v1365_v26 = vsel %vm740_vm8, %v1362_v59, %v1364_v1  ;;  %v1608_v30 = vrot.slane %v1505_v3, 2 }
  0x74   : > { %v1464_v28 = vadd.f32 %v1363_v23, %v1220_v61  ;;  %v1607_v29 = vsel %vm985_vm13, %v1605_v55, %v1606_v4  ;;  %v1465_v31 = vadd.f32 %v1365_v26, %v1221_v60  ;;  %v1864_v5 = vmul.f32 %v3171_v54, %v3382_v0 }
  0x75   : > { %v1865_v33 = vmul.f32 %v3171_v54, %v3385_v13  ;;  %v1866_v6 = vmul.f32 %v3171_v54, %v1746_v19  ;;  %v1609_v8 = vsel %vm985_vm13, %v1606_v4, %v1608_v30  ;;  %v2108_v36 = vmul.f32 %v3154_v9, %v3382_v0 }
  0x76   : > { %v1708_v35 = vadd.f32 %v1607_v29, %v1464_v28  ;;  %v2109_v37 = vmul.f32 %v3154_v9, %v3385_v13  ;;  %v1709_v39 = vadd.f32 %v1609_v8, %v1465_v31  ;;  %v1966_v40 = vrot.slane %v1864_v5, 1 }
  0x77   : > { %v1967_v41 = vrot.slane %v1865_v33, 1  ;;  %v1969_v42 = vrot.slane %v1866_v6, 1  ;;  %v2110_v53 = vmul.f32 %v3154_v9, %v1746_v19  ;;  %v2210_v44 = vrot.slane %v2108_v36, 2 }
  0x78   : > { %v1825_v47 = vadd.f32 %v1793_v24, %v1708_v35  ;;  %v2211_v45 = vrot.slane %v2109_v37, 2  ;;  %v1826_v46 = vadd.f32 %v1794_v25, %v1709_v39  ;;  %v2814_v51 = vunpack.c.l.bf16 %v2925_v38 }
  0x79   : > { %v1968_v48 = vsel %vm740_vm8, %v1966_v40, %v1967_v41  ;;  %v1970_v63 = vsel %vm740_vm8, %v1967_v41, %v1969_v42  ;;  %v2213_v58 = vrot.slane %v2110_v53, 2  ;;  %v2815_v18 = vunpack.c.h.bf16 %v2925_v38 }
  0x7a   : > { %v2069_v52 = vadd.f32 %v1968_v48, %v1825_v47  ;;  %v2212_v57 = vsel %vm985_vm13, %v2210_v44, %v2211_v45  ;;  %v2070_v2 = vadd.f32 %v1970_v63, %v1826_v46  ;;  %v298_v7 = vmul.f32 %v2814_v51, %v3039_v14 }
  0x7b   : > { %v584_v49 = vmul.f32 %v3317_v32, %v3046_v17  ;;  %v585_v10 = vmul.f32 %v3320_v34, %v3046_v17  ;;  %v2214_v61 = vsel %vm985_vm13, %v2211_v45, %v2213_v58  ;;  %v299_v59 = vmul.f32 %v2815_v18, %v3039_v14 }
  0x7c   : > { %v2313_v62 = vadd.f32 %v2212_v57, %v2069_v52  ;;  %v656_v1 = vmul.f32 %v3317_v32, %v3051_v21  ;;  %v2314_v3 = vadd.f32 %v2214_v61, %v2070_v2  ;;  %v334_v55 = vadd.f32 %v3041_v15, %v298_v7 }
  0x7d   : > { %v657_v4 = vmul.f32 %v3320_v34, %v3051_v21  ;;  %v658_v19 = vmul.f32 %v3051_v21, %v538_v12  ;;  %v335_v24 = vadd.f32 %v3041_v15, %v299_v59  ;;  %v901_v8 = vmul.f32 %v3317_v32, %v3054_v22 }
  0x7e   : > { %v2504_v60 = vadd.f32 %v3361_v43, %v2313_v62  ;;  %v2543_v23 = vmul.f32 %v2313_v62, %v2313_v62  ;;  %v761_v25 = vrot.slane %v656_v1, 1  ;;  %v2854_v26 = vpack.c.bf16 %v2314_v3, %v2313_v62  ;;  %v3455_v62 = vld [vmem:[#allocation2 + $0x90] sm:$0xff] }
  0x7f   : > { %v2544_v28 = vmul.f32 %v2314_v3, %v2314_v3  ;;  %vm366_vm6 = vcmp.ge.f32.partialorder %v334_v55, 0.0  ;;  %v402_v29 = vmul.f32 %v3043_v16, %v334_v55  ;;  %vm367_vm7 = vcmp.ge.f32.partialorder %v335_v24, 0.0 }
  0x80   : > { %v3425_v30 = vadd.f32 %v2504_v60, %v2314_v3  ;;  %v2574_v31 = vadd.f32 %v3370_v56, %v2543_v23  ;;  %v403_v5 = vmul.f32 %v3043_v16, %v335_v24  ;;  %2933 = vst [vmem:[%s3211_s30 + $0x18] sm:$0xff] %v2854_v26   ;;  %v762_v6 = vrot.slane %v657_v4, 1  ;;  %v1144_v56 = vld [vmem:[#allocation2 + $0x88] sm:$0x3]  ;;  %v1749_v4 = vld [vmem:[#allocation2 + $0xa0] sm:$0x3] }
  0x81   : > { %v434_v33 = vsel %vm366_vm6, %v334_v55, %v402_v29  ;;  %v764_v43 = vrot.slane %v658_v19, 1  ;;  %v902_v37 = vmul.f32 %v3320_v34, %v3054_v22  ;;  %v903_v38 = vmul.f32 %v3054_v22, %v538_v12  ;;  %v3458_v55 = vld [vmem:[#allocation2 + $0x98] sm:$0xff] }
  0x82   : > { %v3432_v35 = vadd.f32 %v2574_v31, %v2544_v28  ;;  %510 = vst [vmem:[#allocation2 + $0x109] sm:$0xff] %v434_v33  ;;  %v435_v36 = vsel %vm367_vm7, %v335_v24, %v403_v5  ;;  %v763_v39 = vsel %vm740_vm8, %v761_v25, %v762_v6  ;;  %v1006_v41 = vrot.slane %v901_v8, 2  ;;  %v2926_v8 = vld [vmem:[%s3032_s25 + $0x58] sm:$0xff]  }
  0x83   : > { %511 = vst [vmem:[#allocation2 + $0x111] sm:$0xff] %v435_v36  ;;  %v765_v40 = vsel %vm740_vm8, %v762_v6, %v764_v43  ;;  %v1190_v42 = vmul.f32 %v3382_v0, %v3125_v20  ;;  %v861_v32 = vadd.f32 %v763_v39, %v584_v49  ;;  %v1007_v53 = vrot.slane %v902_v37, 2 }
  0x84   : > { %v862_v47 = vadd.f32 %v765_v40, %v585_v10  ;;  %v1009_v44 = vrot.slane %v903_v38, 2  ;;  %v1191_v45 = vmul.f32 %v3385_v13, %v3125_v20  ;;  %v1262_v34 = vmul.f32 %v3382_v0, %v3130_v27 }
  0x85   : > { %v1263_v46 = vmul.f32 %v3385_v13, %v3130_v27  ;;  %v1264_v48 = vmul.f32 %v3130_v27, %v1144_v56  ;;  %v1008_v63 = vsel %vm985_vm13, %v1006_v41, %v1007_v53  ;;  %v1506_v52 = vmul.f32 %v3382_v0, %v3140_v11 }
  0x86   : > { %v1010_v51 = vsel %vm985_vm13, %v1007_v53, %v1009_v44  ;;  %v1507_v57 = vmul.f32 %v3385_v13, %v3140_v11  ;;  %v1106_v58 = vadd.f32 %v1008_v63, %v861_v32  ;;  %v1366_v12 = vrot.slane %v1262_v34, 1 }
  0x87   : > { %v1107_v18 = vadd.f32 %v1010_v51, %v862_v47  ;;  %v1367_v2 = vrot.slane %v1263_v46, 1  ;;  %v1369_v7 = vrot.slane %v1264_v48, 1  ;;  %v1508_v49 = vmul.f32 %v3140_v11, %v1144_v56 }
  0x88   : > { %v1610_v10 = vrot.slane %v1506_v52, 2  ;;  %v1611_v61 = vrot.slane %v1507_v57, 2  ;;  %v1222_v59 = vadd.f32 %v1190_v42, %v1106_v58  ;;  %v1795_v19 = vmul.f32 %v3164_v50, %v3455_v62  ;;  %v541_v57 = vld [vmem:[#allocation2 + $0x88] sm:$0x3] }
  0x89   : > { %v1223_v1 = vadd.f32 %v1191_v45, %v1107_v18  ;;  %v1368_v3 = vsel %vm740_vm8, %v1366_v12, %v1367_v2  ;;  %v1370_v60 = vsel %vm740_vm8, %v1367_v2, %v1369_v7  ;;  %v1613_v24 = vrot.slane %v1508_v49, 2 }
  0x8a   : > { %v1612_v23 = vsel %vm985_vm13, %v1610_v10, %v1611_v61  ;;  %v1796_v25 = vmul.f32 %v3164_v50, %v3458_v55  ;;  %v1466_v26 = vadd.f32 %v1368_v3, %v1222_v59  ;;  %v1867_v29 = vmul.f32 %v3171_v54, %v3455_v62 }
  0x8b   : > { %v1467_v28 = vadd.f32 %v1370_v60, %v1223_v1  ;;  %v1868_v31 = vmul.f32 %v3171_v54, %v3458_v55  ;;  %v1614_v5 = vsel %vm985_vm13, %v1611_v61, %v1613_v24  ;;  %v1869_v33 = vmul.f32 %v3171_v54, %v1749_v4 }
  0x8c   : > { %v2111_v6 = vmul.f32 %v3154_v9, %v3455_v62  ;;  %v2112_v43 = vmul.f32 %v3154_v9, %v3458_v55  ;;  %v1710_v36 = vadd.f32 %v1612_v23, %v1466_v26  ;;  %v1971_v38 = vrot.slane %v1867_v29, 1 }
  0x8d   : > { %v1711_v37 = vadd.f32 %v1614_v5, %v1467_v28  ;;  %v1972_v56 = vrot.slane %v1868_v31, 1  ;;  %v1974_v39 = vrot.slane %v1869_v33, 1  ;;  %v2113_v40 = vmul.f32 %v3154_v9, %v1749_v4 }
  0x8e   : > { %v2215_v41 = vrot.slane %v2111_v6, 2  ;;  %v2216_v42 = vrot.slane %v2112_v43, 2  ;;  %v1827_v32 = vadd.f32 %v1795_v19, %v1710_v36  ;;  %v2818_v44 = vunpack.c.l.bf16 %v2926_v8 }
  0x8f   : > { %v1828_v47 = vadd.f32 %v1796_v25, %v1711_v37  ;;  %v1973_v53 = vsel %vm740_vm8, %v1971_v38, %v1972_v56  ;;  %v1975_v45 = vsel %vm740_vm8, %v1972_v56, %v1974_v39  ;;  %v2218_v46 = vrot.slane %v2113_v40, 2  ;;  %v1147_v56 = vld [vmem:[#allocation2 + $0xa0] sm:$0x3] }
  0x90   : > { %v2217_v34 = vsel %vm985_vm13, %v2215_v41, %v2216_v42  ;;  %v2819_v48 = vunpack.c.h.bf16 %v2926_v8  ;;  %v2071_v63 = vadd.f32 %v1973_v53, %v1827_v32  ;;  %v300_v52 = vmul.f32 %v2818_v44, %v3039_v14 }
  0x91   : > { %v2072_v51 = vadd.f32 %v1975_v45, %v1828_v47  ;;  %v586_v58 = vmul.f32 %v3382_v0, %v3046_v17  ;;  %v2219_v18 = vsel %vm985_vm13, %v2216_v42, %v2218_v46  ;;  %v587_v2 = vmul.f32 %v3385_v13, %v3046_v17 }
  0x92   : > { %v301_v12 = vmul.f32 %v2819_v48, %v3039_v14  ;;  %v659_v7 = vmul.f32 %v3382_v0, %v3051_v21  ;;  %v2315_v49 = vadd.f32 %v2217_v34, %v2071_v63  ;;  %v336_v61 = vadd.f32 %v3041_v15, %v300_v52 }
  0x93   : > { %v2316_v10 = vadd.f32 %v2219_v18, %v2072_v51  ;;  %v660_v59 = vmul.f32 %v3385_v13, %v3051_v21  ;;  %v661_v3 = vmul.f32 %v3051_v21, %v541_v57  ;;  %v904_v19 = vmul.f32 %v3382_v0, %v3054_v22 }
  0x94   : > { %v337_v1 = vadd.f32 %v3041_v15, %v301_v12  ;;  %v766_v4 = vrot.slane %v659_v7, 1  ;;  %v2506_v23 = vadd.f32 %v3425_v30, %v2315_v49  ;;  %v2545_v24 = vmul.f32 %v2315_v49, %v2315_v49  ;;  %v3527_v12 = vld [vmem:[#allocation2 + $0xa8] sm:$0xff] }
  0x95   : > { %v2859_v60 = vpack.c.bf16 %v2316_v10, %v2315_v49  ;;  %v2546_v25 = vmul.f32 %v2316_v10, %v2316_v10  ;;  %vm368_vm9 = vcmp.ge.f32.partialorder %v336_v61, 0.0  ;;  %v404_v26 = vmul.f32 %v3043_v16, %v336_v61 }
  0x96   : > { %vm369_vm10 = vcmp.ge.f32.partialorder %v337_v1, 0.0  ;;  %v405_v28 = vmul.f32 %v3043_v16, %v337_v1  ;;  %v3501_v29 = vadd.f32 %v2506_v23, %v2316_v10  ;;  %v2576_v31 = vadd.f32 %v3432_v35, %v2545_v24  ;;  %v3530_v10 = vld [vmem:[#allocation2 + $0xb0] sm:$0xff] }
  0x97   : > { %2934 = vst [vmem:[%s3211_s30 + $0x20] sm:$0xff] %v2859_v60   ;;  %v767_v5 = vrot.slane %v660_v59, 1  ;;  %v769_v33 = vrot.slane %v661_v3, 1  ;;  %v436_v6 = vsel %vm368_vm9, %v336_v61, %v404_v26  ;;  %v905_v30 = vmul.f32 %v3385_v13, %v3054_v22  ;;  %v1752_v61 = vld [vmem:[#allocation2 + $0xb8] sm:$0x3] }
  0x98   : > { %v437_v0 = vsel %vm369_vm10, %v337_v1, %v405_v28  ;;  %v906_v43 = vmul.f32 %v3054_v22, %v541_v57  ;;  %v3507_v8 = vadd.f32 %v2576_v31, %v2546_v25  ;;  %512 = vst [vmem:[#allocation2 + $0x121] sm:$0xff] %v436_v6  ;;  %v1011_v38 = vrot.slane %v904_v19, 2 }
  0x99   : > { %513 = vst [vmem:[#allocation2 + $0x129] sm:$0xff] %v437_v0  ;;  %v768_v36 = vsel %vm740_vm8, %v766_v4, %v767_v5  ;;  %v770_v37 = vsel %vm740_vm8, %v767_v5, %v769_v33  ;;  %v1012_v40 = vrot.slane %v905_v30, 2  ;;  %v1192_v42 = vmul.f32 %v3455_v62, %v3125_v20  ;;  %v2927_v33 = vld [vmem:[%s3032_s25 + $0x60] sm:$0xff]  }
  0x9a   : > { %v863_v35 = vadd.f32 %v768_v36, %v586_v58  ;;  %v864_v39 = vadd.f32 %v770_v37, %v587_v2  ;;  %v1014_v41 = vrot.slane %v906_v43, 2  ;;  %v1193_v13 = vmul.f32 %v3458_v55, %v3125_v20 }
  0x9b   : > { %v1265_v32 = vmul.f32 %v3455_v62, %v3130_v27  ;;  %v1266_v47 = vmul.f32 %v3458_v55, %v3130_v27  ;;  %v1013_v53 = vsel %vm985_vm13, %v1011_v38, %v1012_v40  ;;  %v1267_v45 = vmul.f32 %v3130_v27, %v1147_v56 }
  0x9c   : > { %v1015_v44 = vsel %vm985_vm13, %v1012_v40, %v1014_v41  ;;  %v1509_v34 = vmul.f32 %v3455_v62, %v3140_v11  ;;  %v1108_v46 = vadd.f32 %v1013_v53, %v863_v35  ;;  %v1510_v57 = vmul.f32 %v3458_v55, %v3140_v11 }
  0x9d   : > { %v1109_v48 = vadd.f32 %v1015_v44, %v864_v39  ;;  %v1371_v63 = vrot.slane %v1265_v32, 1  ;;  %v1372_v51 = vrot.slane %v1266_v47, 1  ;;  %v1374_v52 = vrot.slane %v1267_v45, 1 }
  0x9e   : > { %v1511_v58 = vmul.f32 %v3140_v11, %v1147_v56  ;;  %v1615_v18 = vrot.slane %v1509_v34, 2  ;;  %v1224_v2 = vadd.f32 %v1192_v42, %v1108_v46  ;;  %v1797_v59 = vmul.f32 %v3164_v50, %v3527_v12  ;;  %v544_v34 = vld [vmem:[#allocation2 + $0xa0] sm:$0x3] }
  0x9f   : > { %v1225_v7 = vadd.f32 %v1193_v13, %v1109_v48  ;;  %v1373_v49 = vsel %vm740_vm8, %v1371_v63, %v1372_v51  ;;  %v1375_v1 = vsel %vm740_vm8, %v1372_v51, %v1374_v52  ;;  %v1616_v3 = vrot.slane %v1510_v57, 2 }
  0xa0   : > { %v1618_v4 = vrot.slane %v1511_v58, 2  ;;  %v1798_v19 = vmul.f32 %v3164_v50, %v3530_v10  ;;  %v1468_v60 = vadd.f32 %v1373_v49, %v1224_v2  ;;  %v1870_v24 = vmul.f32 %v3171_v54, %v3527_v12 }
  0xa1   : > { %v1469_v23 = vadd.f32 %v1375_v1, %v1225_v7  ;;  %v1871_v25 = vmul.f32 %v3171_v54, %v3530_v10  ;;  %v1617_v26 = vsel %vm985_vm13, %v1615_v18, %v1616_v3  ;;  %v1872_v31 = vmul.f32 %v3171_v54, %v1752_v61 }
  0xa2   : > { %v1619_v28 = vsel %vm985_vm13, %v1616_v3, %v1618_v4  ;;  %v2114_v5 = vmul.f32 %v3154_v9, %v3527_v12  ;;  %v1712_v6 = vadd.f32 %v1617_v26, %v1468_v60  ;;  %v1976_v30 = vrot.slane %v1870_v24, 1 }
  0xa3   : > { %v1713_v0 = vadd.f32 %v1619_v28, %v1469_v23  ;;  %v1977_v43 = vrot.slane %v1871_v25, 1  ;;  %v1979_v36 = vrot.slane %v1872_v31, 1  ;;  %v2115_v37 = vmul.f32 %v3154_v9, %v3530_v10 }
  0xa4   : > { %v2116_v38 = vmul.f32 %v3154_v9, %v1752_v61  ;;  %v2220_v56 = vrot.slane %v2114_v5, 2  ;;  %v1829_v35 = vadd.f32 %v1797_v59, %v1712_v6  ;;  %v2822_v41 = vunpack.c.l.bf16 %v2927_v33 }
  0xa5   : > { %v1830_v39 = vadd.f32 %v1798_v19, %v1713_v0  ;;  %v1978_v40 = vsel %vm740_vm8, %v1976_v30, %v1977_v43  ;;  %v1980_v42 = vsel %vm740_vm8, %v1977_v43, %v1979_v36  ;;  %v2221_v13 = vrot.slane %v2115_v37, 2  ;;  %v1150_v30 = vld [vmem:[#allocation2 + $0xb8] sm:$0x3] }
  0xa6   : > { %v2223_v32 = vrot.slane %v2116_v38, 2  ;;  %v2823_v47 = vunpack.c.h.bf16 %v2927_v33  ;;  %v2073_v53 = vadd.f32 %v1978_v40, %v1829_v35  ;;  %v302_v45 = vmul.f32 %v2822_v41, %v3039_v14 }
  0xa7   : > { %v2074_v44 = vadd.f32 %v1980_v42, %v1830_v39  ;;  %v588_v46 = vmul.f32 %v3455_v62, %v3046_v17  ;;  %v2222_v9 = vsel %vm985_vm13, %v2220_v56, %v2221_v13  ;;  %v589_v51 = vmul.f32 %v3458_v55, %v3046_v17 }
  0xa8   : > { %v2224_v48 = vsel %vm985_vm13, %v2221_v13, %v2223_v32  ;;  %v303_v63 = vmul.f32 %v2823_v47, %v3039_v14  ;;  %v2317_v52 = vadd.f32 %v2222_v9, %v2073_v53  ;;  %v338_v58 = vadd.f32 %v3041_v15, %v302_v45  ;;  %v3599_v9 = vld [vmem:[#allocation2 + $0xc0] sm:$0xff] }
  0xa9   : > { %v2318_v57 = vadd.f32 %v2224_v48, %v2074_v44  ;;  %v662_v18 = vmul.f32 %v3455_v62, %v3051_v21  ;;  %v663_v7 = vmul.f32 %v3458_v55, %v3051_v21  ;;  %v664_v49 = vmul.f32 %v3051_v21, %v544_v34 }
  0xaa   : > { %v339_v2 = vadd.f32 %v3041_v15, %v303_v63  ;;  %v907_v61 = vmul.f32 %v3455_v62, %v3054_v22  ;;  %v2508_v1 = vadd.f32 %v3501_v29, %v2317_v52  ;;  %v2547_v3 = vmul.f32 %v2317_v52, %v2317_v52 }
  0xab   : > { %v2864_v59 = vpack.c.bf16 %v2318_v57, %v2317_v52  ;;  %v2548_v4 = vmul.f32 %v2318_v57, %v2318_v57  ;;  %vm370_vm11 = vcmp.ge.f32.partialorder %v338_v58, 0.0  ;;  %v406_v19 = vmul.f32 %v3043_v16, %v338_v58  ;;  %v1755_v52 = vld [vmem:[#allocation2 + $0xd0] sm:$0x3] }
  0xac   : > { %vm371_vm12 = vcmp.ge.f32.partialorder %v339_v2, 0.0  ;;  %v407_v60 = vmul.f32 %v3043_v16, %v339_v2  ;;  %v3573_v23 = vadd.f32 %v2508_v1, %v2318_v57  ;;  %v2578_v24 = vadd.f32 %v3507_v8, %v2547_v3 }
  0xad   : > { %2935 = vst [vmem:[%s3211_s30 + $0x28] sm:$0xff] %v2864_v59   ;;  %v771_v25 = vrot.slane %v662_v18, 1  ;;  %v772_v26 = vrot.slane %v663_v7, 1  ;;  %v438_v28 = vsel %vm370_vm11, %v338_v58, %v406_v19  ;;  %v774_v31 = vrot.slane %v664_v49, 1  ;;  %v3605_v49 = vld [vmem:[#allocation2 + $0xc8] sm:$0xff] }
  0xae   : > { %v439_v62 = vsel %vm371_vm12, %v339_v2, %v407_v60  ;;  %v908_v29 = vmul.f32 %v3458_v55, %v3054_v22  ;;  %v3578_v5 = vadd.f32 %v2578_v24, %v2548_v4  ;;  %514 = vst [vmem:[#allocation2 + $0x139] sm:$0xff] %v438_v28  ;;  %v909_v6 = vmul.f32 %v3054_v22, %v544_v34 }
  0xaf   : > { %515 = vst [vmem:[#allocation2 + $0x141] sm:$0xff] %v439_v62  ;;  %v773_v33 = vsel %vm740_vm8, %v771_v25, %v772_v26  ;;  %v1016_v0 = vrot.slane %v907_v61, 2  ;;  %v775_v8 = vsel %vm740_vm8, %v772_v26, %v774_v31  ;;  %v1194_v37 = vmul.f32 %v3527_v12, %v3125_v20  ;;  %v2928_v25 = vld [vmem:[%s3032_s25 + $0x68] sm:$0xff]  }
  0xb0   : > { %v865_v43 = vadd.f32 %v773_v33, %v588_v46  ;;  %v1017_v36 = vrot.slane %v908_v29, 2  ;;  %v866_v38 = vadd.f32 %v775_v8, %v589_v51  ;;  %v1019_v56 = vrot.slane %v909_v6, 2  ;;  %v3620_v62 = vld [vmem:[%s4243_s2 + $0x8] ss:$0 sm:$0xff] }
  0xb1   : > { %v1195_v55 = vmul.f32 %v3530_v10, %v3125_v20  ;;  %v1268_v35 = vmul.f32 %v3527_v12, %v3130_v27  ;;  %v1269_v40 = vmul.f32 %v3530_v10, %v3130_v27  ;;  %v1270_v41 = vmul.f32 %v3130_v27, %v1150_v30 }
  0xb2   : > { %v1018_v39 = vsel %vm985_vm13, %v1016_v0, %v1017_v36  ;;  %v1512_v42 = vmul.f32 %v3527_v12, %v3140_v11  ;;  %v1020_v13 = vsel %vm985_vm13, %v1017_v36, %v1019_v56  ;;  %v1513_v53 = vmul.f32 %v3530_v10, %v3140_v11 }
  0xb3   : > { %v1110_v32 = vadd.f32 %v1018_v39, %v865_v43  ;;  %v1376_v47 = vrot.slane %v1268_v35, 1  ;;  %v1111_v44 = vadd.f32 %v1020_v13, %v866_v38  ;;  %v1377_v45 = vrot.slane %v1269_v40, 1  ;;  %v547_v13 = vld [vmem:[#allocation2 + $0xb8] sm:$0x3] }
  0xb4   : > { %v1379_v34 = vrot.slane %v1270_v41, 1  ;;  %v1514_v46 = vmul.f32 %v3140_v11, %v1150_v30  ;;  %v1620_v63 = vrot.slane %v1512_v42, 2  ;;  %v1621_v51 = vrot.slane %v1513_v53, 2 }
  0xb5   : > { %v1226_v48 = vadd.f32 %v1194_v37, %v1110_v32  ;;  %v1799_v57 = vmul.f32 %v3164_v50, %v3599_v9  ;;  %v1227_v58 = vadd.f32 %v1195_v55, %v1111_v44  ;;  %v1378_v18 = vsel %vm740_vm8, %v1376_v47, %v1377_v45 }
  0xb6   : > { %v1380_v2 = vsel %vm740_vm8, %v1377_v45, %v1379_v34  ;;  %v1623_v7 = vrot.slane %v1514_v46, 2  ;;  %v1622_v59 = vsel %vm985_vm13, %v1620_v63, %v1621_v51  ;;  %v1800_v1 = vmul.f32 %v3164_v50, %v3605_v49 }
  0xb7   : > { %v1470_v61 = vadd.f32 %v1378_v18, %v1226_v48  ;;  %v1873_v3 = vmul.f32 %v3171_v54, %v3599_v9  ;;  %v1471_v4 = vadd.f32 %v1380_v2, %v1227_v58  ;;  %v1874_v60 = vmul.f32 %v3171_v54, %v3605_v49 }
  0xb8   : > { %v1624_v19 = vsel %vm985_vm13, %v1621_v51, %v1623_v7  ;;  %v1875_v24 = vmul.f32 %v3171_v54, %v1755_v52  ;;  %v2117_v31 = vmul.f32 %v3620_v62, %v3599_v9  ;;  %v2118_v29 = vmul.f32 %v3620_v62, %v3605_v49 }
  0xb9   : > { %v1714_v26 = vadd.f32 %v1622_v59, %v1470_v61  ;;  %v1981_v28 = vrot.slane %v1873_v3, 1  ;;  %v1715_v33 = vadd.f32 %v1624_v19, %v1471_v4  ;;  %v1982_v6 = vrot.slane %v1874_v60, 1 }
  0xba   : > { %v1984_v0 = vrot.slane %v1875_v24, 1  ;;  %v2119_v30 = vmul.f32 %v3620_v62, %v1755_v52  ;;  %v2225_v43 = vrot.slane %v2117_v31, 2  ;;  %v2226_v36 = vrot.slane %v2118_v29, 2  ;;  %v1153_v29 = vld [vmem:[#allocation2 + $0xd0] sm:$0x3] }
  0xbb   : > { %v1831_v8 = vadd.f32 %v1799_v57, %v1714_v26  ;;  %v2826_v37 = vunpack.c.l.bf16 %v2928_v25  ;;  %v1832_v38 = vadd.f32 %v1800_v1, %v1715_v33  ;;  %v1983_v56 = vsel %vm740_vm8, %v1981_v28, %v1982_v6 }
  0xbc   : > { %v1985_v55 = vsel %vm740_vm8, %v1982_v6, %v1984_v0  ;;  %v2228_v35 = vrot.slane %v2119_v30, 2  ;;  %v2227_v40 = vsel %vm985_vm13, %v2225_v43, %v2226_v36  ;;  %v2827_v42 = vunpack.c.h.bf16 %v2928_v25 }
  0xbd   : > { %v2075_v39 = vadd.f32 %v1983_v56, %v1831_v8  ;;  %v304_v41 = vmul.f32 %v2826_v37, %v3039_v14  ;;  %v2076_v32 = vadd.f32 %v1985_v55, %v1832_v38  ;;  %v590_v53 = vmul.f32 %v3527_v12, %v3046_v17 }
  0xbe   : > { %v2229_v47 = vsel %vm985_vm13, %v2226_v36, %v2228_v35  ;;  %v591_v44 = vmul.f32 %v3530_v10, %v3046_v17  ;;  %v305_v46 = vmul.f32 %v2827_v42, %v3039_v14  ;;  %v665_v48 = vmul.f32 %v3527_v12, %v3051_v21 }
  0xbf   : > { %v2319_v45 = vadd.f32 %v2227_v40, %v2075_v39  ;;  %v340_v34 = vadd.f32 %v3041_v15, %v304_v41  ;;  %v2320_v63 = vadd.f32 %v2229_v47, %v2076_v32  ;;  %v666_v51 = vmul.f32 %v3530_v10, %v3051_v21 }
  0xc0   : > { %v667_v52 = vmul.f32 %v3051_v21, %v547_v13  ;;  %v910_v57 = vmul.f32 %v3527_v12, %v3054_v22  ;;  %v341_v59 = vadd.f32 %v3041_v15, %v305_v46  ;;  %v776_v1 = vrot.slane %v665_v48, 1  ;;  %v1758_v46 = vld [vmem:[#allocation2 + $0xe8] sm:$0x3] }
  0xc1   : > { %v2510_v58 = vadd.f32 %v3573_v23, %v2319_v45  ;;  %v2549_v18 = vmul.f32 %v2319_v45, %v2319_v45  ;;  %vm372_vm14 = vcmp.ge.f32.partialorder %v340_v34, 0.0  ;;  %v408_v2 = vmul.f32 %v3043_v16, %v340_v34 }
  0xc2   : > { %v2869_v7 = vpack.c.bf16 %v2320_v63, %v2319_v45  ;;  %v2550_v61 = vmul.f32 %v2320_v63, %v2320_v63  ;;  %v777_v60 = vrot.slane %v666_v51, 1  ;;  %vm373_vm15 = vcmp.ge.f32.partialorder %v341_v59, 0.0 }
  0xc3   : > { %v3648_v3 = vadd.f32 %v2510_v58, %v2320_v63  ;;  %v2580_v4 = vadd.f32 %v3578_v5, %v2549_v18  ;;  %v440_v19 = vsel %vm372_vm14, %v340_v34, %v408_v2  ;;  %v409_v12 = vmul.f32 %v3043_v16, %v341_v59  ;;  %v3676_v34 = vld [vmem:[#allocation2 + $0xd8] sm:$0xff] }
  0xc4   : > { %2936 = vst [vmem:[%s3211_s30 + $0x30] sm:$0xff] %v2869_v7   ;;  %516 = vst [vmem:[#allocation2 + $0x151] sm:$0xff] %v440_v19  ;;  %v779_v23 = vrot.slane %v667_v52, 1  ;;  %v911_v24 = vmul.f32 %v3530_v10, %v3054_v22  ;;  %v778_v26 = vsel %vm740_vm8, %v776_v1, %v777_v60  ;;  %v912_v28 = vmul.f32 %v3054_v22, %v547_v13  ;;  %v3680_v52 = vld [vmem:[#allocation2 + $0xe0] sm:$0xff] }
  0xc5   : > { %v3655_v25 = vadd.f32 %v2580_v4, %v2550_v61  ;;  %v1021_v31 = vrot.slane %v910_v57, 2  ;;  %v441_v5 = vsel %vm373_vm15, %v341_v59, %v409_v12  ;;  %v867_v6 = vadd.f32 %v778_v26, %v590_v53 }
  0xc6   : > { %v780_v33 = vsel %vm740_vm8, %v777_v60, %v779_v23  ;;  %v1022_v0 = vrot.slane %v911_v24, 2  ;;  %517 = vst [vmem:[#allocation2 + $0x159] sm:$0xff] %v441_v5  ;;  %v1024_v8 = vrot.slane %v912_v28, 2  ;;  %v1196_v43 = vmul.f32 %v3599_v9, %v3125_v20  ;;  %v2929_v24 = vld [vmem:[%s3032_s25 + $0x70] sm:$0xff]  }
  0xc7   : > { %v868_v30 = vadd.f32 %v780_v33, %v591_v44  ;;  %v1197_v10 = vmul.f32 %v3605_v49, %v3125_v20  ;;  %v1271_v37 = vmul.f32 %v3599_v9, %v3130_v27  ;;  %v1272_v38 = vmul.f32 %v3605_v49, %v3130_v27 }
  0xc8   : > { %v1023_v36 = vsel %vm985_vm13, %v1021_v31, %v1022_v0  ;;  %v1273_v56 = vmul.f32 %v3130_v27, %v1153_v29  ;;  %v1025_v55 = vsel %vm985_vm13, %v1022_v0, %v1024_v8  ;;  %v1515_v39 = vmul.f32 %v3599_v9, %v3140_v11 }
  0xc9   : > { %v1112_v35 = vadd.f32 %v1023_v36, %v867_v6  ;;  %v1516_v40 = vmul.f32 %v3605_v49, %v3140_v11  ;;  %v1113_v41 = vadd.f32 %v1025_v55, %v868_v30  ;;  %v1381_v42 = vrot.slane %v1271_v37, 1  ;;  %v550_v55 = vld [vmem:[#allocation2 + $0xd0] sm:$0x3] }
  0xca   : > { %v1382_v13 = vrot.slane %v1272_v38, 1  ;;  %v1384_v32 = vrot.slane %v1273_v56, 1  ;;  %v1517_v53 = vmul.f32 %v3140_v11, %v1153_v29  ;;  %v1625_v44 = vrot.slane %v1515_v39, 2 }
  0xcb   : > { %v1228_v47 = vadd.f32 %v1196_v43, %v1112_v35  ;;  %v1626_v45 = vrot.slane %v1516_v40, 2  ;;  %v1229_v48 = vadd.f32 %v1197_v10, %v1113_v41  ;;  %v1801_v57 = vmul.f32 %v3164_v50, %v3676_v34 }
  0xcc   : > { %v1383_v63 = vsel %vm740_vm8, %v1381_v42, %v1382_v13  ;;  %v1385_v51 = vsel %vm740_vm8, %v1382_v13, %v1384_v32  ;;  %v1628_v2 = vrot.slane %v1517_v53, 2  ;;  %v1802_v7 = vmul.f32 %v3164_v50, %v3680_v52 }
  0xcd   : > { %v1472_v58 = vadd.f32 %v1383_v63, %v1228_v47  ;;  %v1627_v18 = vsel %vm985_vm13, %v1625_v44, %v1626_v45  ;;  %v1473_v61 = vadd.f32 %v1385_v51, %v1229_v48  ;;  %v1876_v59 = vmul.f32 %v3171_v54, %v3676_v34 }
  0xce   : > { %v1877_v1 = vmul.f32 %v3171_v54, %v3680_v52  ;;  %v1878_v4 = vmul.f32 %v3171_v54, %v1758_v46  ;;  %v1629_v19 = vsel %vm985_vm13, %v1626_v45, %v1628_v2  ;;  %v2120_v12 = vmul.f32 %v3620_v62, %v3676_v34 }
  0xcf   : > { %v1716_v60 = vadd.f32 %v1627_v18, %v1472_v58  ;;  %v2121_v23 = vmul.f32 %v3620_v62, %v3680_v52  ;;  %v1717_v26 = vadd.f32 %v1629_v19, %v1473_v61  ;;  %v1986_v28 = vrot.slane %v1876_v59, 1 }
  0xd0   : > { %v1987_v31 = vrot.slane %v1877_v1, 1  ;;  %v1989_v29 = vrot.slane %v1878_v4, 1  ;;  %v2122_v33 = vmul.f32 %v3620_v62, %v1758_v46  ;;  %v2230_v6 = vrot.slane %v2120_v12, 2 }
  0xd1   : > { %v1833_v5 = vadd.f32 %v1801_v57, %v1716_v60  ;;  %v2231_v0 = vrot.slane %v2121_v23, 2  ;;  %v1834_v30 = vadd.f32 %v1802_v7, %v1717_v26  ;;  %v2830_v10 = vunpack.c.l.bf16 %v2929_v24 }
  0xd2   : > { %v1988_v8 = vsel %vm740_vm8, %v1986_v28, %v1987_v31  ;;  %v1990_v43 = vsel %vm740_vm8, %v1987_v31, %v1989_v29  ;;  %v2233_v38 = vrot.slane %v2122_v33, 2  ;;  %v2831_v56 = vunpack.c.h.bf16 %v2929_v24 }
  0xd3   : > { %v2077_v36 = vadd.f32 %v1988_v8, %v1833_v5  ;;  %v2232_v37 = vsel %vm985_vm13, %v2230_v6, %v2231_v0  ;;  %v2078_v35 = vadd.f32 %v1990_v43, %v1834_v30  ;;  %v306_v39 = vmul.f32 %v2830_v10, %v3039_v14 }
  0xd4   : > { %v592_v40 = vmul.f32 %v3599_v9, %v3046_v17  ;;  %v593_v41 = vmul.f32 %v3605_v49, %v3046_v17  ;;  %v2234_v42 = vsel %vm985_vm13, %v2231_v0, %v2233_v38  ;;  %v307_v32 = vmul.f32 %v2831_v56, %v3039_v14 }
  0xd5   : > { %v2321_v13 = vadd.f32 %v2232_v37, %v2077_v36  ;;  %v668_v47 = vmul.f32 %v3599_v9, %v3051_v21  ;;  %v2322_v53 = vadd.f32 %v2234_v42, %v2078_v35  ;;  %v342_v44 = vadd.f32 %v3041_v15, %v306_v39 }
  0xd6   : > { %v669_v45 = vmul.f32 %v3605_v49, %v3051_v21  ;;  %v670_v46 = vmul.f32 %v3051_v21, %v550_v55  ;;  %v343_v51 = vadd.f32 %v3041_v15, %v307_v32  ;;  %v913_v19 = vmul.f32 %v3599_v9, %v3054_v22 }
  0xd7   : > { %v2512_v48 = vadd.f32 %v3648_v3, %v2321_v13  ;;  %v2551_v63 = vmul.f32 %v2321_v13, %v2321_v13  ;;  %v781_v57 = vrot.slane %v668_v47, 1  ;;  %v2874_v58 = vpack.c.bf16 %v2322_v53, %v2321_v13  ;;  %v3748_v13 = vld [vmem:[#allocation2 + $0xf0] sm:$0xff] }
  0xd8   : > { %v2552_v18 = vmul.f32 %v2322_v53, %v2322_v53  ;;  %vm374_vm0 = vcmp.ge.f32.partialorder %v342_v44, 0.0  ;;  %v410_v2 = vmul.f32 %v3043_v16, %v342_v44  ;;  %vm375_vm1 = vcmp.ge.f32.partialorder %v343_v51, 0.0 }
  0xd9   : > { %v3718_v7 = vadd.f32 %v2512_v48, %v2322_v53  ;;  %v2582_v61 = vadd.f32 %v3655_v25, %v2551_v63  ;;  %v411_v59 = vmul.f32 %v3043_v16, %v343_v51  ;;  %2937 = vst [vmem:[%s3211_s30 + $0x38] sm:$0xff] %v2874_v58   ;;  %v782_v4 = vrot.slane %v669_v45, 1  ;;  %v1156_v25 = vld [vmem:[#allocation2 + $0xe8] sm:$0x3]  ;;  %v1761_v45 = vld [vmem:[#allocation2 + $0x100] sm:$0x3] }
  0xda   : > { %v442_v1 = vsel %vm374_vm0, %v342_v44, %v410_v2  ;;  %v784_v3 = vrot.slane %v670_v46, 1  ;;  %v914_v23 = vmul.f32 %v3605_v49, %v3054_v22  ;;  %v915_v24 = vmul.f32 %v3054_v22, %v550_v55  ;;  %v3751_v44 = vld [vmem:[#allocation2 + $0xf8] sm:$0xff] }
  0xdb   : > { %v3725_v60 = vadd.f32 %v2582_v61, %v2552_v18  ;;  %518 = vst [vmem:[#allocation2 + $0x169] sm:$0xff] %v442_v1  ;;  %v443_v12 = vsel %vm375_vm1, %v343_v51, %v411_v59  ;;  %v783_v26 = vsel %vm740_vm8, %v781_v57, %v782_v4  ;;  %v1026_v31 = vrot.slane %v913_v19, 2 }
  0xdc   : > { %519 = vst [vmem:[#allocation2 + $0x171] sm:$0xff] %v443_v12  ;;  %v785_v28 = vsel %vm740_vm8, %v782_v4, %v784_v3  ;;  %v1198_v29 = vmul.f32 %v3676_v34, %v3125_v20  ;;  %v869_v9 = vadd.f32 %v783_v26, %v592_v40  ;;  %v1027_v33 = vrot.slane %v914_v23, 2 }
  0xdd   : > { %v870_v5 = vadd.f32 %v785_v28, %v593_v41  ;;  %v1029_v6 = vrot.slane %v915_v24, 2  ;;  %v1199_v0 = vmul.f32 %v3680_v52, %v3125_v20  ;;  %v1274_v49 = vmul.f32 %v3676_v34, %v3130_v27 }
  0xde   : > { %v1275_v30 = vmul.f32 %v3680_v52, %v3130_v27  ;;  %v1276_v8 = vmul.f32 %v3130_v27, %v1156_v25  ;;  %v1028_v43 = vsel %vm985_vm13, %v1026_v31, %v1027_v33  ;;  %v1518_v36 = vmul.f32 %v3676_v34, %v3140_v11 }
  0xdf   : > { %v1030_v10 = vsel %vm985_vm13, %v1027_v33, %v1029_v6  ;;  %v1519_v37 = vmul.f32 %v3680_v52, %v3140_v11  ;;  %v1114_v38 = vadd.f32 %v1028_v43, %v869_v9  ;;  %v1386_v55 = vrot.slane %v1274_v49, 1  ;;  %v553_v33 = vld [vmem:[#allocation2 + $0xe8] sm:$0x3] }
  0xe0   : > { %v1115_v56 = vadd.f32 %v1030_v10, %v870_v5  ;;  %v1387_v35 = vrot.slane %v1275_v30, 1  ;;  %v1389_v39 = vrot.slane %v1276_v8, 1  ;;  %v1520_v40 = vmul.f32 %v3140_v11, %v1156_v25 }
  0xe1   : > { %v1630_v41 = vrot.slane %v1518_v36, 2  ;;  %v1631_v42 = vrot.slane %v1519_v37, 2  ;;  %v1230_v32 = vadd.f32 %v1198_v29, %v1114_v38  ;;  %v1803_v46 = vmul.f32 %v3164_v50, %v3748_v13 }
  0xe2   : > { %v1231_v47 = vadd.f32 %v1199_v0, %v1115_v56  ;;  %v1388_v53 = vsel %vm740_vm8, %v1386_v55, %v1387_v35  ;;  %v1390_v48 = vsel %vm740_vm8, %v1387_v35, %v1389_v39  ;;  %v1633_v51 = vrot.slane %v1520_v40, 2 }
  0xe3   : > { %v1632_v63 = vsel %vm985_vm13, %v1630_v41, %v1631_v42  ;;  %v1804_v57 = vmul.f32 %v3164_v50, %v3751_v44  ;;  %v1474_v58 = vadd.f32 %v1388_v53, %v1230_v32  ;;  %v1879_v2 = vmul.f32 %v3171_v54, %v3748_v13 }
  0xe4   : > { %v1475_v18 = vadd.f32 %v1390_v48, %v1231_v47  ;;  %v1880_v61 = vmul.f32 %v3171_v54, %v3751_v44  ;;  %v1634_v59 = vsel %vm985_vm13, %v1631_v42, %v1633_v51  ;;  %v1881_v1 = vmul.f32 %v3171_v54, %v1761_v45 }
  0xe5   : > { %v2123_v4 = vmul.f32 %v3620_v62, %v3748_v13  ;;  %v2124_v3 = vmul.f32 %v3620_v62, %v3751_v44  ;;  %v1718_v19 = vadd.f32 %v1632_v63, %v1474_v58  ;;  %v1991_v23 = vrot.slane %v1879_v2, 1 }
  0xe6   : > { %v1719_v12 = vadd.f32 %v1634_v59, %v1475_v18  ;;  %v1992_v24 = vrot.slane %v1880_v61, 1  ;;  %v1994_v25 = vrot.slane %v1881_v1, 1  ;;  %v2125_v26 = vmul.f32 %v3620_v62, %v1761_v45  ;;  %v1159_v1 = vld [vmem:[#allocation2 + $0x100] sm:$0x3] }
  0xe7   : > { %v2235_v28 = vrot.slane %v2123_v4, 2  ;;  %v2236_v31 = vrot.slane %v2124_v3, 2  ;;  %v1835_v29 = vadd.f32 %v1803_v46, %v1718_v19  ;;  %v594_v6 = vmul.f32 %v3676_v34, %v3046_v17 }
  0xe8   : > { %v1836_v9 = vadd.f32 %v1804_v57, %v1719_v12  ;;  %v1993_v5 = vsel %vm740_vm8, %v1991_v23, %v1992_v24  ;;  %v1995_v0 = vsel %vm740_vm8, %v1992_v24, %v1994_v25  ;;  %v2238_v30 = vrot.slane %v2125_v26, 2 }
  0xe9   : > { %v2237_v49 = vsel %vm985_vm13, %v2235_v28, %v2236_v31  ;;  %v595_v8 = vmul.f32 %v3680_v52, %v3046_v17  ;;  %v2079_v43 = vadd.f32 %v1993_v5, %v1835_v29  ;;  %v671_v36 = vmul.f32 %v3676_v34, %v3051_v21 }
  0xea   : > { %v2080_v10 = vadd.f32 %v1995_v0, %v1836_v9  ;;  %v672_v37 = vmul.f32 %v3680_v52, %v3051_v21  ;;  %v2239_v38 = vsel %vm985_vm13, %v2236_v31, %v2238_v30  ;;  %v673_v56 = vmul.f32 %v3051_v21, %v553_v33 }
  0xeb   : > { %v916_v55 = vmul.f32 %v3676_v34, %v3054_v22  ;;  %v917_v35 = vmul.f32 %v3680_v52, %v3054_v22  ;;  %v2323_v39 = vadd.f32 %v2237_v49, %v2079_v43  ;;  %v786_v41 = vrot.slane %v671_v36, 1  ;;  %v1764_v43 = vld [vmem:[#allocation2 + $0x118] sm:$0x3] }
  0xec   : > { %v2324_v40 = vadd.f32 %v2239_v38, %v2080_v10  ;;  %v787_v42 = vrot.slane %v672_v37, 1  ;;  %v789_v32 = vrot.slane %v673_v56, 1  ;;  %v918_v47 = vmul.f32 %v3054_v22, %v553_v33 }
  0xed   : > { %v1031_v53 = vrot.slane %v916_v55, 2  ;;  %v1032_v45 = vrot.slane %v917_v35, 2  ;;  %v2514_v48 = vadd.f32 %v3718_v7, %v2323_v39  ;;  %v2553_v63 = vmul.f32 %v2323_v39, %v2323_v39 }
  0xee   : > { %v2879_v46 = vpack.c.bf16 %v2324_v40, %v2323_v39  ;;  %v2554_v51 = vmul.f32 %v2324_v40, %v2324_v40  ;;  %v788_v34 = vsel %vm740_vm8, %v786_v41, %v787_v42  ;;  %v790_v57 = vsel %vm740_vm8, %v787_v42, %v789_v32  ;;  %v2930_v41 = vld [vmem:[%s3032_s25 + $0x78] sm:$0xff]  }
  0xef   : > { %v1033_v52 = vsel %vm985_vm13, %v1031_v53, %v1032_v45  ;;  %v1034_v58 = vrot.slane %v918_v47, 2  ;;  %v3793_v18 = vadd.f32 %v2514_v48, %v2324_v40  ;;  %v2584_v2 = vadd.f32 %v3725_v60, %v2553_v63 }
  0xf0   : > { %2938 = vst [vmem:[%s3211_s30 + $0x40] sm:$0xff] %v2879_v46   ;;  %v871_v61 = vadd.f32 %v788_v34, %v594_v6  ;;  %v872_v59 = vadd.f32 %v790_v57, %v595_v8  ;;  %v1200_v7 = vmul.f32 %v3748_v13, %v3125_v20  ;;  %v1201_v3 = vmul.f32 %v3751_v44, %v3125_v20  ;;  %v3813_v6 = vld [vmem:[#allocation2 + $0x108] sm:$0xff]  ;;  %v3815_v8 = vld [vmem:[#allocation2 + $0x110] sm:$0xff] }
  0xf1   : > { %v1035_v4 = vsel %vm985_vm13, %v1032_v45, %v1034_v58  ;;  %v1277_v19 = vmul.f32 %v3748_v13, %v3130_v27  ;;  %v3803_v12 = vadd.f32 %v2584_v2, %v2554_v51  ;;  %v1278_v60 = vmul.f32 %v3751_v44, %v3130_v27 }
  0xf2   : > { %v1116_v23 = vadd.f32 %v1033_v52, %v871_v61  ;;  %v1117_v24 = vadd.f32 %v1035_v4, %v872_v59  ;;  %v1279_v25 = vmul.f32 %v3130_v27, %v1159_v1  ;;  %v1521_v28 = vmul.f32 %v3748_v13, %v3140_v11 }
  0xf3   : > { %v1391_v26 = vrot.slane %v1277_v19, 1  ;;  %v1522_v31 = vmul.f32 %v3751_v44, %v3140_v11  ;;  %v1392_v5 = vrot.slane %v1278_v60, 1  ;;  %v1523_v33 = vmul.f32 %v3140_v11, %v1159_v1  ;;  %v556_v60 = vld [vmem:[#allocation2 + $0x100] sm:$0x3] }
  0xf4   : > { %v1232_v29 = vadd.f32 %v1200_v7, %v1116_v23  ;;  %v1233_v9 = vadd.f32 %v1201_v3, %v1117_v24  ;;  %v1394_v0 = vrot.slane %v1279_v25, 1  ;;  %v1635_v49 = vrot.slane %v1521_v28, 2 }
  0xf5   : > { %v1636_v30 = vrot.slane %v1522_v31, 2  ;;  %v1805_v10 = vmul.f32 %v3164_v50, %v3813_v6  ;;  %v1393_v36 = vsel %vm740_vm8, %v1391_v26, %v1392_v5  ;;  %v1638_v37 = vrot.slane %v1523_v33, 2 }
  0xf6   : > { %v1806_v38 = vmul.f32 %v3164_v50, %v3815_v8  ;;  %v1882_v56 = vmul.f32 %v3171_v54, %v3813_v6  ;;  %v1395_v55 = vsel %vm740_vm8, %v1392_v5, %v1394_v0  ;;  %v1476_v35 = vadd.f32 %v1393_v36, %v1232_v29 }
  0xf7   : > { %v1637_v39 = vsel %vm985_vm13, %v1635_v49, %v1636_v30  ;;  %v1883_v40 = vmul.f32 %v3171_v54, %v3815_v8  ;;  %v1477_v42 = vadd.f32 %v1395_v55, %v1233_v9  ;;  %v1639_v32 = vsel %vm985_vm13, %v1636_v30, %v1638_v37 }
  0xf8   : > { %v1884_v47 = vmul.f32 %v3171_v54, %v1764_v43  ;;  %v1996_v53 = vrot.slane %v1882_v56, 1  ;;  %v1720_v45 = vadd.f32 %v1637_v39, %v1476_v35  ;;  %v2126_v48 = vmul.f32 %v3620_v62, %v3813_v6 }
  0xf9   : > { %v1997_v46 = vrot.slane %v1883_v40, 1  ;;  %v2127_v63 = vmul.f32 %v3620_v62, %v3815_v8  ;;  %v1721_v51 = vadd.f32 %v1639_v32, %v1477_v42  ;;  %v2128_v57 = vmul.f32 %v3620_v62, %v1764_v43 }
  0xfa   : > { %v1999_v34 = vrot.slane %v1884_v47, 1  ;;  %v2834_v52 = vunpack.c.l.bf16 %v2930_v41  ;;  %v1837_v58 = vadd.f32 %v1805_v10, %v1720_v45  ;;  %v2240_v61 = vrot.slane %v2126_v48, 2 }
  0xfb   : > { %v1998_v2 = vsel %vm740_vm8, %v1996_v53, %v1997_v46  ;;  %v2241_v59 = vrot.slane %v2127_v63, 2  ;;  %v1838_v1 = vadd.f32 %v1806_v38, %v1721_v51  ;;  %v2243_v7 = vrot.slane %v2128_v57, 2 }
  0xfc   : > { %v2000_v4 = vsel %vm740_vm8, %v1997_v46, %v1999_v34  ;;  %v308_v3 = vmul.f32 %v2834_v52, %v3039_v14  ;;  %v2081_v19 = vadd.f32 %v1998_v2, %v1837_v58  ;;  %v2835_v24 = vunpack.c.h.bf16 %v2930_v41  ;;  %v1162_v46 = vld [vmem:[#allocation2 + $0x118] sm:$0x3] }
  0xfd   : > { %v2242_v23 = vsel %vm985_vm13, %v2240_v61, %v2241_v59  ;;  %v596_v25 = vmul.f32 %v3748_v13, %v3046_v17  ;;  %v2082_v26 = vadd.f32 %v2000_v4, %v1838_v1  ;;  %v2244_v28 = vsel %vm985_vm13, %v2241_v59, %v2243_v7 }
  0xfe   : > { %v344_v31 = vadd.f32 %v3041_v15, %v308_v3  ;;  %v597_v29 = vmul.f32 %v3751_v44, %v3046_v17  ;;  %v2325_v9 = vadd.f32 %v2242_v23, %v2081_v19  ;;  %v309_v5 = vmul.f32 %v2835_v24, %v3039_v14 }
  0xff   : > { %v674_v33 = vmul.f32 %v3748_v13, %v3051_v21  ;;  %v675_v0 = vmul.f32 %v3751_v44, %v3051_v21  ;;  %v2326_v49 = vadd.f32 %v2244_v28, %v2082_v26  ;;  %v676_v43 = vmul.f32 %v3051_v21, %v556_v60 }
 0x100   : > { %vm376_vm2 = vcmp.ge.f32.partialorder %v344_v31, 0.0  ;;  %v412_v30 = vmul.f32 %v3043_v16, %v344_v31  ;;  %v2516_v10 = vadd.f32 %v3793_v18, %v2325_v9  ;;  %v2555_v36 = vmul.f32 %v2325_v9, %v2325_v9 }
 0x101   : > { %v345_v37 = vadd.f32 %v3041_v15, %v309_v5  ;;  %v791_v38 = vrot.slane %v674_v33, 1  ;;  %v2884_v14 = vpack.c.bf16 %v2326_v49, %v2325_v9  ;;  %v2556_v56 = vmul.f32 %v2326_v49, %v2326_v49 }
 0x102   : > { %v444_v55 = vsel %vm376_vm2, %v344_v31, %v412_v30  ;;  %v792_v35 = vrot.slane %v675_v0, 1  ;;  %v3855_v39 = vadd.f32 %v2516_v10, %v2326_v49  ;;  %v2586_v40 = vadd.f32 %v3803_v12, %v2555_v36  ;;  %v1767_v31 = vld [vmem:[#allocation2 + $0x130] sm:$0x3]  ;;  %v3891_v49 = vld [vmem:[#allocation2 + $0x128] sm:$0xff] }
 0x103   : > { %520 = vst [vmem:[#allocation2 + $0x181] sm:$0xff] %v444_v55  ;;  %vm377_vm3 = vcmp.ge.f32.partialorder %v345_v37, 0.0  ;;  %v413_v41 = vmul.f32 %v3043_v16, %v345_v37  ;;  %2939 = vst [vmem:[%s3211_s30 + $0x48] sm:$0xff] %v2884_v14   ;;  %v794_v18 = vrot.slane %v676_v43, 1  ;;  %v919_v15 = vmul.f32 %v3748_v13, %v3054_v22 }
 0x104   : > { %v793_v42 = vsel %vm740_vm8, %v791_v38, %v792_v35  ;;  %v920_v32 = vmul.f32 %v3751_v44, %v3054_v22  ;;  %v3865_v47 = vadd.f32 %v2586_v40, %v2556_v56  ;;  %v921_v12 = vmul.f32 %v3054_v22, %v556_v60  ;;  %v3885_v60 = vld [vmem:[#allocation2 + $0x120] sm:$0xff] }
 0x105   : > { %v445_v53 = vsel %vm377_vm3, %v345_v37, %v413_v41  ;;  %v873_v45 = vadd.f32 %v793_v42, %v596_v25  ;;  %v795_v16 = vsel %vm740_vm8, %v792_v35, %v794_v18  ;;  %v1036_v48 = vrot.slane %v919_v15, 2 }
 0x106   : > { %521 = vst [vmem:[#allocation2 + $0x189] sm:$0xff] %v445_v53  ;;  %v1037_v63 = vrot.slane %v920_v32, 2  ;;  %v1202_v51 = vmul.f32 %v3813_v6, %v3125_v20  ;;  %v874_v34 = vadd.f32 %v795_v16, %v597_v29  ;;  %v1039_v13 = vrot.slane %v921_v12, 2 }
 0x107   : > { %v1203_v44 = vmul.f32 %v3815_v8, %v3125_v20  ;;  %v1280_v57 = vmul.f32 %v3813_v6, %v3130_v27  ;;  %v1281_v58 = vmul.f32 %v3815_v8, %v3130_v27  ;;  %v1282_v2 = vmul.f32 %v3130_v27, %v1162_v46 }
 0x108   : > { %v1038_v52 = vsel %vm985_vm13, %v1036_v48, %v1037_v63  ;;  %v1524_v61 = vmul.f32 %v3813_v6, %v3140_v11  ;;  %v1040_v59 = vsel %vm985_vm13, %v1037_v63, %v1039_v13  ;;  %v1525_v7 = vmul.f32 %v3815_v8, %v3140_v11 }
 0x109   : > { %v1118_v1 = vadd.f32 %v1038_v52, %v873_v45  ;;  %v1396_v4 = vrot.slane %v1280_v57, 1  ;;  %v1119_v3 = vadd.f32 %v1040_v59, %v874_v34  ;;  %v1397_v19 = vrot.slane %v1281_v58, 1 }
 0x10a   : > { %v1399_v23 = vrot.slane %v1282_v2, 1  ;;  %v1526_v24 = vmul.f32 %v3140_v11, %v1162_v46  ;;  %v1640_v26 = vrot.slane %v1524_v61, 2  ;;  %v1641_v28 = vrot.slane %v1525_v7, 2  ;;  %v559_v46 = vld [vmem:[#allocation2 + $0x118] sm:$0x3] }
 0x10b   : > { %v1234_v25 = vadd.f32 %v1202_v51, %v1118_v1  ;;  %v1807_v29 = vmul.f32 %v3164_v50, %v3885_v60  ;;  %v1235_v9 = vadd.f32 %v1203_v44, %v1119_v3  ;;  %v1398_v5 = vsel %vm740_vm8, %v1396_v4, %v1397_v19 }
 0x10c   : > { %v1400_v33 = vsel %vm740_vm8, %v1397_v19, %v1399_v23  ;;  %v1643_v0 = vrot.slane %v1526_v24, 2  ;;  %v1642_v43 = vsel %vm985_vm13, %v1640_v26, %v1641_v28  ;;  %v1808_v10 = vmul.f32 %v3164_v50, %v3891_v49 }
 0x10d   : > { %v1478_v30 = vadd.f32 %v1398_v5, %v1234_v25  ;;  %v1885_v36 = vmul.f32 %v3171_v54, %v3885_v60  ;;  %v1479_v37 = vadd.f32 %v1400_v33, %v1235_v9  ;;  %v1886_v14 = vmul.f32 %v3171_v54, %v3891_v49 }
 0x10e   : > { %v1644_v38 = vsel %vm985_vm13, %v1641_v28, %v1643_v0  ;;  %v1887_v56 = vmul.f32 %v3171_v54, %v1767_v31  ;;  %v2129_v40 = vmul.f32 %v3620_v62, %v3885_v60  ;;  %v2130_v41 = vmul.f32 %v3620_v62, %v3891_v49 }
 0x10f   : > { %v1722_v55 = vadd.f32 %v1642_v43, %v1478_v30  ;;  %v2001_v35 = vrot.slane %v1885_v36, 1  ;;  %v1723_v42 = vadd.f32 %v1644_v38, %v1479_v37  ;;  %v2002_v18 = vrot.slane %v1886_v14, 1 }
 0x110   : > { %v2004_v15 = vrot.slane %v1887_v56, 1  ;;  %v2131_v32 = vmul.f32 %v3620_v62, %v1767_v31  ;;  %v2245_v45 = vrot.slane %v2129_v40, 2  ;;  %v2246_v12 = vrot.slane %v2130_v41, 2 }
 0x111   : > { %v1839_v53 = vadd.f32 %v1807_v29, %v1722_v55  ;;  %v598_v16 = vmul.f32 %v3813_v6, %v3046_v17  ;;  %v1840_v48 = vadd.f32 %v1808_v10, %v1723_v42  ;;  %v2003_v63 = vsel %vm740_vm8, %v2001_v35, %v2002_v18  ;;  %v1165_v10 = vld [vmem:[#allocation2 + $0x130] sm:$0x3] }
 0x112   : > { %v2005_v51 = vsel %vm740_vm8, %v2002_v18, %v2004_v15  ;;  %v2248_v34 = vrot.slane %v2131_v32, 2  ;;  %v2247_v44 = vsel %vm985_vm13, %v2245_v45, %v2246_v12  ;;  %v599_v57 = vmul.f32 %v3815_v8, %v3046_v17  ;;  %v3949_v45 = vld [vmem:[#allocation2 + $0x138] sm:$0xff] }
 0x113   : > { %v2083_v13 = vadd.f32 %v2003_v63, %v1839_v53  ;;  %v677_v52 = vmul.f32 %v3813_v6, %v3051_v21  ;;  %v2084_v58 = vadd.f32 %v2005_v51, %v1840_v48  ;;  %v678_v61 = vmul.f32 %v3815_v8, %v3051_v21  ;;  %v3952_v63 = vld [vmem:[#allocation2 + $0x140] sm:$0xff]  ;;  %v1770_v51 = vld [vmem:[#allocation2 + $0x148] sm:$0x3] }
 0x114   : > { %v2249_v2 = vsel %vm985_vm13, %v2246_v12, %v2248_v34  ;;  %v679_v59 = vmul.f32 %v3051_v21, %v559_v46  ;;  %v922_v7 = vmul.f32 %v3813_v6, %v3054_v22  ;;  %v923_v3 = vmul.f32 %v3815_v8, %v3054_v22 }
 0x115   : > { %v2327_v1 = vadd.f32 %v2247_v44, %v2083_v13  ;;  %v796_v4 = vrot.slane %v677_v52, 1  ;;  %v2328_v19 = vadd.f32 %v2249_v2, %v2084_v58  ;;  %v797_v23 = vrot.slane %v678_v61, 1 }
 0x116   : > { %v799_v24 = vrot.slane %v679_v59, 1  ;;  %v924_v25 = vmul.f32 %v3054_v22, %v559_v46  ;;  %v1041_v31 = vrot.slane %v922_v7, 2  ;;  %v1042_v29 = vrot.slane %v923_v3, 2 }
 0x117   : > { %v2518_v26 = vadd.f32 %v3855_v39, %v2327_v1  ;;  %v2557_v28 = vmul.f32 %v2327_v1, %v2327_v1  ;;  %v2889_v9 = vpack.c.bf16 %v2328_v19, %v2327_v1  ;;  %v2558_v5 = vmul.f32 %v2328_v19, %v2328_v19 }
 0x118   : > { %v798_v33 = vsel %vm740_vm8, %v796_v4, %v797_v23  ;;  %v800_v6 = vsel %vm740_vm8, %v797_v23, %v799_v24  ;;  %v1043_v36 = vsel %vm985_vm13, %v1041_v31, %v1042_v29  ;;  %v1044_v39 = vrot.slane %v924_v25, 2 }
 0x119   : > { %v3928_v0 = vadd.f32 %v2518_v26, %v2328_v19  ;;  %v2588_v8 = vadd.f32 %v3865_v47, %v2557_v28  ;;  %v875_v30 = vadd.f32 %v798_v33, %v598_v16  ;;  %v876_v43 = vadd.f32 %v800_v6, %v599_v57  ;;  %2940 = vst [vmem:[%s3211_s30 + $0x50] sm:$0xff] %v2889_v9   ;;  %v562_v6 = vld [vmem:[#allocation2 + $0x130] sm:$0x3] }
 0x11a   : > { %v1204_v37 = vmul.f32 %v3885_v60, %v3125_v20  ;;  %v1205_v38 = vmul.f32 %v3891_v49, %v3125_v20  ;;  %v1283_v55 = vmul.f32 %v3885_v60, %v3130_v27  ;;  %v1284_v47 = vmul.f32 %v3891_v49, %v3130_v27 }
 0x11b   : > { %v3937_v14 = vadd.f32 %v2588_v8, %v2558_v5  ;;  %v1120_v56 = vadd.f32 %v1043_v36, %v875_v30  ;;  %v1045_v35 = vsel %vm985_vm13, %v1042_v29, %v1044_v39  ;;  %v1285_v40 = vmul.f32 %v3130_v27, %v1165_v10 }
 0x11c   : > { %v1527_v41 = vmul.f32 %v3885_v60, %v3140_v11  ;;  %v1528_v42 = vmul.f32 %v3891_v49, %v3140_v11  ;;  %v1121_v18 = vadd.f32 %v1045_v35, %v876_v43  ;;  %v1401_v32 = vrot.slane %v1283_v55, 1 }
 0x11d   : > { %v1236_v15 = vadd.f32 %v1204_v37, %v1120_v56  ;;  %v1402_v53 = vrot.slane %v1284_v47, 1  ;;  %v1404_v12 = vrot.slane %v1285_v40, 1  ;;  %v1529_v46 = vmul.f32 %v3140_v11, %v1165_v10 }
 0x11e   : > { %v1645_v16 = vrot.slane %v1527_v41, 2  ;;  %v1646_v48 = vrot.slane %v1528_v42, 2  ;;  %v1237_v34 = vadd.f32 %v1205_v38, %v1121_v18  ;;  %v1809_v44 = vmul.f32 %v3164_v50, %v3949_v45 }
 0x11f   : > { %v1403_v13 = vsel %vm740_vm8, %v1401_v32, %v1402_v53  ;;  %v1810_v57 = vmul.f32 %v3164_v50, %v3952_v63  ;;  %v1405_v52 = vsel %vm740_vm8, %v1402_v53, %v1404_v12  ;;  %v1648_v61 = vrot.slane %v1529_v46, 2 }
 0x120   : > { %v1480_v58 = vadd.f32 %v1403_v13, %v1236_v15  ;;  %v1647_v2 = vsel %vm985_vm13, %v1645_v16, %v1646_v48  ;;  %v1481_v59 = vadd.f32 %v1405_v52, %v1237_v34  ;;  %v1888_v1 = vmul.f32 %v3171_v54, %v3949_v45 }
 0x121   : > { %v1889_v4 = vmul.f32 %v3171_v54, %v3952_v63  ;;  %v1890_v7 = vmul.f32 %v3171_v54, %v1770_v51  ;;  %v1649_v3 = vsel %vm985_vm13, %v1646_v48, %v1648_v61  ;;  %v2132_v23 = vmul.f32 %v3620_v62, %v3949_v45 }
 0x122   : > { %v1724_v19 = vadd.f32 %v1647_v2, %v1480_v58  ;;  %v2133_v24 = vmul.f32 %v3620_v62, %v3952_v63  ;;  %v1725_v25 = vadd.f32 %v1649_v3, %v1481_v59  ;;  %v2006_v26 = vrot.slane %v1888_v1, 1 }
 0x123   : > { %v2007_v28 = vrot.slane %v1889_v4, 1  ;;  %v2009_v31 = vrot.slane %v1890_v7, 1  ;;  %v2134_v9 = vmul.f32 %v3620_v62, %v1770_v51  ;;  %v2250_v5 = vrot.slane %v2132_v23, 2 }
 0x124   : > { %v1841_v29 = vadd.f32 %v1809_v44, %v1724_v19  ;;  %v2251_v33 = vrot.slane %v2133_v24, 2  ;;  %v1842_v8 = vadd.f32 %v1810_v57, %v1725_v25  ;;  %v600_v10 = vmul.f32 %v3885_v60, %v3046_v17  ;;  %v1168_v44 = vld [vmem:[#allocation2 + $0x148] sm:$0x3] }
 0x125   : > { %v2008_v30 = vsel %vm740_vm8, %v2006_v26, %v2007_v28  ;;  %v2010_v43 = vsel %vm740_vm8, %v2007_v28, %v2009_v31  ;;  %v2253_v37 = vrot.slane %v2134_v9, 2  ;;  %v601_v38 = vmul.f32 %v3891_v49, %v3046_v17 }
 0x126   : > { %v2085_v36 = vadd.f32 %v2008_v30, %v1841_v29  ;;  %v2252_v39 = vsel %vm985_vm13, %v2250_v5, %v2251_v33  ;;  %v2086_v56 = vadd.f32 %v2010_v43, %v1842_v8  ;;  %v680_v62 = vmul.f32 %v3885_v60, %v3051_v21 }
 0x127   : > { %v681_v55 = vmul.f32 %v3891_v49, %v3051_v21  ;;  %v682_v47 = vmul.f32 %v3051_v21, %v562_v6  ;;  %v2254_v35 = vsel %vm985_vm13, %v2251_v33, %v2253_v37  ;;  %v925_v41 = vmul.f32 %v3885_v60, %v3054_v22 }
 0x128   : > { %v2329_v40 = vadd.f32 %v2252_v39, %v2085_v36  ;;  %v926_v42 = vmul.f32 %v3891_v49, %v3054_v22  ;;  %v2330_v18 = vadd.f32 %v2254_v35, %v2086_v56  ;;  %v801_v15 = vrot.slane %v680_v62, 1  ;;  %v1773_v36 = vld [vmem:[#allocation2 + $0x160] sm:$0x3] }
 0x129   : > { %v802_v32 = vrot.slane %v681_v55, 1  ;;  %v804_v53 = vrot.slane %v682_v47, 1  ;;  %v927_v16 = vmul.f32 %v3054_v22, %v562_v6  ;;  %v1046_v48 = vrot.slane %v925_v41, 2  ;;  %v4015_v6 = vld [vmem:[#allocation2 + $0x150] sm:$0xff] }
 0x12a   : > { %v2520_v12 = vadd.f32 %v3928_v0, %v2329_v40  ;;  %v2559_v46 = vmul.f32 %v2329_v40, %v2329_v40  ;;  %v2894_v51 = vpack.c.bf16 %v2330_v18, %v2329_v40  ;;  %v2560_v34 = vmul.f32 %v2330_v18, %v2330_v18 }
 0x12b   : > { %v803_v13 = vsel %vm740_vm8, %v801_v15, %v802_v32  ;;  %v805_v60 = vsel %vm740_vm8, %v802_v32, %v804_v53  ;;  %v1047_v2 = vrot.slane %v926_v42, 2  ;;  %v1049_v0 = vrot.slane %v927_v16, 2 }
 0x12c   : > { %v3993_v57 = vadd.f32 %v2520_v12, %v2330_v18  ;;  %v2590_v49 = vadd.f32 %v3937_v14, %v2559_v46  ;;  %v877_v52 = vadd.f32 %v803_v13, %v600_v10  ;;  %v878_v58 = vadd.f32 %v805_v60, %v601_v38  ;;  %2941 = vst [vmem:[%s3211_s30 + $0x58] sm:$0xff] %v2894_v51   ;;  %v4018_v10 = vld [vmem:[#allocation2 + $0x158] sm:$0xff]  ;;  %v4035_v18 = vld [vmem:[%s4243_s2 + $0x8] ss:$0 sm:$0xff] }
 0x12d   : > { %v1206_v61 = vmul.f32 %v3949_v45, %v3125_v20  ;;  %v1207_v59 = vmul.f32 %v3952_v63, %v3125_v20  ;;  %v1286_v4 = vmul.f32 %v3949_v45, %v3130_v27  ;;  %v1287_v7 = vmul.f32 %v3952_v63, %v3130_v27 }
 0x12e   : > { %v4001_v1 = vadd.f32 %v2590_v49, %v2560_v34  ;;  %v1288_v14 = vmul.f32 %v3130_v27, %v1168_v44  ;;  %v1048_v3 = vsel %vm985_vm13, %v1046_v48, %v1047_v2  ;;  %v1050_v19 = vsel %vm985_vm13, %v1047_v2, %v1049_v0 }
 0x12f   : > { %v1530_v23 = vmul.f32 %v3949_v45, %v3140_v11  ;;  %v1531_v24 = vmul.f32 %v3952_v63, %v3140_v11  ;;  %v1122_v25 = vadd.f32 %v1048_v3, %v877_v52  ;;  %v1123_v26 = vadd.f32 %v1050_v19, %v878_v58  ;;  %v565_v52 = vld [vmem:[#allocation2 + $0x148] sm:$0x3] }
 0x130   : > { %v1406_v28 = vrot.slane %v1286_v4, 1  ;;  %v1407_v31 = vrot.slane %v1287_v7, 1  ;;  %v1409_v29 = vrot.slane %v1288_v14, 1  ;;  %v1532_v9 = vmul.f32 %v3140_v11, %v1168_v44 }
 0x131   : > { %v1650_v5 = vrot.slane %v1530_v23, 2  ;;  %v1651_v33 = vrot.slane %v1531_v24, 2  ;;  %v1238_v8 = vadd.f32 %v1206_v61, %v1122_v25  ;;  %v1239_v30 = vadd.f32 %v1207_v59, %v1123_v26 }
 0x132   : > { %v1408_v43 = vsel %vm740_vm8, %v1406_v28, %v1407_v31  ;;  %v1811_v39 = vmul.f32 %v3164_v50, %v4015_v6  ;;  %v1410_v37 = vsel %vm740_vm8, %v1407_v31, %v1409_v29  ;;  %v1653_v56 = vrot.slane %v1532_v9, 2 }
 0x133   : > { %v1652_v38 = vsel %vm985_vm13, %v1650_v5, %v1651_v33  ;;  %v1812_v62 = vmul.f32 %v3164_v50, %v4018_v10  ;;  %v1482_v55 = vadd.f32 %v1408_v43, %v1238_v8  ;;  %v1483_v47 = vadd.f32 %v1410_v37, %v1239_v30 }
 0x134   : > { %v1891_v35 = vmul.f32 %v3171_v54, %v4015_v6  ;;  %v1892_v40 = vmul.f32 %v3171_v54, %v4018_v10  ;;  %v1654_v41 = vsel %vm985_vm13, %v1651_v33, %v1653_v56  ;;  %v1893_v42 = vmul.f32 %v3171_v54, %v1773_v36 }
 0x135   : > { %v2135_v15 = vmul.f32 %v4035_v18, %v4015_v6  ;;  %v2136_v32 = vmul.f32 %v4035_v18, %v4018_v10  ;;  %v1726_v53 = vadd.f32 %v1652_v38, %v1482_v55  ;;  %v1727_v12 = vadd.f32 %v1654_v41, %v1483_v47 }
 0x136   : > { %v2011_v46 = vrot.slane %v1891_v35, 1  ;;  %v2012_v16 = vrot.slane %v1892_v40, 1  ;;  %v2014_v48 = vrot.slane %v1893_v42, 1  ;;  %v2137_v51 = vmul.f32 %v4035_v18, %v1773_v36  ;;  %v1171_v35 = vld [vmem:[#allocation2 + $0x160] sm:$0x3] }
 0x137   : > { %v2255_v34 = vrot.slane %v2135_v15, 2  ;;  %v2256_v13 = vrot.slane %v2136_v32, 2  ;;  %v1843_v60 = vadd.f32 %v1811_v39, %v1726_v53  ;;  %v1844_v44 = vadd.f32 %v1812_v62, %v1727_v12 }
 0x138   : > { %v2013_v49 = vsel %vm740_vm8, %v2011_v46, %v2012_v16  ;;  %v602_v58 = vmul.f32 %v3949_v45, %v3046_v17  ;;  %v2015_v2 = vsel %vm740_vm8, %v2012_v16, %v2014_v48  ;;  %v2258_v61 = vrot.slane %v2137_v51, 2  ;;  %v4084_v51 = vld [vmem:[#allocation2 + $0x168] sm:$0xff] }
 0x139   : > { %v2257_v0 = vsel %vm985_vm13, %v2255_v34, %v2256_v13  ;;  %v603_v59 = vmul.f32 %v3952_v63, %v3046_v17  ;;  %v2087_v4 = vadd.f32 %v2013_v49, %v1843_v60  ;;  %v2088_v7 = vadd.f32 %v2015_v2, %v1844_v44  ;;  %v4087_v49 = vld [vmem:[#allocation2 + $0x170] sm:$0xff] }
 0x13a   : > { %v683_v14 = vmul.f32 %v3949_v45, %v3051_v21  ;;  %v684_v3 = vmul.f32 %v3952_v63, %v3051_v21  ;;  %v2259_v19 = vsel %vm985_vm13, %v2256_v13, %v2258_v61  ;;  %v685_v23 = vmul.f32 %v3051_v21, %v565_v52 }
 0x13b   : > { %v928_v24 = vmul.f32 %v3949_v45, %v3054_v22  ;;  %v929_v25 = vmul.f32 %v3952_v63, %v3054_v22  ;;  %v2331_v26 = vadd.f32 %v2257_v0, %v2087_v4  ;;  %v2332_v28 = vadd.f32 %v2259_v19, %v2088_v7  ;;  %v1776_v0 = vld [vmem:[#allocation2 + $0x178] sm:$0x3] }
 0x13c   : > { %v806_v31 = vrot.slane %v683_v14, 1  ;;  %v807_v29 = vrot.slane %v684_v3, 1  ;;  %v809_v9 = vrot.slane %v685_v23, 1  ;;  %v930_v5 = vmul.f32 %v3054_v22, %v565_v52 }
 0x13d   : > { %v1051_v33 = vrot.slane %v928_v24, 2  ;;  %v1052_v8 = vrot.slane %v929_v25, 2  ;;  %v2899_v30 = vpack.c.bf16 %v2332_v28, %v2331_v26  ;;  %v2522_v43 = vadd.f32 %v3993_v57, %v2331_v26 }
 0x13e   : > { %v2561_v36 = vmul.f32 %v2331_v26, %v2331_v26  ;;  %v2562_v39 = vmul.f32 %v2332_v28, %v2332_v28  ;;  %v808_v45 = vsel %vm740_vm8, %v806_v31, %v807_v29  ;;  %v810_v37 = vsel %vm740_vm8, %v807_v29, %v809_v9 }
 0x13f   : > { %v1053_v63 = vsel %vm985_vm13, %v1051_v33, %v1052_v8  ;;  %v1054_v38 = vrot.slane %v930_v5, 2  ;;  %2942 = vst [vmem:[%s3211_s30 + $0x60] sm:$0xff] %v2899_v30   ;;  %v4065_v56 = vadd.f32 %v2522_v43, %v2332_v28  ;;  %v879_v55 = vadd.f32 %v808_v45, %v602_v58 }
 0x140   : > { %v2592_v62 = vadd.f32 %v4001_v1, %v2561_v36  ;;  %v880_v47 = vadd.f32 %v810_v37, %v603_v59  ;;  %v1208_v57 = vmul.f32 %v4015_v6, %v3125_v20  ;;  %v1209_v41 = vmul.f32 %v4018_v10, %v3125_v20 }
 0x141   : > { %v1055_v40 = vsel %vm985_vm13, %v1052_v8, %v1054_v38  ;;  %v1289_v42 = vmul.f32 %v4015_v6, %v3130_v27  ;;  %v1124_v32 = vadd.f32 %v1053_v63, %v879_v55  ;;  %v1290_v1 = vmul.f32 %v4018_v10, %v3130_v27  ;;  %v568_v38 = vld [vmem:[#allocation2 + $0x160] sm:$0x3] }
 0x142   : > { %v4075_v15 = vadd.f32 %v2592_v62, %v2562_v39  ;;  %v1125_v53 = vadd.f32 %v1055_v40, %v880_v47  ;;  %v1291_v12 = vmul.f32 %v3130_v27, %v1171_v35  ;;  %v1533_v16 = vmul.f32 %v4015_v6, %v3140_v11 }
 0x143   : > { %v1411_v46 = vrot.slane %v1289_v42, 1  ;;  %v1534_v48 = vmul.f32 %v4018_v10, %v3140_v11  ;;  %v1240_v34 = vadd.f32 %v1208_v57, %v1124_v32  ;;  %v1412_v60 = vrot.slane %v1290_v1, 1 }
 0x144   : > { %v1241_v13 = vadd.f32 %v1209_v41, %v1125_v53  ;;  %v1535_v44 = vmul.f32 %v3140_v11, %v1171_v35  ;;  %v1414_v52 = vrot.slane %v1291_v12, 1  ;;  %v1655_v58 = vrot.slane %v1533_v16, 2 }
 0x145   : > { %v1656_v2 = vrot.slane %v1534_v48, 2  ;;  %v1813_v61 = vmul.f32 %v3164_v50, %v4084_v51  ;;  %v1413_v59 = vsel %vm740_vm8, %v1411_v46, %v1412_v60  ;;  %v1814_v7 = vmul.f32 %v3164_v50, %v4087_v49 }
 0x146   : > { %v1658_v4 = vrot.slane %v1535_v44, 2  ;;  %v1894_v14 = vmul.f32 %v3171_v54, %v4084_v51  ;;  %v1415_v3 = vsel %vm740_vm8, %v1412_v60, %v1414_v52  ;;  %v1484_v19 = vadd.f32 %v1413_v59, %v1240_v34 }
 0x147   : > { %v1657_v23 = vsel %vm985_vm13, %v1655_v58, %v1656_v2  ;;  %v1895_v24 = vmul.f32 %v3171_v54, %v4087_v49  ;;  %v1485_v25 = vadd.f32 %v1415_v3, %v1241_v13  ;;  %v1896_v28 = vmul.f32 %v3171_v54, %v1776_v0 }
 0x148   : > { %v1659_v26 = vsel %vm985_vm13, %v1656_v2, %v1658_v4  ;;  %v2016_v31 = vrot.slane %v1894_v14, 1  ;;  %v1728_v29 = vadd.f32 %v1657_v23, %v1484_v19  ;;  %v2138_v5 = vmul.f32 %v4035_v18, %v4084_v51  ;;  %v1174_v14 = vld [vmem:[#allocation2 + $0x178] sm:$0x3] }
 0x149   : > { %v2017_v9 = vrot.slane %v1895_v24, 1  ;;  %v2139_v33 = vmul.f32 %v4035_v18, %v4087_v49  ;;  %v1729_v8 = vadd.f32 %v1659_v26, %v1485_v25  ;;  %v2019_v30 = vrot.slane %v1896_v28, 1 }
 0x14a   : > { %v2140_v43 = vmul.f32 %v4035_v18, %v1776_v0  ;;  %v604_v36 = vmul.f32 %v4015_v6, %v3046_v17  ;;  %v1845_v39 = vadd.f32 %v1813_v61, %v1728_v29  ;;  %v2260_v37 = vrot.slane %v2138_v5, 2 }
 0x14b   : > { %v2018_v45 = vsel %vm740_vm8, %v2016_v31, %v2017_v9  ;;  %v2261_v63 = vrot.slane %v2139_v33, 2  ;;  %v1846_v62 = vadd.f32 %v1814_v7, %v1729_v8  ;;  %v2020_v55 = vsel %vm740_vm8, %v2017_v9, %v2019_v30 }
 0x14c   : > { %v2263_v47 = vrot.slane %v2140_v43, 2  ;;  %v605_v35 = vmul.f32 %v4018_v10, %v3046_v17  ;;  %v2089_v40 = vadd.f32 %v2018_v45, %v1845_v39  ;;  %v686_v41 = vmul.f32 %v4015_v6, %v3051_v21  ;;  %v4149_v45 = vld [vmem:[#allocation2 + $0x180] sm:$0xff] }
 0x14d   : > { %v2262_v57 = vsel %vm985_vm13, %v2260_v37, %v2261_v63  ;;  %v687_v42 = vmul.f32 %v4018_v10, %v3051_v21  ;;  %v2090_v32 = vadd.f32 %v2020_v55, %v1846_v62  ;;  %v688_v1 = vmul.f32 %v3051_v21, %v568_v38  ;;  %v4152_v62 = vld [vmem:[#allocation2 + $0x188] sm:$0xff]  ;;  %v1779_v55 = vld [vmem:[#allocation2 + $0x190] sm:$0x3] }
 0x14e   : > { %v2264_v53 = vsel %vm985_vm13, %v2261_v63, %v2263_v47  ;;  %v931_v12 = vmul.f32 %v4015_v6, %v3054_v22  ;;  %v2333_v46 = vadd.f32 %v2262_v57, %v2089_v40  ;;  %v811_v16 = vrot.slane %v686_v41, 1 }
 0x14f   : > { %v812_v48 = vrot.slane %v687_v42, 1  ;;  %v932_v34 = vmul.f32 %v4018_v10, %v3054_v22  ;;  %v2334_v13 = vadd.f32 %v2264_v53, %v2090_v32  ;;  %v814_v60 = vrot.slane %v688_v1, 1 }
 0x150   : > { %v933_v44 = vmul.f32 %v3054_v22, %v568_v38  ;;  %v1056_v52 = vrot.slane %v931_v12, 2  ;;  %v2524_v58 = vadd.f32 %v4065_v56, %v2333_v46  ;;  %v2563_v2 = vmul.f32 %v2333_v46, %v2333_v46 }
 0x151   : > { %v813_v0 = vsel %vm740_vm8, %v811_v16, %v812_v48  ;;  %v1057_v61 = vrot.slane %v932_v34, 2  ;;  %v2904_v59 = vpack.c.bf16 %v2334_v13, %v2333_v46  ;;  %v2564_v6 = vmul.f32 %v2334_v13, %v2334_v13 }
 0x152   : > { %v815_v4 = vsel %vm740_vm8, %v812_v48, %v814_v60  ;;  %v881_v7 = vadd.f32 %v813_v0, %v604_v36  ;;  %v4128_v3 = vadd.f32 %v2524_v58, %v2334_v13  ;;  %v2594_v10 = vadd.f32 %v4075_v15, %v2563_v2 }
 0x153   : > { %v882_v19 = vadd.f32 %v815_v4, %v605_v35  ;;  %v1058_v23 = vsel %vm985_vm13, %v1056_v52, %v1057_v61  ;;  %2943 = vst [vmem:[%s3211_s30 + $0x68] sm:$0xff] %v2904_v59   ;;  %v1059_v24 = vrot.slane %v933_v44, 2  ;;  %v1210_v25 = vmul.f32 %v4084_v51, %v3125_v20  ;;  %v571_v4 = vld [vmem:[#allocation2 + $0x178] sm:$0x3] }
 0x154   : > { %v1126_v56 = vadd.f32 %v1058_v23, %v881_v7  ;;  %v1211_v26 = vmul.f32 %v4087_v49, %v3125_v20  ;;  %v4137_v28 = vadd.f32 %v2594_v10, %v2564_v6  ;;  %v1292_v31 = vmul.f32 %v4084_v51, %v3130_v27 }
 0x155   : > { %v1293_v15 = vmul.f32 %v4087_v49, %v3130_v27  ;;  %v1294_v29 = vmul.f32 %v3130_v27, %v1174_v14  ;;  %v1060_v9 = vsel %vm985_vm13, %v1057_v61, %v1059_v24  ;;  %v1536_v33 = vmul.f32 %v4084_v51, %v3140_v11 }
 0x156   : > { %v1242_v5 = vadd.f32 %v1210_v25, %v1126_v56  ;;  %v1537_v8 = vmul.f32 %v4087_v49, %v3140_v11  ;;  %v1127_v30 = vadd.f32 %v1060_v9, %v882_v19  ;;  %v1416_v43 = vrot.slane %v1292_v31, 1 }
 0x157   : > { %v1417_v36 = vrot.slane %v1293_v15, 1  ;;  %v1419_v39 = vrot.slane %v1294_v29, 1  ;;  %v1538_v37 = vmul.f32 %v3140_v11, %v1174_v14  ;;  %v1660_v63 = vrot.slane %v1536_v33, 2 }
 0x158   : > { %v1661_v38 = vrot.slane %v1537_v8, 2  ;;  %v1815_v47 = vmul.f32 %v3164_v50, %v4149_v45  ;;  %v1243_v35 = vadd.f32 %v1211_v26, %v1127_v30  ;;  %v1816_v41 = vmul.f32 %v3164_v50, %v4152_v62 }
 0x159   : > { %v1418_v40 = vsel %vm740_vm8, %v1416_v43, %v1417_v36  ;;  %v1420_v57 = vsel %vm740_vm8, %v1417_v36, %v1419_v39  ;;  %v1663_v53 = vrot.slane %v1538_v37, 2  ;;  %v1897_v1 = vmul.f32 %v3171_v54, %v4149_v45 }
 0x15a   : > { %v1486_v42 = vadd.f32 %v1418_v40, %v1242_v5  ;;  %v1662_v32 = vsel %vm985_vm13, %v1660_v63, %v1661_v38  ;;  %v1487_v12 = vadd.f32 %v1420_v57, %v1243_v35  ;;  %v1898_v46 = vmul.f32 %v3171_v54, %v4152_v62 }
 0x15b   : > { %v1899_v16 = vmul.f32 %v3171_v54, %v1779_v55  ;;  %v2141_v48 = vmul.f32 %v4035_v18, %v4149_v45  ;;  %v1664_v34 = vsel %vm985_vm13, %v1661_v38, %v1663_v53  ;;  %v2021_v60 = vrot.slane %v1897_v1, 1 }
 0x15c   : > { %v1730_v13 = vadd.f32 %v1662_v32, %v1486_v42  ;;  %v2142_v44 = vmul.f32 %v4035_v18, %v4152_v62  ;;  %v1731_v52 = vadd.f32 %v1664_v34, %v1487_v12  ;;  %v2022_v58 = vrot.slane %v1898_v46, 1 }
 0x15d   : > { %v2024_v2 = vrot.slane %v1899_v16, 1  ;;  %v2143_v0 = vmul.f32 %v4035_v18, %v1779_v55  ;;  %v2265_v59 = vrot.slane %v2141_v48, 2  ;;  %v606_v7 = vmul.f32 %v4084_v51, %v3046_v17 }
 0x15e   : > { %v1847_v61 = vadd.f32 %v1815_v47, %v1730_v13  ;;  %v2266_v6 = vrot.slane %v2142_v44, 2  ;;  %v1848_v14 = vadd.f32 %v1816_v41, %v1731_v52  ;;  %v2023_v10 = vsel %vm740_vm8, %v2021_v60, %v2022_v58 }
 0x15f   : > { %v2025_v19 = vsel %vm740_vm8, %v2022_v58, %v2024_v2  ;;  %v2268_v23 = vrot.slane %v2143_v0, 2  ;;  %v607_v25 = vmul.f32 %v4087_v49, %v3046_v17  ;;  %v689_v26 = vmul.f32 %v4084_v51, %v3051_v21 }
 0x160   : > { %v2091_v24 = vadd.f32 %v2023_v10, %v1847_v61  ;;  %v2267_v56 = vsel %vm985_vm13, %v2265_v59, %v2266_v6  ;;  %v2092_v31 = vadd.f32 %v2025_v19, %v1848_v14  ;;  %v690_v29 = vmul.f32 %v4087_v49, %v3051_v21 }
 0x161   : > { %v2269_v15 = vsel %vm985_vm13, %v2266_v6, %v2268_v23  ;;  %v691_v9 = vmul.f32 %v3051_v21, %v571_v4  ;;  %v816_v33 = vrot.slane %v689_v26, 1  ;;  %v934_v8 = vmul.f32 %v4084_v51, %v3054_v22  ;;  %v1177_v51 = vld [vmem:[#allocation2 + $0x190] sm:$0x3]  ;;  %v2957_v6 = vld [vmem:[#allocation2 + $0x8] sm:$0xff] }
 0x162   : > { %v2335_v5 = vadd.f32 %v2267_v56, %v2091_v24  ;;  %v935_v30 = vmul.f32 %v4087_v49, %v3054_v22  ;;  %v4189_v17 = vadd.f32 %v2269_v15, %v2092_v31  ;;  %v817_v43 = vrot.slane %v690_v29, 1 }
 0x163   : > { %v819_v36 = vrot.slane %v691_v9, 1  ;;  %v936_v39 = vmul.f32 %v3054_v22, %v571_v4  ;;  %v1061_v63 = vrot.slane %v934_v8, 2  ;;  %v1212_v42 = vmul.f32 %v4149_v45, %v3125_v20 }
 0x164   : > { %v2565_v37 = vmul.f32 %v2335_v5, %v2335_v5  ;;  %v1062_v38 = vrot.slane %v935_v30, 2  ;;  %v2909_v21 = vpack.c.bf16 %v4189_v17, %v2335_v5  ;;  %v818_v55 = vsel %vm740_vm8, %v816_v33, %v817_v43 }
 0x165   : > { %v820_v47 = vsel %vm740_vm8, %v817_v43, %v819_v36  ;;  %v2526_v35 = vadd.f32 %v4128_v3, %v2335_v5  ;;  %v883_v40 = vadd.f32 %v818_v55, %v606_v7  ;;  %v1064_v22 = vrot.slane %v936_v39, 2 }
 0x166   : > { %v2596_v49 = vadd.f32 %v4137_v28, %v2565_v37  ;;  %v884_v57 = vadd.f32 %v820_v47, %v607_v25  ;;  %2944 = vst [vmem:[%s3211_s30 + $0x70] sm:$0xff] %v2909_v21   ;;  %v1063_v41 = vsel %vm985_vm13, %v1061_v63, %v1062_v38  ;;  %v1213_v32 = vmul.f32 %v4152_v62, %v3125_v20  ;;  %v1780_v20 = vld [vmem:[#allocation2 + $0x198] sm:$0xff] }
 0x167   : > { %v1128_v53 = vadd.f32 %v1063_v41, %v883_v40  ;;  %v1295_v1 = vmul.f32 %v4149_v45, %v3130_v27  ;;  %v1296_v3 = vmul.f32 %v4152_v62, %v3130_v27  ;;  %v1297_v28 = vmul.f32 %v3130_v27, %v1177_v51  ;;  %v1782_v27 = vld [vmem:[#allocation2 + $0x1a8] sm:$0x3] }
 0x168   : > { %v1065_v12 = vsel %vm985_vm13, %v1062_v38, %v1064_v22  ;;  %v1539_v46 = vmul.f32 %v4149_v45, %v3140_v11  ;;  %v1540_v16 = vmul.f32 %v4152_v62, %v3140_v11  ;;  %v1541_v48 = vmul.f32 %v3140_v11, %v1177_v51 }
 0x169   : > { %v1129_v34 = vadd.f32 %v1065_v12, %v884_v57  ;;  %v1244_v13 = vadd.f32 %v1212_v42, %v1128_v53  ;;  %v1421_v60 = vrot.slane %v1295_v1, 1  ;;  %v1422_v44 = vrot.slane %v1296_v3, 1 }
 0x16a   : > { %v1424_v52 = vrot.slane %v1297_v28, 1  ;;  %v1665_v58 = vrot.slane %v1539_v46, 2  ;;  %v1666_v2 = vrot.slane %v1540_v16, 2  ;;  %v1668_v0 = vrot.slane %v1541_v48, 2 }
 0x16b   : > { %v1245_v61 = vadd.f32 %v1213_v32, %v1129_v34  ;;  %v1423_v59 = vsel %vm740_vm8, %v1421_v60, %v1422_v44  ;;  %v1817_v45 = vmul.f32 %v3164_v50, %v1780_v20  ;;  %v1818_v62 = vmul.f32 %v2957_v6, %v3164_v50 }
 0x16c   : > { %v1425_v11 = vsel %vm740_vm8, %v1422_v44, %v1424_v52  ;;  %v1488_v4 = vadd.f32 %v1423_v59, %v1244_v13  ;;  %v1667_v7 = vsel %vm985_vm13, %v1665_v58, %v1666_v2  ;;  %v1669_v14 = vsel %vm985_vm13, %v1666_v2, %v1668_v0 }
 0x16d   : > { %v1489_v10 = vadd.f32 %v1425_v11, %v1245_v61  ;;  %v1900_v19 = vmul.f32 %v3171_v54, %v1780_v20  ;;  %v1901_v23 = vmul.f32 %v2957_v6, %v3171_v54  ;;  %v1902_v24 = vmul.f32 %v3171_v54, %v1782_v27 }
 0x16e   : > { %v1732_v56 = vadd.f32 %v1667_v7, %v1488_v4  ;;  %v2144_v25 = vmul.f32 %v4035_v18, %v1780_v20  ;;  %v2145_v26 = vmul.f32 %v2957_v6, %v4035_v18  ;;  %v2146_v50 = vmul.f32 %v4035_v18, %v1782_v27 }
 0x16f   : > { %v1733_v31 = vadd.f32 %v1669_v14, %v1489_v10  ;;  %v2026_v15 = vrot.slane %v1900_v19, 1  ;;  %v2027_v29 = vrot.slane %v1901_v23, 1  ;;  %v2029_v9 = vrot.slane %v1902_v24, 1 }
 0x170   : > { %v1849_v5 = vadd.f32 %v1817_v45, %v1732_v56  ;;  %v2270_v33 = vrot.slane %v2144_v25, 2  ;;  %v2271_v8 = vrot.slane %v2145_v26, 2  ;;  %v2273_v30 = vrot.slane %v2146_v50, 2 }
 0x171   : > { %v2566_v43 = vmul.f32 %v4189_v17, %v4189_v17  ;;  %v1850_v36 = vadd.f32 %v1818_v62, %v1733_v31  ;;  %v2028_v54 = vsel %vm740_vm8, %v2026_v15, %v2027_v29  ;;  %v2030_v39 = vsel %vm740_vm8, %v2027_v29, %v2029_v9 }
 0x172   : > { %v2527_v37 = vadd.f32 %v2526_v35, %v4189_v17  ;;  %v2093_v18 = vadd.f32 %v2028_v54, %v1849_v5  ;;  %v2272_v63 = vsel %vm985_vm13, %v2270_v33, %v2271_v8  ;;  %v2274_v38 = vsel %vm985_vm13, %v2271_v8, %v2273_v30 }
 0x173   : > { %v2094_v21 = vadd.f32 %v2030_v39, %v1850_v36  ;;  %v2597_v47 = vadd.f32 %v2596_v49, %v2566_v43 }
 0x174   : > { %v2337_v55 = vadd.f32 %v2272_v63, %v2093_v18 }
 0x175   : > { %v2338_v51 = vadd.f32 %v2274_v38, %v2094_v21 }
 0x176   : > { %v2567_v40 = vmul.f32 %v2337_v55, %v2337_v55  ;;  %v2528_v57 = vadd.f32 %v2527_v37, %v2337_v55 }
 0x177   : > { %v2914_v41 = vpack.c.bf16 %v2338_v51, %v2337_v55  ;;  %v2568_v42 = vmul.f32 %v2338_v51, %v2338_v51 }
 0x178   : > { %v2529_v22 = vadd.f32 %v2528_v57, %v2338_v51  ;;  %v2598_v32 = vadd.f32 %v2597_v47, %v2567_v40 }
 0x179   : > { %2945 = vst [vmem:[%s3211_s30 + $0x78] sm:$0xff] %v2914_v41  }
 0x17a   : > { %v2530_v53 = vrot.slane %v2529_v22, 4  ;;  %v2599_v1 = vadd.f32 %v2598_v32, %v2568_v42 }
 0x17c   : > { %v2531_v17 = vadd.f32 %v2530_v53, %v2529_v22  ;;  %v2600_v35 = vrot.slane %v2599_v1, 4 }
 0x17e   : > { %v2532_v3 = vrot.slane %v2531_v17, 2  ;;  %v2601_v28 = vadd.f32 %v2600_v35, %v2599_v1 }
 0x180   : > { %v2533_v12 = vadd.f32 %v2532_v3, %v2531_v17  ;;  %v2602_v46 = vrot.slane %v2601_v28, 2 }
 0x182   : > { %v2534_v16 = vrot.slane %v2533_v12, 1  ;;  %v2603_v48 = vadd.f32 %v2602_v46, %v2601_v28 }
 0x184   : > { %v2535_v49 = vadd.f32 %v2534_v16, %v2533_v12  ;;  %v2604_v20 = vrot.slane %v2603_v48, 1 }
 0x186   : > { %2536 = vst [vmem:[%s208_s12] sm:$0x1] %v2535_v49  ;;  %v2605_v34 = vadd.f32 %v2604_v20, %v2603_v48 }
 0x188   : > { %2606 = vst [vmem:[%s208_s12 + $0x1] sm:$0x1] %v2605_v34 }
 0x189 PF: > { %s15_s15 = sadd.s32 1, %s2964_s15  }
 0x18a   : > { %p12_p4 = scmp.ge.s32.totalorder %s15_s15, 4  }
 0x18c   :  { %14 = sbr.rel (!%p12_p4) target bundleno = 1 (0x1), region = 77 }

</bundles_post_ra>
